<compile_context>
chip_gen: v5e
topology: v5e:2x2
jax: 0.10.0
libtpu: 0.0.40
codegen_flags: <defaults>
</compile_context>

<pallas_src>
import math

import jax
import jax.numpy as jnp
from jax import lax
from jax.experimental import pallas as pl
from jax.experimental.pallas import tpu as pltpu

# ----------------------------- configuration ---------------------------------
BATCH = 2
CHANNEL_SIZE = 1              # DEFAULT_CHANNEL_SIZE
HIDDEN = 4                    # hidden_size (feature map HIDDEN x HIDDEN)
BDC_DIM = 136                 # bdc_output_dim (module default, use_bdc=True)
FFN_HIDDEN = 256              # ffn_hidden (kept small for the example)
GAMMAS = [0.1, 0.3, 0.5]      # DEFAULT_GAMMAS
HEAD_SIZES = [1, 2, 4]        # DEFAULT_HEAD_SIZES
D_HEAD = 16                   # synthetic per-head projection width

C16 = CHANNEL_SIZE * 16
C8 = CHANNEL_SIZE * 8
C4 = CHANNEL_SIZE * 4
L0 = HIDDEN * HIDDEN          # 16  (h*w after fc_recover / unflatten)
L1 = 2 * L0 + 1               # 33  conv_upsample1 (output_padding=1)
L2 = 2 * L1 + 1               # 67  conv_upsample2 (output_padding=1)
L3 = 2 * L2                   # 134 conv_upsample3 (no output_padding)
OUTPUT_SIZE = L3
BN_EPS = 1e-5

SLAB_W = 256                  # shared lane width of both parameter slabs


# ----------------------------- slab layout (static) ---------------------------
def _round_up(n, m):
    return ((n + m - 1) // m) * m


def _build_layout(specs, row_align):
    """name -> (row_offset, rows, cols); every block row-aligned to `row_align`."""
    off, row = {}, 0
    for name, (r, c) in specs:
        assert c <= SLAB_W, (name, c)
        off[name] = (row, r, c)
        row += _round_up(r, row_align)
    return off, _round_up(row, row_align)


def _conv_w_specs(pfx, cin, cout, l_in, out_pad):
    l_out = 2 * l_in + out_pad
    return [(pfx + '_w', (2 * BATCH * cout, BATCH * cin)),   # block-diag taps, BN folded
            (pfx + '_pe', (l_in, l_out)),                    # tap0 -> even positions
            (pfx + '_po', (l_in, l_out))]                    # tap1 -> odd positions


def _enc_w_specs(pfx, d_model, heads):
    hd = heads * D_HEAD
    return [(pfx + '_wqkv', (d_model, 3 * hd)),
            (pfx + '_wo', (hd, d_model)),
            (pfx + '_w1', (d_model, FFN_HIDDEN)),
            (pfx + '_w2', (FFN_HIDDEN, d_model))]


def _enc_f_specs(pfx, d_model, heads, seq):
    hd = heads * D_HEAD
    return [(pfx + '_bqkv', (1, 3 * hd)),
            (pfx + '_bo', (1, d_model)),
            (pfx + '_b1', (1, FFN_HIDDEN)),
            (pfx + '_b2', (1, d_model)),
            (pfx + '_ln1g', (1, d_model)),
            (pfx + '_ln1b', (1, d_model)),
            (pfx + '_ln2g', (1, d_model)),
            (pfx + '_ln2b', (1, d_model)),
            (pfx + '_decay', (BATCH * seq, BATCH * seq))]    # batch block-diag decay


W_SPECS = ([('fc_w', (BDC_DIM, C16 * L0)),
            ('rs_e', (BATCH * C16, BATCH)),      # view fold: batch-row repeat
            ('rs_g', (C16 * L0, L0))]            # view fold: column gather
           + _conv_w_specs('c1', C16, C8, L0, 1)
           + _conv_w_specs('c2', C8, C4, L1, 1)
           + _conv_w_specs('c3', C4, CHANNEL_SIZE, L2, 0)
           + _enc_w_specs('e3', L1, HEAD_SIZES[2])
           + _enc_w_specs('e2', L2, HEAD_SIZES[1])
           + _enc_w_specs('e1', L3, HEAD_SIZES[0]))

F_SPECS = ([('fc_b', (1, C16 * L0)),
            ('rs_m', (BATCH * C16, C16 * L0)),   # view fold: row-dependent column mask
            ('c1_a', (BATCH * C8, L1)),          # pre-broadcast conv bias + BN shift
            ('c2_a', (BATCH * C4, L2)),
            ('c3_a', (BATCH * CHANNEL_SIZE, L3))]
           + _enc_f_specs('e3', L1, HEAD_SIZES[2], C8)
           + _enc_f_specs('e2', L2, HEAD_SIZES[1], C4)
           + _enc_f_specs('e1', L3, HEAD_SIZES[0], CHANNEL_SIZE))

# bf16 slab rows aligned to 16 (bf16 sublane tile), f32 slab rows aligned to 8.
W_OFF, W_ROWS = _build_layout(W_SPECS, 16)
F_OFF, F_ROWS = _build_layout(F_SPECS, 8)


# ----------------------------- in-kernel helpers ------------------------------
def _mm(a, b):
    """MXU matmul: bf16 operands (weights already bf16 at rest), f32 accumulation."""
    return jnp.dot(a.astype(jnp.bfloat16), b.astype(jnp.bfloat16),
                   preferred_element_type=jnp.float32)


def _layer_norm(x, g, b, eps=1e-5):
    mu = jnp.mean(x, axis=-1, keepdims=True)
    var = jnp.mean((x - mu) ** 2, axis=-1, keepdims=True)
    return (x - mu) * lax.rsqrt(var + eps) * g + b


def _conv_stage(x, w_bd, pe, po, a_map, bcout):
    """Batch-stacked ConvTranspose1d(k=2,s=2) + eval BN: exactly 3 MXU matmuls.

    x     [B*Cin, Lin]           batch-stacked activation
    w_bd  [2*B*Cout, B*Cin]      kron(I_B, tap) rows ordered [even_all, odd_all]
    pe/po [Lin, Lout]            0/1 scatter to even/odd output positions
    a_map [B*Cout, Lout]         conv_bias*scale + shift (also fills the pad column)
    """
    y01 = _mm(w_bd, x)                                     # [2*B*Cout, Lin]
    even, odd = y01[:bcout, :], y01[bcout:, :]
    return _mm(even, pe) + _mm(odd, po) + a_map            # [B*Cout, Lout]


def _encoder_stage(x, W, F, pfx, heads):
    """Retention-style encoder layer on the batch-stacked [B*S, D] activation."""
    hd = heads * D_HEAD
    qkv = _mm(x, W(pfx + '_wqkv')) + F(pfx + '_bqkv')      # [B*S, 3*hd]
    decay = F(pfx + '_decay')                              # [B*S, B*S] block-diag
    inv = 1.0 / math.sqrt(D_HEAD)

    outs = []
    for h in range(heads):
        q_h = qkv[:, h * D_HEAD:(h + 1) * D_HEAD]
        k_h = qkv[:, hd + h * D_HEAD:hd + (h + 1) * D_HEAD]
        v_h = qkv[:, 2 * hd + h * D_HEAD:2 * hd + (h + 1) * D_HEAD]
        sc = _mm(q_h, k_h.T) * inv * decay                 # [B*S, B*S]
        outs.append(_mm(sc, v_h))                          # [B*S, D_HEAD]
    attn = jnp.concatenate(outs, axis=-1) if heads > 1 else outs[0]
    attn = _mm(attn, W(pfx + '_wo')) + F(pfx + '_bo')      # one Wo matmul

    h1 = _layer_norm(x + attn, F(pfx + '_ln1g'), F(pfx + '_ln1b'))
    f = jnp.maximum(_mm(h1, W(pfx + '_w1')) + F(pfx + '_b1'), 0.0)
    f = _mm(f, W(pfx + '_w2')) + F(pfx + '_b2')
    return _layer_norm(h1 + f, F(pfx + '_ln2g'), F(pfx + '_ln2b'))


# ----------------------------- fused kernel -----------------------------------
def _fused_kernel(x_ref, w_ref, f_ref, o_ref):
    def W(name):                                           # bf16 weight block
        r0, r, c = W_OFF[name]
        return w_ref[r0:r0 + r, :c]

    def F(name):                                           # f32 aux block
        r0, r, c = F_OFF[name]
        return f_ref[r0:r0 + r, :c]

    # fc_recover: Linear + ReLU
    y = jnp.maximum(_mm(x_ref[...], W('fc_w')) + F('fc_b'), 0.0)   # [B, C16*L0]

    # Unflatten + .view(B, C16, L0) stacked as [B*C16, L0] -- done with two tiny
    # 0/1 matmuls + a mask (MXU/VPU work), no in-kernel reshape / lane shuffles.
    rep = _mm(W('rs_e'), y) * F('rs_m')                             # [B*C16, C16*L0]
    h = _mm(rep, W('rs_g'))                                         # [B*C16, L0]

    # conv_upsample1 + bn1 -> decoder_layer3
    h = _conv_stage(h, W('c1_w'), W('c1_pe'), W('c1_po'), F('c1_a'), BATCH * C8)
    h = _encoder_stage(h, W, F, 'e3', HEAD_SIZES[2])                # [B*8, 33]
    # conv_upsample2 + bn2 -> decoder_layer2
    h = _conv_stage(h, W('c2_w'), W('c2_pe'), W('c2_po'), F('c2_a'), BATCH * C4)
    h = _encoder_stage(h, W, F, 'e2', HEAD_SIZES[1])                # [B*4, 67]
    # conv_upsample3 + bn3 -> decoder_layer1
    h = _conv_stage(h, W('c3_w'), W('c3_pe'), W('c3_po'), F('c3_a'),
                    BATCH * CHANNEL_SIZE)
    h = _encoder_stage(h, W, F, 'e1', HEAD_SIZES[0])                # [B*1, 134]

    o_ref[...] = h                                                  # squeeze(1)


# ----------------------------- host-side plumbing -----------------------------
def _decay_mask(seq, gamma):
    n = jnp.arange(seq, dtype=jnp.float32)[:, None]
    m = jnp.arange(seq, dtype=jnp.float32)[None, :]
    return jnp.where(n >= m, jnp.power(gamma, jnp.maximum(n - m, 0.0)), 0.0)


def _scatter_mats(l_in, out_pad):
    l_out = 2 * l_in + out_pad
    idx = jnp.arange(l_in)
    pe = jnp.zeros((l_in, l_out), jnp.float32).at[idx, 2 * idx].set(1.0)
    po = jnp.zeros((l_in, l_out), jnp.float32).at[idx, 2 * idx + 1].set(1.0)
    return pe, po


def _pack(blocks, layout, rows, dtype):
    slab = jnp.zeros((rows, SLAB_W), jnp.float32)
    for name, (r0, r, c) in layout.items():
        arr = jnp.asarray(blocks[name], jnp.float32)
        assert arr.shape == (r, c), (name, arr.shape, (r, c))
        slab = slab.at[r0:r0 + r, :c].set(arr)
    return slab.astype(dtype)


def prepare_decoder_inputs(params):
    """One-time host-side folding + packing into 2 slabs (bf16 weights, f32 aux)."""
    eye_b = jnp.eye(BATCH, dtype=jnp.float32)
    wb, fb = {}, {}

    # fc_recover
    wb['fc_w'] = params['fc_w']
    fb['fc_b'] = params['fc_b'].reshape(1, -1)

    # [B, C16*L0] -> [B*C16, L0] view as 0/1 matrices + mask
    wb['rs_e'] = jnp.kron(eye_b, jnp.ones((C16, 1), jnp.float32))
    wb['rs_g'] = jnp.kron(jnp.ones((C16, 1), jnp.float32),
                          jnp.eye(L0, dtype=jnp.float32))
    fb['rs_m'] = jnp.tile(jnp.kron(jnp.eye(C16, dtype=jnp.float32),
                                   jnp.ones((1, L0), jnp.float32)), (BATCH, 1))

    def conv_pack(pfx, w, bias, g, b, rm, rv, cout, l_in, out_pad):
        # eval-mode BN fold with real running stats
        scale = g / jnp.sqrt(rv + BN_EPS)
        shift = b - rm * scale
        w0 = jnp.transpose(w[:, :, 0]) * scale[:, None]          # [Cout, Cin]
        w1 = jnp.transpose(w[:, :, 1]) * scale[:, None]
        wb[pfx + '_w'] = jnp.concatenate(
            [jnp.kron(eye_b, w0), jnp.kron(eye_b, w1)], axis=0)  # [2*B*Cout, B*Cin]
        pe, po = _scatter_mats(l_in, out_pad)
        wb[pfx + '_pe'], wb[pfx + '_po'] = pe, po
        a = bias * scale + shift                                 # [Cout]
        l_out = 2 * l_in + out_pad
        fb[pfx + '_a'] = jnp.broadcast_to(
            jnp.tile(a, BATCH)[:, None], (BATCH * cout, l_out))

    conv_pack('c1', params['conv1_w'], params['conv1_b'], params['bn1_g'],
              params['bn1_b'], params['bn1_rm'], params['bn1_rv'], C8, L0, 1)
    conv_pack('c2', params['conv2_w'], params['conv2_b'], params['bn2_g'],
              params['bn2_b'], params['bn2_rm'], params['bn2_rv'], C4, L1, 1)
    conv_pack('c3', params['conv3_w'], params['conv3_b'], params['bn3_g'],
              params['bn3_b'], params['bn3_rm'], params['bn3_rv'],
              CHANNEL_SIZE, L2, 0)

    def enc_pack(pfx, ep, seq, gamma):
        wb[pfx + '_wqkv'] = jnp.concatenate([ep['wq'], ep['wk'], ep['wv']], axis=1)
        wb[pfx + '_wo'] = ep['wo']
        wb[pfx + '_w1'] = ep['w1']
        wb[pfx + '_w2'] = ep['w2']
        fb[pfx + '_bqkv'] = jnp.concatenate(
            [ep['bq'], ep['bk'], ep['bv']]).reshape(1, -1)
        fb[pfx + '_bo'] = ep['bo'].reshape(1, -1)
        fb[pfx + '_b1'] = ep['b1'].reshape(1, -1)
        fb[pfx + '_b2'] = ep['b2'].reshape(1, -1)
        fb[pfx + '_ln1g'] = ep['ln1_g'].reshape(1, -1)
        fb[pfx + '_ln1b'] = ep['ln1_b'].reshape(1, -1)
        fb[pfx + '_ln2g'] = ep['ln2_g'].reshape(1, -1)
        fb[pfx + '_ln2b'] = ep['ln2_b'].reshape(1, -1)
        fb[pfx + '_decay'] = jnp.kron(eye_b, _decay_mask(seq, gamma))

    enc_pack('e3', params['enc3'], C8, GAMMAS[2])
    enc_pack('e2', params['enc2'], C4, GAMMAS[1])
    enc_pack('e1', params['enc1'], CHANNEL_SIZE, GAMMAS[0])

    wslab = _pack(wb, W_OFF, W_ROWS, jnp.bfloat16)
    fslab = _pack(fb, F_OFF, F_ROWS, jnp.float32)
    return wslab, fslab


def lrcn_decoder_forward(x, wslab, fslab):
    """x: [B, BDC_DIM] -> [B, OUTPUT_SIZE]; single fused, fully VMEM-resident kernel."""
    bytes_accessed = (x.size * x.dtype.itemsize
                      + wslab.size * wslab.dtype.itemsize
                      + fslab.size * fslab.dtype.itemsize
                      + x.shape[0] * OUTPUT_SIZE * 4)
    return pl.pallas_call(
        _fused_kernel,
        out_shape=jax.ShapeDtypeStruct((x.shape[0], OUTPUT_SIZE), jnp.float32),
        in_specs=[pl.BlockSpec(memory_space=pltpu.MemorySpace.VMEM)] * 3,
        out_specs=pl.BlockSpec(memory_space=pltpu.MemorySpace.VMEM),
        cost_estimate=pl.CostEstimate(flops=2_600_000, transcendentals=128,
                                      bytes_accessed=bytes_accessed),
    )(x, wslab, fslab)


# ----------------------------- parameters ------------------------------------
def init_params(key):
    keys = iter(jax.random.split(key, 64))

    def norm(shape, scale=0.05):
        return scale * jax.random.normal(next(keys), shape, dtype=jnp.float32)

    p = {}
    p['fc_w'] = norm((BDC_DIM, C16 * HIDDEN * HIDDEN))
    p['fc_b'] = norm((C16 * HIDDEN * HIDDEN,))

    def conv(cin, cout):
        return norm((cin, cout, 2)), norm((cout,))

    p['conv1_w'], p['conv1_b'] = conv(C16, C8)
    p['conv2_w'], p['conv2_b'] = conv(C8, C4)
    p['conv3_w'], p['conv3_b'] = conv(C4, CHANNEL_SIZE)

    for name, c in (('bn1', C8), ('bn2', C4), ('bn3', CHANNEL_SIZE)):
        p[name + '_g'] = 1.0 + norm((c,), 0.01)
        p[name + '_b'] = norm((c,), 0.01)
        p[name + '_rm'] = norm((c,), 0.1)                    # nontrivial running stats
        p[name + '_rv'] = 1.0 + jnp.abs(norm((c,), 0.1))

    def enc(d_model, heads):
        hd = heads * D_HEAD
        return {
            'wq': norm((d_model, hd)), 'bq': norm((hd,)),
            'wk': norm((d_model, hd)), 'bk': norm((hd,)),
            'wv': norm((d_model, hd)), 'bv': norm((hd,)),
            'wo': norm((hd, d_model)), 'bo': norm((d_model,)),
            'ln1_g': jnp.ones((d_model,), jnp.float32),
            'ln1_b': jnp.zeros((d_model,), jnp.float32),
            'w1': norm((d_model, FFN_HIDDEN)), 'b1': norm((FFN_HIDDEN,)),
            'w2': norm((FFN_HIDDEN, d_model)), 'b2': norm((d_model,)),
            'ln2_g': jnp.ones((d_model,), jnp.float32),
            'ln2_b': jnp.zeros((d_model,), jnp.float32),
        }

    p['enc3'] = enc(L1, HEAD_SIZES[2])   # d_model = 33,  heads 4
    p['enc2'] = enc(L2, HEAD_SIZES[1])   # d_model = 67,  heads 2
    p['enc1'] = enc(L3, HEAD_SIZES[0])   # d_model = 134, heads 1
    return p


# ----------------------------- pure-JAX reference -----------------------------
def _reference_forward(x, params):
    bsz = x.shape[0]
    y = jnp.maximum(x @ params['fc_w'] + params['fc_b'], 0.0)
    h = y.reshape(bsz, C16, L0)

    def conv_bn(h, w, bias, g, b, rm, rv, out_pad):
        bb, _, ll = h.shape
        cout = w.shape[1]
        scale = g / jnp.sqrt(rv + BN_EPS)
        y0 = jnp.einsum('oc,bcl->bol', jnp.transpose(w[:, :, 0]), h)
        y1 = jnp.einsum('oc,bcl->bol', jnp.transpose(w[:, :, 1]), h)
        even = (y0 + bias[None, :, None] - rm[None, :, None]) * scale[None, :, None] \
            + b[None, :, None]
        odd = (y1 + bias[None, :, None] - rm[None, :, None]) * scale[None, :, None] \
            + b[None, :, None]
        out = jnp.stack([even, odd], axis=-1).reshape(bb, cout, 2 * ll)
        if out_pad:
            pad_val = (bias - rm) * scale + b
            pad = jnp.broadcast_to(pad_val[None, :, None], (bb, cout, out_pad))
            out = jnp.concatenate([out, pad], axis=-1)
        return out

    def enc(h, p, gamma, heads):
        _, seq, _ = h.shape
        decay = _decay_mask(seq, gamma)
        q = jnp.einsum('bsd,de->bse', h, p['wq']) + p['bq']
        k = jnp.einsum('bsd,de->bse', h, p['wk']) + p['bk']
        v = jnp.einsum('bsd,de->bse', h, p['wv']) + p['bv']
        inv = 1.0 / math.sqrt(D_HEAD)
        outs = []
        for hh in range(heads):
            sl = slice(hh * D_HEAD, (hh + 1) * D_HEAD)
            sc = jnp.einsum('bsd,btd->bst', q[..., sl], k[..., sl]) * inv
            outs.append(jnp.einsum('bst,btd->bsd', sc * decay[None], v[..., sl]))
        attn = jnp.concatenate(outs, axis=-1) @ p['wo'] + p['bo']

        def ln(z, gg, bb_):
            mu = jnp.mean(z, axis=-1, keepdims=True)
            var = jnp.mean((z - mu) ** 2, axis=-1, keepdims=True)
            return (z - mu) / jnp.sqrt(var + 1e-5) * gg + bb_

        h1 = ln(h + attn, p['ln1_g'], p['ln1_b'])
        f = jnp.maximum(jnp.einsum('bsd,df->bsf', h1, p['w1']) + p['b1'], 0.0)
        f = jnp.einsum('bsf,fd->bsd', f, p['w2']) + p['b2']
        return ln(h1 + f, p['ln2_g'], p['ln2_b'])

    h = conv_bn(h, params['conv1_w'], params['conv1_b'], params['bn1_g'],
                params['bn1_b'], params['bn1_rm'], params['bn1_rv'], 1)
    h = enc(h, params['enc3'], GAMMAS[2], HEAD_SIZES[2])
    h = conv_bn(h, params['conv2_w'], params['conv2_b'], params['bn2_g'],
                params['bn2_b'], params['bn2_rm'], params['bn2_rv'], 1)
    h = enc(h, params['enc2'], GAMMAS[1], HEAD_SIZES[1])
    h = conv_bn(h, params['conv3_w'], params['conv3_b'], params['bn3_g'],
                params['bn3_b'], params['bn3_rm'], params['bn3_rv'], 0)
    h = enc(h, params['enc1'], GAMMAS[0], HEAD_SIZES[0])
    return h[:, 0, :]


# ----------------------------- main -------------------------------------------
if __name__ == "__main__":
    key = jax.random.PRNGKey(0)
    kp, kx = jax.random.split(key)
    params = init_params(kp)
    x = jax.random.normal(kx, (BATCH, BDC_DIM), dtype=jnp.float32)

    wslab, fslab = prepare_decoder_inputs(params)   # one-time host-side packing
    fwd = jax.jit(lrcn_decoder_forward)
    out = jax.block_until_ready(fwd(x, wslab, fslab))

    assert out.shape == (BATCH, OUTPUT_SIZE), out.shape
    assert bool(jnp.all(jnp.isfinite(out)))

    # pure-JAX f32 reference of the same forward; the fused kernel uses bf16 MXU
    # operands so allow a small drift (a mis-wired kernel would be O(1) off).
    ref = jax.jit(_reference_forward)(x, params)
    assert float(jnp.max(jnp.abs(out - ref))) < 0.25

    print("KERNEL_OK")
</pallas_src>

<mosaic_0001>
module attributes {stable_mosaic.version = 11 : i64} {
  func.func @_fused_kernel(%arg0: memref<2x136xf32, #tpu.memory_space<vmem>>, %arg1: memref<2208x256xbf16, #tpu.memory_space<vmem>>, %arg2: memref<296x256xf32, #tpu.memory_space<vmem>>, %arg3: memref<2x134xf32, #tpu.memory_space<vmem>>) attributes {dimension_semantics = [], scalar_prefetch = 0 : i64, scratch_operands = 0 : i64, tpu.core_type = #tpu.core_type<tc>} {
    %c0 = arith.constant 0 : index
    %c0_0 = arith.constant 0 : index
    %0 = vector.load %arg0[%c0, %c0_0] : memref<2x136xf32, #tpu.memory_space<vmem>>, vector<2x136xf32>
    %c0_1 = arith.constant 0 : index
    %c0_2 = arith.constant 0 : index
    %1 = vector.load %arg1[%c0_1, %c0_2] : memref<2208x256xbf16, #tpu.memory_space<vmem>>, vector<136x256xbf16>
    %2 = arith.truncf %0 : vector<2x136xf32> to vector<2x136xbf16>
    %cst = arith.constant dense<0.000000e+00> : vector<2x256xf32>
    %3 = tpu.matmul %2, %1, %cst {dimension_numbers = #tpu.dot_dimension_numbers<[1], [0], [0], [1], [0, 0, 1, 1], [], []>} : vector<2x136xbf16>, vector<136x256xbf16>, vector<2x256xf32> -> vector<2x256xf32>
    %c0_3 = arith.constant 0 : index
    %c0_4 = arith.constant 0 : index
    %4 = vector.load %arg2[%c0_3, %c0_4] : memref<296x256xf32, #tpu.memory_space<vmem>>, vector<1x256xf32>
    %5 = vector.broadcast %4 : vector<1x256xf32> to vector<2x256xf32>
    %6 = arith.addf %3, %5 : vector<2x256xf32>
    %cst_5 = arith.constant 0.000000e+00 : f32
    %7 = vector.broadcast %cst_5 : f32 to vector<2x256xf32>
    %8 = arith.maximumf %6, %7 : vector<2x256xf32>
    %c144 = arith.constant 144 : index
    %c0_6 = arith.constant 0 : index
    %9 = vector.load %arg1[%c144, %c0_6] : memref<2208x256xbf16, #tpu.memory_space<vmem>>, vector<32x2xbf16>
    %10 = arith.truncf %8 : vector<2x256xf32> to vector<2x256xbf16>
    %cst_7 = arith.constant dense<0.000000e+00> : vector<32x256xf32>
    %11 = tpu.matmul %9, %10, %cst_7 {dimension_numbers = #tpu.dot_dimension_numbers<[1], [0], [0], [1], [0, 0, 1, 1], [], []>} : vector<32x2xbf16>, vector<2x256xbf16>, vector<32x256xf32> -> vector<32x256xf32>
    %c8 = arith.constant 8 : index
    %c0_8 = arith.constant 0 : index
    %12 = vector.load %arg2[%c8, %c0_8] : memref<296x256xf32, #tpu.memory_space<vmem>>, vector<32x256xf32>
    %13 = arith.mulf %11, %12 : vector<32x256xf32>
    %c176 = arith.constant 176 : index
    %c0_9 = arith.constant 0 : index
    %14 = vector.load %arg1[%c176, %c0_9] : memref<2208x256xbf16, #tpu.memory_space<vmem>>, vector<256x16xbf16>
    %15 = arith.truncf %13 : vector<32x256xf32> to vector<32x256xbf16>
    %cst_10 = arith.constant dense<0.000000e+00> : vector<32x16xf32>
    %16 = tpu.matmul %15, %14, %cst_10 {dimension_numbers = #tpu.dot_dimension_numbers<[1], [0], [0], [1], [0, 0, 1, 1], [], []>} : vector<32x256xbf16>, vector<256x16xbf16>, vector<32x16xf32> -> vector<32x16xf32>
    %c432 = arith.constant 432 : index
    %c0_11 = arith.constant 0 : index
    %17 = vector.load %arg1[%c432, %c0_11] : memref<2208x256xbf16, #tpu.memory_space<vmem>>, vector<32x32xbf16>
    %c464 = arith.constant 464 : index
    %c0_12 = arith.constant 0 : index
    %18 = vector.load %arg1[%c464, %c0_12] : memref<2208x256xbf16, #tpu.memory_space<vmem>>, vector<16x33xbf16>
    %c480 = arith.constant 480 : index
    %c0_13 = arith.constant 0 : index
    %19 = vector.load %arg1[%c480, %c0_13] : memref<2208x256xbf16, #tpu.memory_space<vmem>>, vector<16x33xbf16>
    %c40 = arith.constant 40 : index
    %c0_14 = arith.constant 0 : index
    %20 = vector.load %arg2[%c40, %c0_14] : memref<296x256xf32, #tpu.memory_space<vmem>>, vector<16x33xf32>
    %21 = arith.truncf %16 : vector<32x16xf32> to vector<32x16xbf16>
    %cst_15 = arith.constant dense<0.000000e+00> : vector<32x16xf32>
    %22 = tpu.matmul %17, %21, %cst_15 {dimension_numbers = #tpu.dot_dimension_numbers<[1], [0], [0], [1], [0, 0, 1, 1], [], []>} : vector<32x32xbf16>, vector<32x16xbf16>, vector<32x16xf32> -> vector<32x16xf32>
    %23 = vector.extract_strided_slice %22 {offsets = [0, 0], sizes = [16, 16], strides = [1, 1]} : vector<32x16xf32> to vector<16x16xf32>
    %24 = vector.extract_strided_slice %22 {offsets = [16, 0], sizes = [16, 16], strides = [1, 1]} : vector<32x16xf32> to vector<16x16xf32>
    %25 = arith.truncf %23 : vector<16x16xf32> to vector<16x16xbf16>
    %cst_16 = arith.constant dense<0.000000e+00> : vector<16x33xf32>
    %26 = tpu.matmul %25, %18, %cst_16 {dimension_numbers = #tpu.dot_dimension_numbers<[1], [0], [0], [1], [0, 0, 1, 1], [], []>} : vector<16x16xbf16>, vector<16x33xbf16>, vector<16x33xf32> -> vector<16x33xf32>
    %27 = arith.truncf %24 : vector<16x16xf32> to vector<16x16xbf16>
    %cst_17 = arith.constant dense<0.000000e+00> : vector<16x33xf32>
    %28 = tpu.matmul %27, %19, %cst_17 {dimension_numbers = #tpu.dot_dimension_numbers<[1], [0], [0], [1], [0, 0, 1, 1], [], []>} : vector<16x16xbf16>, vector<16x33xbf16>, vector<16x33xf32> -> vector<16x33xf32>
    %29 = arith.addf %26, %28 : vector<16x33xf32>
    %30 = arith.addf %29, %20 : vector<16x33xf32>
    %c784 = arith.constant 784 : index
    %c0_18 = arith.constant 0 : index
    %31 = vector.load %arg1[%c784, %c0_18] : memref<2208x256xbf16, #tpu.memory_space<vmem>>, vector<33x192xbf16>
    %32 = arith.truncf %30 : vector<16x33xf32> to vector<16x33xbf16>
    %cst_19 = arith.constant dense<0.000000e+00> : vector<16x192xf32>
    %33 = tpu.matmul %32, %31, %cst_19 {dimension_numbers = #tpu.dot_dimension_numbers<[1], [0], [0], [1], [0, 0, 1, 1], [], []>} : vector<16x33xbf16>, vector<33x192xbf16>, vector<16x192xf32> -> vector<16x192xf32>
    %c72 = arith.constant 72 : index
    %c0_20 = arith.constant 0 : index
    %34 = vector.load %arg2[%c72, %c0_20] : memref<296x256xf32, #tpu.memory_space<vmem>>, vector<1x192xf32>
    %35 = vector.broadcast %34 : vector<1x192xf32> to vector<16x192xf32>
    %36 = arith.addf %33, %35 : vector<16x192xf32>
    %c136 = arith.constant 136 : index
    %c0_21 = arith.constant 0 : index
    %37 = vector.load %arg2[%c136, %c0_21] : memref<296x256xf32, #tpu.memory_space<vmem>>, vector<16x16xf32>
    %38 = vector.extract_strided_slice %36 {offsets = [0, 0], sizes = [16, 16], strides = [1, 1]} : vector<16x192xf32> to vector<16x16xf32>
    %39 = vector.extract_strided_slice %36 {offsets = [0, 64], sizes = [16, 16], strides = [1, 1]} : vector<16x192xf32> to vector<16x16xf32>
    %40 = vector.extract_strided_slice %36 {offsets = [0, 128], sizes = [16, 16], strides = [1, 1]} : vector<16x192xf32> to vector<16x16xf32>
    %41 = tpu.transpose %39, [1, 0] : vector<16x16xf32> -> vector<16x16xf32>
    %42 = arith.truncf %38 : vector<16x16xf32> to vector<16x16xbf16>
    %43 = arith.truncf %41 : vector<16x16xf32> to vector<16x16xbf16>
    %cst_22 = arith.constant dense<0.000000e+00> : vector<16x16xf32>
    %44 = tpu.matmul %42, %43, %cst_22 {dimension_numbers = #tpu.dot_dimension_numbers<[1], [0], [0], [1], [0, 0, 1, 1], [], []>} : vector<16x16xbf16>, vector<16x16xbf16>, vector<16x16xf32> -> vector<16x16xf32>
    %cst_23 = arith.constant 2.500000e-01 : f32
    %45 = vector.broadcast %cst_23 : f32 to vector<16x16xf32>
    %46 = arith.mulf %44, %45 : vector<16x16xf32>
    %47 = arith.mulf %46, %37 : vector<16x16xf32>
    %48 = arith.truncf %47 : vector<16x16xf32> to vector<16x16xbf16>
    %49 = arith.truncf %40 : vector<16x16xf32> to vector<16x16xbf16>
    %cst_24 = arith.constant dense<0.000000e+00> : vector<16x16xf32>
    %50 = tpu.matmul %48, %49, %cst_24 {dimension_numbers = #tpu.dot_dimension_numbers<[1], [0], [0], [1], [0, 0, 1, 1], [], []>} : vector<16x16xbf16>, vector<16x16xbf16>, vector<16x16xf32> -> vector<16x16xf32>
    %51 = vector.extract_strided_slice %36 {offsets = [0, 16], sizes = [16, 16], strides = [1, 1]} : vector<16x192xf32> to vector<16x16xf32>
    %52 = vector.extract_strided_slice %36 {offsets = [0, 80], sizes = [16, 16], strides = [1, 1]} : vector<16x192xf32> to vector<16x16xf32>
    %53 = vector.extract_strided_slice %36 {offsets = [0, 144], sizes = [16, 16], strides = [1, 1]} : vector<16x192xf32> to vector<16x16xf32>
    %54 = tpu.transpose %52, [1, 0] : vector<16x16xf32> -> vector<16x16xf32>
    %55 = arith.truncf %51 : vector<16x16xf32> to vector<16x16xbf16>
    %56 = arith.truncf %54 : vector<16x16xf32> to vector<16x16xbf16>
    %cst_25 = arith.constant dense<0.000000e+00> : vector<16x16xf32>
    %57 = tpu.matmul %55, %56, %cst_25 {dimension_numbers = #tpu.dot_dimension_numbers<[1], [0], [0], [1], [0, 0, 1, 1], [], []>} : vector<16x16xbf16>, vector<16x16xbf16>, vector<16x16xf32> -> vector<16x16xf32>
    %cst_26 = arith.constant 2.500000e-01 : f32
    %58 = vector.broadcast %cst_26 : f32 to vector<16x16xf32>
    %59 = arith.mulf %57, %58 : vector<16x16xf32>
    %60 = arith.mulf %59, %37 : vector<16x16xf32>
    %61 = arith.truncf %60 : vector<16x16xf32> to vector<16x16xbf16>
    %62 = arith.truncf %53 : vector<16x16xf32> to vector<16x16xbf16>
    %cst_27 = arith.constant dense<0.000000e+00> : vector<16x16xf32>
    %63 = tpu.matmul %61, %62, %cst_27 {dimension_numbers = #tpu.dot_dimension_numbers<[1], [0], [0], [1], [0, 0, 1, 1], [], []>} : vector<16x16xbf16>, vector<16x16xbf16>, vector<16x16xf32> -> vector<16x16xf32>
    %64 = vector.extract_strided_slice %36 {offsets = [0, 32], sizes = [16, 16], strides = [1, 1]} : vector<16x192xf32> to vector<16x16xf32>
    %65 = vector.extract_strided_slice %36 {offsets = [0, 96], sizes = [16, 16], strides = [1, 1]} : vector<16x192xf32> to vector<16x16xf32>
    %66 = vector.extract_strided_slice %36 {offsets = [0, 160], sizes = [16, 16], strides = [1, 1]} : vector<16x192xf32> to vector<16x16xf32>
    %67 = tpu.transpose %65, [1, 0] : vector<16x16xf32> -> vector<16x16xf32>
    %68 = arith.truncf %64 : vector<16x16xf32> to vector<16x16xbf16>
    %69 = arith.truncf %67 : vector<16x16xf32> to vector<16x16xbf16>
    %cst_28 = arith.constant dense<0.000000e+00> : vector<16x16xf32>
    %70 = tpu.matmul %68, %69, %cst_28 {dimension_numbers = #tpu.dot_dimension_numbers<[1], [0], [0], [1], [0, 0, 1, 1], [], []>} : vector<16x16xbf16>, vector<16x16xbf16>, vector<16x16xf32> -> vector<16x16xf32>
    %cst_29 = arith.constant 2.500000e-01 : f32
    %71 = vector.broadcast %cst_29 : f32 to vector<16x16xf32>
    %72 = arith.mulf %70, %71 : vector<16x16xf32>
    %73 = arith.mulf %72, %37 : vector<16x16xf32>
    %74 = arith.truncf %73 : vector<16x16xf32> to vector<16x16xbf16>
    %75 = arith.truncf %66 : vector<16x16xf32> to vector<16x16xbf16>
    %cst_30 = arith.constant dense<0.000000e+00> : vector<16x16xf32>
    %76 = tpu.matmul %74, %75, %cst_30 {dimension_numbers = #tpu.dot_dimension_numbers<[1], [0], [0], [1], [0, 0, 1, 1], [], []>} : vector<16x16xbf16>, vector<16x16xbf16>, vector<16x16xf32> -> vector<16x16xf32>
    %77 = vector.extract_strided_slice %36 {offsets = [0, 48], sizes = [16, 16], strides = [1, 1]} : vector<16x192xf32> to vector<16x16xf32>
    %78 = vector.extract_strided_slice %36 {offsets = [0, 112], sizes = [16, 16], strides = [1, 1]} : vector<16x192xf32> to vector<16x16xf32>
    %79 = vector.extract_strided_slice %36 {offsets = [0, 176], sizes = [16, 16], strides = [1, 1]} : vector<16x192xf32> to vector<16x16xf32>
    %80 = tpu.transpose %78, [1, 0] : vector<16x16xf32> -> vector<16x16xf32>
    %81 = arith.truncf %77 : vector<16x16xf32> to vector<16x16xbf16>
    %82 = arith.truncf %80 : vector<16x16xf32> to vector<16x16xbf16>
    %cst_31 = arith.constant dense<0.000000e+00> : vector<16x16xf32>
    %83 = tpu.matmul %81, %82, %cst_31 {dimension_numbers = #tpu.dot_dimension_numbers<[1], [0], [0], [1], [0, 0, 1, 1], [], []>} : vector<16x16xbf16>, vector<16x16xbf16>, vector<16x16xf32> -> vector<16x16xf32>
    %cst_32 = arith.constant 2.500000e-01 : f32
    %84 = vector.broadcast %cst_32 : f32 to vector<16x16xf32>
    %85 = arith.mulf %83, %84 : vector<16x16xf32>
    %86 = arith.mulf %85, %37 : vector<16x16xf32>
    %87 = arith.truncf %86 : vector<16x16xf32> to vector<16x16xbf16>
    %88 = arith.truncf %79 : vector<16x16xf32> to vector<16x16xbf16>
    %cst_33 = arith.constant dense<0.000000e+00> : vector<16x16xf32>
    %89 = tpu.matmul %87, %88, %cst_33 {dimension_numbers = #tpu.dot_dimension_numbers<[1], [0], [0], [1], [0, 0, 1, 1], [], []>} : vector<16x16xbf16>, vector<16x16xbf16>, vector<16x16xf32> -> vector<16x16xf32>
    %90 = tpu.concatenate %50, %63, %76, %89 in 1 : vector<16x16xf32>, vector<16x16xf32>, vector<16x16xf32>, vector<16x16xf32> -> vector<16x64xf32>
    %c832 = arith.constant 832 : index
    %c0_34 = arith.constant 0 : index
    %91 = vector.load %arg1[%c832, %c0_34] : memref<2208x256xbf16, #tpu.memory_space<vmem>>, vector<64x33xbf16>
    %92 = arith.truncf %90 : vector<16x64xf32> to vector<16x64xbf16>
    %cst_35 = arith.constant dense<0.000000e+00> : vector<16x33xf32>
    %93 = tpu.matmul %92, %91, %cst_35 {dimension_numbers = #tpu.dot_dimension_numbers<[1], [0], [0], [1], [0, 0, 1, 1], [], []>} : vector<16x64xbf16>, vector<64x33xbf16>, vector<16x33xf32> -> vector<16x33xf32>
    %c80 = arith.constant 80 : index
    %c0_36 = arith.constant 0 : index
    %94 = vector.load %arg2[%c80, %c0_36] : memref<296x256xf32, #tpu.memory_space<vmem>>, vector<1x33xf32>
    %95 = vector.broadcast %94 : vector<1x33xf32> to vector<16x33xf32>
    %96 = arith.addf %93, %95 : vector<16x33xf32>
    %97 = arith.addf %30, %96 : vector<16x33xf32>
    %c104 = arith.constant 104 : index
    %c0_37 = arith.constant 0 : index
    %98 = vector.load %arg2[%c104, %c0_37] : memref<296x256xf32, #tpu.memory_space<vmem>>, vector<1x33xf32>
    %c112 = arith.constant 112 : index
    %c0_38 = arith.constant 0 : index
    %99 = vector.load %arg2[%c112, %c0_38] : memref<296x256xf32, #tpu.memory_space<vmem>>, vector<1x33xf32>
    %cst_39 = arith.constant dense<0.000000e+00> : vector<16xf32>
    %100 = vector.multi_reduction <add>, %97, %cst_39 [1] : vector<16x33xf32> to vector<16xf32>
    %101 = vector.shape_cast %100 : vector<16xf32> to vector<16x1xf32>
    %cst_40 = arith.constant 3.300000e+01 : f32
    %102 = vector.broadcast %cst_40 : f32 to vector<16x1xf32>
    %103 = arith.divf %101, %102 : vector<16x1xf32>
    %104 = vector.broadcast %103 : vector<16x1xf32> to vector<16x33xf32>
    %105 = arith.subf %97, %104 : vector<16x33xf32>
    %106 = arith.mulf %105, %105 : vector<16x33xf32>
    %cst_41 = arith.constant dense<0.000000e+00> : vector<16xf32>
    %107 = vector.multi_reduction <add>, %106, %cst_41 [1] : vector<16x33xf32> to vector<16xf32>
    %108 = vector.shape_cast %107 : vector<16xf32> to vector<16x1xf32>
    %cst_42 = arith.constant 3.300000e+01 : f32
    %109 = vector.broadcast %cst_42 : f32 to vector<16x1xf32>
    %110 = arith.divf %108, %109 : vector<16x1xf32>
    %111 = vector.broadcast %103 : vector<16x1xf32> to vector<16x33xf32>
    %112 = arith.subf %97, %111 : vector<16x33xf32>
    %cst_43 = arith.constant 9.99999974E-6 : f32
    %113 = vector.broadcast %cst_43 : f32 to vector<16x1xf32>
    %114 = arith.addf %110, %113 : vector<16x1xf32>
    %115 = math.rsqrt %114 : vector<16x1xf32>
    %116 = vector.broadcast %115 : vector<16x1xf32> to vector<16x33xf32>
    %117 = arith.mulf %112, %116 : vector<16x33xf32>
    %118 = vector.broadcast %98 : vector<1x33xf32> to vector<16x33xf32>
    %119 = arith.mulf %117, %118 : vector<16x33xf32>
    %120 = vector.broadcast %99 : vector<1x33xf32> to vector<16x33xf32>
    %121 = arith.addf %119, %120 : vector<16x33xf32>
    %c896 = arith.constant 896 : index
    %c0_44 = arith.constant 0 : index
    %122 = vector.load %arg1[%c896, %c0_44] : memref<2208x256xbf16, #tpu.memory_space<vmem>>, vector<33x256xbf16>
    %123 = arith.truncf %121 : vector<16x33xf32> to vector<16x33xbf16>
    %cst_45 = arith.constant dense<0.000000e+00> : vector<16x256xf32>
    %124 = tpu.matmul %123, %122, %cst_45 {dimension_numbers = #tpu.dot_dimension_numbers<[1], [0], [0], [1], [0, 0, 1, 1], [], []>} : vector<16x33xbf16>, vector<33x256xbf16>, vector<16x256xf32> -> vector<16x256xf32>
    %c88 = arith.constant 88 : index
    %c0_46 = arith.constant 0 : index
    %125 = vector.load %arg2[%c88, %c0_46] : memref<296x256xf32, #tpu.memory_space<vmem>>, vector<1x256xf32>
    %126 = vector.broadcast %125 : vector<1x256xf32> to vector<16x256xf32>
    %127 = arith.addf %124, %126 : vector<16x256xf32>
    %cst_47 = arith.constant 0.000000e+00 : f32
    %128 = vector.broadcast %cst_47 : f32 to vector<16x256xf32>
    %129 = arith.maximumf %127, %128 : vector<16x256xf32>
    %c944 = arith.constant 944 : index
    %c0_48 = arith.constant 0 : index
    %130 = vector.load %arg1[%c944, %c0_48] : memref<2208x256xbf16, #tpu.memory_space<vmem>>, vector<256x33xbf16>
    %131 = arith.truncf %129 : vector<16x256xf32> to vector<16x256xbf16>
    %cst_49 = arith.constant dense<0.000000e+00> : vector<16x33xf32>
    %132 = tpu.matmul %131, %130, %cst_49 {dimension_numbers = #tpu.dot_dimension_numbers<[1], [0], [0], [1], [0, 0, 1, 1], [], []>} : vector<16x256xbf16>, vector<256x33xbf16>, vector<16x33xf32> -> vector<16x33xf32>
    %c96 = arith.constant 96 : index
    %c0_50 = arith.constant 0 : index
    %133 = vector.load %arg2[%c96, %c0_50] : memref<296x256xf32, #tpu.memory_space<vmem>>, vector<1x33xf32>
    %134 = vector.broadcast %133 : vector<1x33xf32> to vector<16x33xf32>
    %135 = arith.addf %132, %134 : vector<16x33xf32>
    %136 = arith.addf %121, %135 : vector<16x33xf32>
    %c120 = arith.constant 120 : index
    %c0_51 = arith.constant 0 : index
    %137 = vector.load %arg2[%c120, %c0_51] : memref<296x256xf32, #tpu.memory_space<vmem>>, vector<1x33xf32>
    %c128 = arith.constant 128 : index
    %c0_52 = arith.constant 0 : index
    %138 = vector.load %arg2[%c128, %c0_52] : memref<296x256xf32, #tpu.memory_space<vmem>>, vector<1x33xf32>
    %cst_53 = arith.constant dense<0.000000e+00> : vector<16xf32>
    %139 = vector.multi_reduction <add>, %136, %cst_53 [1] : vector<16x33xf32> to vector<16xf32>
    %140 = vector.shape_cast %139 : vector<16xf32> to vector<16x1xf32>
    %cst_54 = arith.constant 3.300000e+01 : f32
    %141 = vector.broadcast %cst_54 : f32 to vector<16x1xf32>
    %142 = arith.divf %140, %141 : vector<16x1xf32>
    %143 = vector.broadcast %142 : vector<16x1xf32> to vector<16x33xf32>
    %144 = arith.subf %136, %143 : vector<16x33xf32>
    %145 = arith.mulf %144, %144 : vector<16x33xf32>
    %cst_55 = arith.constant dense<0.000000e+00> : vector<16xf32>
    %146 = vector.multi_reduction <add>, %145, %cst_55 [1] : vector<16x33xf32> to vector<16xf32>
    %147 = vector.shape_cast %146 : vector<16xf32> to vector<16x1xf32>
    %cst_56 = arith.constant 3.300000e+01 : f32
    %148 = vector.broadcast %cst_56 : f32 to vector<16x1xf32>
    %149 = arith.divf %147, %148 : vector<16x1xf32>
    %150 = vector.broadcast %142 : vector<16x1xf32> to vector<16x33xf32>
    %151 = arith.subf %136, %150 : vector<16x33xf32>
    %cst_57 = arith.constant 9.99999974E-6 : f32
    %152 = vector.broadcast %cst_57 : f32 to vector<16x1xf32>
    %153 = arith.addf %149, %152 : vector<16x1xf32>
    %154 = math.rsqrt %153 : vector<16x1xf32>
    %155 = vector.broadcast %154 : vector<16x1xf32> to vector<16x33xf32>
    %156 = arith.mulf %151, %155 : vector<16x33xf32>
    %157 = vector.broadcast %137 : vector<1x33xf32> to vector<16x33xf32>
    %158 = arith.mulf %156, %157 : vector<16x33xf32>
    %159 = vector.broadcast %138 : vector<1x33xf32> to vector<16x33xf32>
    %160 = arith.addf %158, %159 : vector<16x33xf32>
    %c496 = arith.constant 496 : index
    %c0_58 = arith.constant 0 : index
    %161 = vector.load %arg1[%c496, %c0_58] : memref<2208x256xbf16, #tpu.memory_space<vmem>>, vector<16x16xbf16>
    %c512 = arith.constant 512 : index
    %c0_59 = arith.constant 0 : index
    %162 = vector.load %arg1[%c512, %c0_59] : memref<2208x256xbf16, #tpu.memory_space<vmem>>, vector<33x67xbf16>
    %c560 = arith.constant 560 : index
    %c0_60 = arith.constant 0 : index
    %163 = vector.load %arg1[%c560, %c0_60] : memref<2208x256xbf16, #tpu.memory_space<vmem>>, vector<33x67xbf16>
    %c56 = arith.constant 56 : index
    %c0_61 = arith.constant 0 : index
    %164 = vector.load %arg2[%c56, %c0_61] : memref<296x256xf32, #tpu.memory_space<vmem>>, vector<8x67xf32>
    %165 = arith.truncf %160 : vector<16x33xf32> to vector<16x33xbf16>
    %cst_62 = arith.constant dense<0.000000e+00> : vector<16x33xf32>
    %166 = tpu.matmul %161, %165, %cst_62 {dimension_numbers = #tpu.dot_dimension_numbers<[1], [0], [0], [1], [0, 0, 1, 1], [], []>} : vector<16x16xbf16>, vector<16x33xbf16>, vector<16x33xf32> -> vector<16x33xf32>
    %167 = vector.extract_strided_slice %166 {offsets = [0, 0], sizes = [8, 33], strides = [1, 1]} : vector<16x33xf32> to vector<8x33xf32>
    %168 = vector.extract_strided_slice %166 {offsets = [8, 0], sizes = [8, 33], strides = [1, 1]} : vector<16x33xf32> to vector<8x33xf32>
    %169 = arith.truncf %167 : vector<8x33xf32> to vector<8x33xbf16>
    %cst_63 = arith.constant dense<0.000000e+00> : vector<8x67xf32>
    %170 = tpu.matmul %169, %162, %cst_63 {dimension_numbers = #tpu.dot_dimension_numbers<[1], [0], [0], [1], [0, 0, 1, 1], [], []>} : vector<8x33xbf16>, vector<33x67xbf16>, vector<8x67xf32> -> vector<8x67xf32>
    %171 = arith.truncf %168 : vector<8x33xf32> to vector<8x33xbf16>
    %cst_64 = arith.constant dense<0.000000e+00> : vector<8x67xf32>
    %172 = tpu.matmul %171, %163, %cst_64 {dimension_numbers = #tpu.dot_dimension_numbers<[1], [0], [0], [1], [0, 0, 1, 1], [], []>} : vector<8x33xbf16>, vector<33x67xbf16>, vector<8x67xf32> -> vector<8x67xf32>
    %173 = arith.addf %170, %172 : vector<8x67xf32>
    %174 = arith.addf %173, %164 : vector<8x67xf32>
    %c1200 = arith.constant 1200 : index
    %c0_65 = arith.constant 0 : index
    %175 = vector.load %arg1[%c1200, %c0_65] : memref<2208x256xbf16, #tpu.memory_space<vmem>>, vector<67x96xbf16>
    %176 = arith.truncf %174 : vector<8x67xf32> to vector<8x67xbf16>
    %cst_66 = arith.constant dense<0.000000e+00> : vector<8x96xf32>
    %177 = tpu.matmul %176, %175, %cst_66 {dimension_numbers = #tpu.dot_dimension_numbers<[1], [0], [0], [1], [0, 0, 1, 1], [], []>} : vector<8x67xbf16>, vector<67x96xbf16>, vector<8x96xf32> -> vector<8x96xf32>
    %c152 = arith.constant 152 : index
    %c0_67 = arith.constant 0 : index
    %178 = vector.load %arg2[%c152, %c0_67] : memref<296x256xf32, #tpu.memory_space<vmem>>, vector<1x96xf32>
    %179 = vector.broadcast %178 : vector<1x96xf32> to vector<8x96xf32>
    %180 = arith.addf %177, %179 : vector<8x96xf32>
    %c216 = arith.constant 216 : index
    %c0_68 = arith.constant 0 : index
    %181 = vector.load %arg2[%c216, %c0_68] : memref<296x256xf32, #tpu.memory_space<vmem>>, vector<8x8xf32>
    %182 = vector.extract_strided_slice %180 {offsets = [0, 0], sizes = [8, 16], strides = [1, 1]} : vector<8x96xf32> to vector<8x16xf32>
    %183 = vector.extract_strided_slice %180 {offsets = [0, 32], sizes = [8, 16], strides = [1, 1]} : vector<8x96xf32> to vector<8x16xf32>
    %184 = vector.extract_strided_slice %180 {offsets = [0, 64], sizes = [8, 16], strides = [1, 1]} : vector<8x96xf32> to vector<8x16xf32>
    %185 = tpu.transpose %183, [1, 0] : vector<8x16xf32> -> vector<16x8xf32>
    %186 = arith.truncf %182 : vector<8x16xf32> to vector<8x16xbf16>
    %187 = arith.truncf %185 : vector<16x8xf32> to vector<16x8xbf16>
    %cst_69 = arith.constant dense<0.000000e+00> : vector<8x8xf32>
    %188 = tpu.matmul %186, %187, %cst_69 {dimension_numbers = #tpu.dot_dimension_numbers<[1], [0], [0], [1], [0, 0, 1, 1], [], []>} : vector<8x16xbf16>, vector<16x8xbf16>, vector<8x8xf32> -> vector<8x8xf32>
    %cst_70 = arith.constant 2.500000e-01 : f32
    %189 = vector.broadcast %cst_70 : f32 to vector<8x8xf32>
    %190 = arith.mulf %188, %189 : vector<8x8xf32>
    %191 = arith.mulf %190, %181 : vector<8x8xf32>
    %192 = arith.truncf %191 : vector<8x8xf32> to vector<8x8xbf16>
    %193 = arith.truncf %184 : vector<8x16xf32> to vector<8x16xbf16>
    %cst_71 = arith.constant dense<0.000000e+00> : vector<8x16xf32>
    %194 = tpu.matmul %192, %193, %cst_71 {dimension_numbers = #tpu.dot_dimension_numbers<[1], [0], [0], [1], [0, 0, 1, 1], [], []>} : vector<8x8xbf16>, vector<8x16xbf16>, vector<8x16xf32> -> vector<8x16xf32>
    %195 = vector.extract_strided_slice %180 {offsets = [0, 16], sizes = [8, 16], strides = [1, 1]} : vector<8x96xf32> to vector<8x16xf32>
    %196 = vector.extract_strided_slice %180 {offsets = [0, 48], sizes = [8, 16], strides = [1, 1]} : vector<8x96xf32> to vector<8x16xf32>
    %197 = vector.extract_strided_slice %180 {offsets = [0, 80], sizes = [8, 16], strides = [1, 1]} : vector<8x96xf32> to vector<8x16xf32>
    %198 = tpu.transpose %196, [1, 0] : vector<8x16xf32> -> vector<16x8xf32>
    %199 = arith.truncf %195 : vector<8x16xf32> to vector<8x16xbf16>
    %200 = arith.truncf %198 : vector<16x8xf32> to vector<16x8xbf16>
    %cst_72 = arith.constant dense<0.000000e+00> : vector<8x8xf32>
    %201 = tpu.matmul %199, %200, %cst_72 {dimension_numbers = #tpu.dot_dimension_numbers<[1], [0], [0], [1], [0, 0, 1, 1], [], []>} : vector<8x16xbf16>, vector<16x8xbf16>, vector<8x8xf32> -> vector<8x8xf32>
    %cst_73 = arith.constant 2.500000e-01 : f32
    %202 = vector.broadcast %cst_73 : f32 to vector<8x8xf32>
    %203 = arith.mulf %201, %202 : vector<8x8xf32>
    %204 = arith.mulf %203, %181 : vector<8x8xf32>
    %205 = arith.truncf %204 : vector<8x8xf32> to vector<8x8xbf16>
    %206 = arith.truncf %197 : vector<8x16xf32> to vector<8x16xbf16>
    %cst_74 = arith.constant dense<0.000000e+00> : vector<8x16xf32>
    %207 = tpu.matmul %205, %206, %cst_74 {dimension_numbers = #tpu.dot_dimension_numbers<[1], [0], [0], [1], [0, 0, 1, 1], [], []>} : vector<8x8xbf16>, vector<8x16xbf16>, vector<8x16xf32> -> vector<8x16xf32>
    %208 = tpu.concatenate %194, %207 in 1 : vector<8x16xf32>, vector<8x16xf32> -> vector<8x32xf32>
    %c1280 = arith.constant 1280 : index
    %c0_75 = arith.constant 0 : index
    %209 = vector.load %arg1[%c1280, %c0_75] : memref<2208x256xbf16, #tpu.memory_space<vmem>>, vector<32x67xbf16>
    %210 = arith.truncf %208 : vector<8x32xf32> to vector<8x32xbf16>
    %cst_76 = arith.constant dense<0.000000e+00> : vector<8x67xf32>
    %211 = tpu.matmul %210, %209, %cst_76 {dimension_numbers = #tpu.dot_dimension_numbers<[1], [0], [0], [1], [0, 0, 1, 1], [], []>} : vector<8x32xbf16>, vector<32x67xbf16>, vector<8x67xf32> -> vector<8x67xf32>
    %c160 = arith.constant 160 : index
    %c0_77 = arith.constant 0 : index
    %212 = vector.load %arg2[%c160, %c0_77] : memref<296x256xf32, #tpu.memory_space<vmem>>, vector<1x67xf32>
    %213 = vector.broadcast %212 : vector<1x67xf32> to vector<8x67xf32>
    %214 = arith.addf %211, %213 : vector<8x67xf32>
    %215 = arith.addf %174, %214 : vector<8x67xf32>
    %c184 = arith.constant 184 : index
    %c0_78 = arith.constant 0 : index
    %216 = vector.load %arg2[%c184, %c0_78] : memref<296x256xf32, #tpu.memory_space<vmem>>, vector<1x67xf32>
    %c192 = arith.constant 192 : index
    %c0_79 = arith.constant 0 : index
    %217 = vector.load %arg2[%c192, %c0_79] : memref<296x256xf32, #tpu.memory_space<vmem>>, vector<1x67xf32>
    %cst_80 = arith.constant dense<0.000000e+00> : vector<8xf32>
    %218 = vector.multi_reduction <add>, %215, %cst_80 [1] : vector<8x67xf32> to vector<8xf32>
    %219 = vector.shape_cast %218 : vector<8xf32> to vector<8x1xf32>
    %cst_81 = arith.constant 6.700000e+01 : f32
    %220 = vector.broadcast %cst_81 : f32 to vector<8x1xf32>
    %221 = arith.divf %219, %220 : vector<8x1xf32>
    %222 = vector.broadcast %221 : vector<8x1xf32> to vector<8x67xf32>
    %223 = arith.subf %215, %222 : vector<8x67xf32>
    %224 = arith.mulf %223, %223 : vector<8x67xf32>
    %cst_82 = arith.constant dense<0.000000e+00> : vector<8xf32>
    %225 = vector.multi_reduction <add>, %224, %cst_82 [1] : vector<8x67xf32> to vector<8xf32>
    %226 = vector.shape_cast %225 : vector<8xf32> to vector<8x1xf32>
    %cst_83 = arith.constant 6.700000e+01 : f32
    %227 = vector.broadcast %cst_83 : f32 to vector<8x1xf32>
    %228 = arith.divf %226, %227 : vector<8x1xf32>
    %229 = vector.broadcast %221 : vector<8x1xf32> to vector<8x67xf32>
    %230 = arith.subf %215, %229 : vector<8x67xf32>
    %cst_84 = arith.constant 9.99999974E-6 : f32
    %231 = vector.broadcast %cst_84 : f32 to vector<8x1xf32>
    %232 = arith.addf %228, %231 : vector<8x1xf32>
    %233 = math.rsqrt %232 : vector<8x1xf32>
    %234 = vector.broadcast %233 : vector<8x1xf32> to vector<8x67xf32>
    %235 = arith.mulf %230, %234 : vector<8x67xf32>
    %236 = vector.broadcast %216 : vector<1x67xf32> to vector<8x67xf32>
    %237 = arith.mulf %235, %236 : vector<8x67xf32>
    %238 = vector.broadcast %217 : vector<1x67xf32> to vector<8x67xf32>
    %239 = arith.addf %237, %238 : vector<8x67xf32>
    %c1312 = arith.constant 1312 : index
    %c0_85 = arith.constant 0 : index
    %240 = vector.load %arg1[%c1312, %c0_85] : memref<2208x256xbf16, #tpu.memory_space<vmem>>, vector<67x256xbf16>
    %241 = arith.truncf %239 : vector<8x67xf32> to vector<8x67xbf16>
    %cst_86 = arith.constant dense<0.000000e+00> : vector<8x256xf32>
    %242 = tpu.matmul %241, %240, %cst_86 {dimension_numbers = #tpu.dot_dimension_numbers<[1], [0], [0], [1], [0, 0, 1, 1], [], []>} : vector<8x67xbf16>, vector<67x256xbf16>, vector<8x256xf32> -> vector<8x256xf32>
    %c168 = arith.constant 168 : index
    %c0_87 = arith.constant 0 : index
    %243 = vector.load %arg2[%c168, %c0_87] : memref<296x256xf32, #tpu.memory_space<vmem>>, vector<1x256xf32>
    %244 = vector.broadcast %243 : vector<1x256xf32> to vector<8x256xf32>
    %245 = arith.addf %242, %244 : vector<8x256xf32>
    %cst_88 = arith.constant 0.000000e+00 : f32
    %246 = vector.broadcast %cst_88 : f32 to vector<8x256xf32>
    %247 = arith.maximumf %245, %246 : vector<8x256xf32>
    %c1392 = arith.constant 1392 : index
    %c0_89 = arith.constant 0 : index
    %248 = vector.load %arg1[%c1392, %c0_89] : memref<2208x256xbf16, #tpu.memory_space<vmem>>, vector<256x67xbf16>
    %249 = arith.truncf %247 : vector<8x256xf32> to vector<8x256xbf16>
    %cst_90 = arith.constant dense<0.000000e+00> : vector<8x67xf32>
    %250 = tpu.matmul %249, %248, %cst_90 {dimension_numbers = #tpu.dot_dimension_numbers<[1], [0], [0], [1], [0, 0, 1, 1], [], []>} : vector<8x256xbf16>, vector<256x67xbf16>, vector<8x67xf32> -> vector<8x67xf32>
    %c176_91 = arith.constant 176 : index
    %c0_92 = arith.constant 0 : index
    %251 = vector.load %arg2[%c176_91, %c0_92] : memref<296x256xf32, #tpu.memory_space<vmem>>, vector<1x67xf32>
    %252 = vector.broadcast %251 : vector<1x67xf32> to vector<8x67xf32>
    %253 = arith.addf %250, %252 : vector<8x67xf32>
    %254 = arith.addf %239, %253 : vector<8x67xf32>
    %c200 = arith.constant 200 : index
    %c0_93 = arith.constant 0 : index
    %255 = vector.load %arg2[%c200, %c0_93] : memref<296x256xf32, #tpu.memory_space<vmem>>, vector<1x67xf32>
    %c208 = arith.constant 208 : index
    %c0_94 = arith.constant 0 : index
    %256 = vector.load %arg2[%c208, %c0_94] : memref<296x256xf32, #tpu.memory_space<vmem>>, vector<1x67xf32>
    %cst_95 = arith.constant dense<0.000000e+00> : vector<8xf32>
    %257 = vector.multi_reduction <add>, %254, %cst_95 [1] : vector<8x67xf32> to vector<8xf32>
    %258 = vector.shape_cast %257 : vector<8xf32> to vector<8x1xf32>
    %cst_96 = arith.constant 6.700000e+01 : f32
    %259 = vector.broadcast %cst_96 : f32 to vector<8x1xf32>
    %260 = arith.divf %258, %259 : vector<8x1xf32>
    %261 = vector.broadcast %260 : vector<8x1xf32> to vector<8x67xf32>
    %262 = arith.subf %254, %261 : vector<8x67xf32>
    %263 = arith.mulf %262, %262 : vector<8x67xf32>
    %cst_97 = arith.constant dense<0.000000e+00> : vector<8xf32>
    %264 = vector.multi_reduction <add>, %263, %cst_97 [1] : vector<8x67xf32> to vector<8xf32>
    %265 = vector.shape_cast %264 : vector<8xf32> to vector<8x1xf32>
    %cst_98 = arith.constant 6.700000e+01 : f32
    %266 = vector.broadcast %cst_98 : f32 to vector<8x1xf32>
    %267 = arith.divf %265, %266 : vector<8x1xf32>
    %268 = vector.broadcast %260 : vector<8x1xf32> to vector<8x67xf32>
    %269 = arith.subf %254, %268 : vector<8x67xf32>
    %cst_99 = arith.constant 9.99999974E-6 : f32
    %270 = vector.broadcast %cst_99 : f32 to vector<8x1xf32>
    %271 = arith.addf %267, %270 : vector<8x1xf32>
    %272 = math.rsqrt %271 : vector<8x1xf32>
    %273 = vector.broadcast %272 : vector<8x1xf32> to vector<8x67xf32>
    %274 = arith.mulf %269, %273 : vector<8x67xf32>
    %275 = vector.broadcast %255 : vector<1x67xf32> to vector<8x67xf32>
    %276 = arith.mulf %274, %275 : vector<8x67xf32>
    %277 = vector.broadcast %256 : vector<1x67xf32> to vector<8x67xf32>
    %278 = arith.addf %276, %277 : vector<8x67xf32>
    %c608 = arith.constant 608 : index
    %c0_100 = arith.constant 0 : index
    %279 = vector.load %arg1[%c608, %c0_100] : memref<2208x256xbf16, #tpu.memory_space<vmem>>, vector<4x8xbf16>
    %c624 = arith.constant 624 : index
    %c0_101 = arith.constant 0 : index
    %280 = vector.load %arg1[%c624, %c0_101] : memref<2208x256xbf16, #tpu.memory_space<vmem>>, vector<67x134xbf16>
    %c704 = arith.constant 704 : index
    %c0_102 = arith.constant 0 : index
    %281 = vector.load %arg1[%c704, %c0_102] : memref<2208x256xbf16, #tpu.memory_space<vmem>>, vector<67x134xbf16>
    %c64 = arith.constant 64 : index
    %c0_103 = arith.constant 0 : index
    %282 = vector.load %arg2[%c64, %c0_103] : memref<296x256xf32, #tpu.memory_space<vmem>>, vector<2x134xf32>
    %283 = arith.truncf %278 : vector<8x67xf32> to vector<8x67xbf16>
    %cst_104 = arith.constant dense<0.000000e+00> : vector<4x67xf32>
    %284 = tpu.matmul %279, %283, %cst_104 {dimension_numbers = #tpu.dot_dimension_numbers<[1], [0], [0], [1], [0, 0, 1, 1], [], []>} : vector<4x8xbf16>, vector<8x67xbf16>, vector<4x67xf32> -> vector<4x67xf32>
    %285 = vector.extract_strided_slice %284 {offsets = [0, 0], sizes = [2, 67], strides = [1, 1]} : vector<4x67xf32> to vector<2x67xf32>
    %286 = vector.extract_strided_slice %284 {offsets = [2, 0], sizes = [2, 67], strides = [1, 1]} : vector<4x67xf32> to vector<2x67xf32>
    %287 = arith.truncf %285 : vector<2x67xf32> to vector<2x67xbf16>
    %cst_105 = arith.constant dense<0.000000e+00> : vector<2x134xf32>
    %288 = tpu.matmul %287, %280, %cst_105 {dimension_numbers = #tpu.dot_dimension_numbers<[1], [0], [0], [1], [0, 0, 1, 1], [], []>} : vector<2x67xbf16>, vector<67x134xbf16>, vector<2x134xf32> -> vector<2x134xf32>
    %289 = arith.truncf %286 : vector<2x67xf32> to vector<2x67xbf16>
    %cst_106 = arith.constant dense<0.000000e+00> : vector<2x134xf32>
    %290 = tpu.matmul %289, %281, %cst_106 {dimension_numbers = #tpu.dot_dimension_numbers<[1], [0], [0], [1], [0, 0, 1, 1], [], []>} : vector<2x67xbf16>, vector<67x134xbf16>, vector<2x134xf32> -> vector<2x134xf32>
    %291 = arith.addf %288, %290 : vector<2x134xf32>
    %292 = arith.addf %291, %282 : vector<2x134xf32>
    %c1648 = arith.constant 1648 : index
    %c0_107 = arith.constant 0 : index
    %293 = vector.load %arg1[%c1648, %c0_107] : memref<2208x256xbf16, #tpu.memory_space<vmem>>, vector<134x48xbf16>
    %294 = arith.truncf %292 : vector<2x134xf32> to vector<2x134xbf16>
    %cst_108 = arith.constant dense<0.000000e+00> : vector<2x48xf32>
    %295 = tpu.matmul %294, %293, %cst_108 {dimension_numbers = #tpu.dot_dimension_numbers<[1], [0], [0], [1], [0, 0, 1, 1], [], []>} : vector<2x134xbf16>, vector<134x48xbf16>, vector<2x48xf32> -> vector<2x48xf32>
    %c224 = arith.constant 224 : index
    %c0_109 = arith.constant 0 : index
    %296 = vector.load %arg2[%c224, %c0_109] : memref<296x256xf32, #tpu.memory_space<vmem>>, vector<1x48xf32>
    %297 = vector.broadcast %296 : vector<1x48xf32> to vector<2x48xf32>
    %298 = arith.addf %295, %297 : vector<2x48xf32>
    %c288 = arith.constant 288 : index
    %c0_110 = arith.constant 0 : index
    %299 = vector.load %arg2[%c288, %c0_110] : memref<296x256xf32, #tpu.memory_space<vmem>>, vector<2x2xf32>
    %300 = vector.extract_strided_slice %298 {offsets = [0, 0], sizes = [2, 16], strides = [1, 1]} : vector<2x48xf32> to vector<2x16xf32>
    %301 = vector.extract_strided_slice %298 {offsets = [0, 16], sizes = [2, 16], strides = [1, 1]} : vector<2x48xf32> to vector<2x16xf32>
    %302 = vector.extract_strided_slice %298 {offsets = [0, 32], sizes = [2, 16], strides = [1, 1]} : vector<2x48xf32> to vector<2x16xf32>
    %303 = tpu.transpose %301, [1, 0] : vector<2x16xf32> -> vector<16x2xf32>
    %304 = arith.truncf %300 : vector<2x16xf32> to vector<2x16xbf16>
    %305 = arith.truncf %303 : vector<16x2xf32> to vector<16x2xbf16>
    %cst_111 = arith.constant dense<0.000000e+00> : vector<2x2xf32>
    %306 = tpu.matmul %304, %305, %cst_111 {dimension_numbers = #tpu.dot_dimension_numbers<[1], [0], [0], [1], [0, 0, 1, 1], [], []>} : vector<2x16xbf16>, vector<16x2xbf16>, vector<2x2xf32> -> vector<2x2xf32>
    %cst_112 = arith.constant 2.500000e-01 : f32
    %307 = vector.broadcast %cst_112 : f32 to vector<2x2xf32>
    %308 = arith.mulf %306, %307 : vector<2x2xf32>
    %309 = arith.mulf %308, %299 : vector<2x2xf32>
    %310 = arith.truncf %309 : vector<2x2xf32> to vector<2x2xbf16>
    %311 = arith.truncf %302 : vector<2x16xf32> to vector<2x16xbf16>
    %cst_113 = arith.constant dense<0.000000e+00> : vector<2x16xf32>
    %312 = tpu.matmul %310, %311, %cst_113 {dimension_numbers = #tpu.dot_dimension_numbers<[1], [0], [0], [1], [0, 0, 1, 1], [], []>} : vector<2x2xbf16>, vector<2x16xbf16>, vector<2x16xf32> -> vector<2x16xf32>
    %c1792 = arith.constant 1792 : index
    %c0_114 = arith.constant 0 : index
    %313 = vector.load %arg1[%c1792, %c0_114] : memref<2208x256xbf16, #tpu.memory_space<vmem>>, vector<16x134xbf16>
    %314 = arith.truncf %312 : vector<2x16xf32> to vector<2x16xbf16>
    %cst_115 = arith.constant dense<0.000000e+00> : vector<2x134xf32>
    %315 = tpu.matmul %314, %313, %cst_115 {dimension_numbers = #tpu.dot_dimension_numbers<[1], [0], [0], [1], [0, 0, 1, 1], [], []>} : vector<2x16xbf16>, vector<16x134xbf16>, vector<2x134xf32> -> vector<2x134xf32>
    %c232 = arith.constant 232 : index
    %c0_116 = arith.constant 0 : index
    %316 = vector.load %arg2[%c232, %c0_116] : memref<296x256xf32, #tpu.memory_space<vmem>>, vector<1x134xf32>
    %317 = vector.broadcast %316 : vector<1x134xf32> to vector<2x134xf32>
    %318 = arith.addf %315, %317 : vector<2x134xf32>
    %319 = arith.addf %292, %318 : vector<2x134xf32>
    %c256 = arith.constant 256 : index
    %c0_117 = arith.constant 0 : index
    %320 = vector.load %arg2[%c256, %c0_117] : memref<296x256xf32, #tpu.memory_space<vmem>>, vector<1x134xf32>
    %c264 = arith.constant 264 : index
    %c0_118 = arith.constant 0 : index
    %321 = vector.load %arg2[%c264, %c0_118] : memref<296x256xf32, #tpu.memory_space<vmem>>, vector<1x134xf32>
    %cst_119 = arith.constant dense<0.000000e+00> : vector<2xf32>
    %322 = vector.multi_reduction <add>, %319, %cst_119 [1] : vector<2x134xf32> to vector<2xf32>
    %323 = vector.shape_cast %322 : vector<2xf32> to vector<2x1xf32>
    %cst_120 = arith.constant 1.340000e+02 : f32
    %324 = vector.broadcast %cst_120 : f32 to vector<2x1xf32>
    %325 = arith.divf %323, %324 : vector<2x1xf32>
    %326 = vector.broadcast %325 : vector<2x1xf32> to vector<2x134xf32>
    %327 = arith.subf %319, %326 : vector<2x134xf32>
    %328 = arith.mulf %327, %327 : vector<2x134xf32>
    %cst_121 = arith.constant dense<0.000000e+00> : vector<2xf32>
    %329 = vector.multi_reduction <add>, %328, %cst_121 [1] : vector<2x134xf32> to vector<2xf32>
    %330 = vector.shape_cast %329 : vector<2xf32> to vector<2x1xf32>
    %cst_122 = arith.constant 1.340000e+02 : f32
    %331 = vector.broadcast %cst_122 : f32 to vector<2x1xf32>
    %332 = arith.divf %330, %331 : vector<2x1xf32>
    %333 = vector.broadcast %325 : vector<2x1xf32> to vector<2x134xf32>
    %334 = arith.subf %319, %333 : vector<2x134xf32>
    %cst_123 = arith.constant 9.99999974E-6 : f32
    %335 = vector.broadcast %cst_123 : f32 to vector<2x1xf32>
    %336 = arith.addf %332, %335 : vector<2x1xf32>
    %337 = math.rsqrt %336 : vector<2x1xf32>
    %338 = vector.broadcast %337 : vector<2x1xf32> to vector<2x134xf32>
    %339 = arith.mulf %334, %338 : vector<2x134xf32>
    %340 = vector.broadcast %320 : vector<1x134xf32> to vector<2x134xf32>
    %341 = arith.mulf %339, %340 : vector<2x134xf32>
    %342 = vector.broadcast %321 : vector<1x134xf32> to vector<2x134xf32>
    %343 = arith.addf %341, %342 : vector<2x134xf32>
    %c1808 = arith.constant 1808 : index
    %c0_124 = arith.constant 0 : index
    %344 = vector.load %arg1[%c1808, %c0_124] : memref<2208x256xbf16, #tpu.memory_space<vmem>>, vector<134x256xbf16>
    %345 = arith.truncf %343 : vector<2x134xf32> to vector<2x134xbf16>
    %cst_125 = arith.constant dense<0.000000e+00> : vector<2x256xf32>
    %346 = tpu.matmul %345, %344, %cst_125 {dimension_numbers = #tpu.dot_dimension_numbers<[1], [0], [0], [1], [0, 0, 1, 1], [], []>} : vector<2x134xbf16>, vector<134x256xbf16>, vector<2x256xf32> -> vector<2x256xf32>
    %c240 = arith.constant 240 : index
    %c0_126 = arith.constant 0 : index
    %347 = vector.load %arg2[%c240, %c0_126] : memref<296x256xf32, #tpu.memory_space<vmem>>, vector<1x256xf32>
    %348 = vector.broadcast %347 : vector<1x256xf32> to vector<2x256xf32>
    %349 = arith.addf %346, %348 : vector<2x256xf32>
    %cst_127 = arith.constant 0.000000e+00 : f32
    %350 = vector.broadcast %cst_127 : f32 to vector<2x256xf32>
    %351 = arith.maximumf %349, %350 : vector<2x256xf32>
    %c1952 = arith.constant 1952 : index
    %c0_128 = arith.constant 0 : index
    %352 = vector.load %arg1[%c1952, %c0_128] : memref<2208x256xbf16, #tpu.memory_space<vmem>>, vector<256x134xbf16>
    %353 = arith.truncf %351 : vector<2x256xf32> to vector<2x256xbf16>
    %cst_129 = arith.constant dense<0.000000e+00> : vector<2x134xf32>
    %354 = tpu.matmul %353, %352, %cst_129 {dimension_numbers = #tpu.dot_dimension_numbers<[1], [0], [0], [1], [0, 0, 1, 1], [], []>} : vector<2x256xbf16>, vector<256x134xbf16>, vector<2x134xf32> -> vector<2x134xf32>
    %c248 = arith.constant 248 : index
    %c0_130 = arith.constant 0 : index
    %355 = vector.load %arg2[%c248, %c0_130] : memref<296x256xf32, #tpu.memory_space<vmem>>, vector<1x134xf32>
    %356 = vector.broadcast %355 : vector<1x134xf32> to vector<2x134xf32>
    %357 = arith.addf %354, %356 : vector<2x134xf32>
    %358 = arith.addf %343, %357 : vector<2x134xf32>
    %c272 = arith.constant 272 : index
    %c0_131 = arith.constant 0 : index
    %359 = vector.load %arg2[%c272, %c0_131] : memref<296x256xf32, #tpu.memory_space<vmem>>, vector<1x134xf32>
    %c280 = arith.constant 280 : index
    %c0_132 = arith.constant 0 : index
    %360 = vector.load %arg2[%c280, %c0_132] : memref<296x256xf32, #tpu.memory_space<vmem>>, vector<1x134xf32>
    %cst_133 = arith.constant dense<0.000000e+00> : vector<2xf32>
    %361 = vector.multi_reduction <add>, %358, %cst_133 [1] : vector<2x134xf32> to vector<2xf32>
    %362 = vector.shape_cast %361 : vector<2xf32> to vector<2x1xf32>
    %cst_134 = arith.constant 1.340000e+02 : f32
    %363 = vector.broadcast %cst_134 : f32 to vector<2x1xf32>
    %364 = arith.divf %362, %363 : vector<2x1xf32>
    %365 = vector.broadcast %364 : vector<2x1xf32> to vector<2x134xf32>
    %366 = arith.subf %358, %365 : vector<2x134xf32>
    %367 = arith.mulf %366, %366 : vector<2x134xf32>
    %cst_135 = arith.constant dense<0.000000e+00> : vector<2xf32>
    %368 = vector.multi_reduction <add>, %367, %cst_135 [1] : vector<2x134xf32> to vector<2xf32>
    %369 = vector.shape_cast %368 : vector<2xf32> to vector<2x1xf32>
    %cst_136 = arith.constant 1.340000e+02 : f32
    %370 = vector.broadcast %cst_136 : f32 to vector<2x1xf32>
    %371 = arith.divf %369, %370 : vector<2x1xf32>
    %372 = vector.broadcast %364 : vector<2x1xf32> to vector<2x134xf32>
    %373 = arith.subf %358, %372 : vector<2x134xf32>
    %cst_137 = arith.constant 9.99999974E-6 : f32
    %374 = vector.broadcast %cst_137 : f32 to vector<2x1xf32>
    %375 = arith.addf %371, %374 : vector<2x1xf32>
    %376 = math.rsqrt %375 : vector<2x1xf32>
    %377 = vector.broadcast %376 : vector<2x1xf32> to vector<2x134xf32>
    %378 = arith.mulf %373, %377 : vector<2x134xf32>
    %379 = vector.broadcast %359 : vector<1x134xf32> to vector<2x134xf32>
    %380 = arith.mulf %378, %379 : vector<2x134xf32>
    %381 = vector.broadcast %360 : vector<1x134xf32> to vector<2x134xf32>
    %382 = arith.addf %380, %381 : vector<2x134xf32>
    %c0_138 = arith.constant 0 : index
    %c0_139 = arith.constant 0 : index
    %383 = vector.load %arg3[%c0_138, %c0_139] : memref<2x134xf32, #tpu.memory_space<vmem>>, vector<2x134xf32>
    tpu.vector_store %arg3[%c0_138, %c0_139], %382 {strides = array<i32>} : memref<2x134xf32, #tpu.memory_space<vmem>>, vector<2x134xf32>,
    return
  }
}

</mosaic_0001>

<bundles_post_ra>
// kernel: lrcn_decoder_forward.1
= control target key start
LH: loop header
LB: loop body
LE: loop exit
PB: predicated region body
PF: predicated region fallthrough
CT: control target
= control target key end

     0   :  { %8 = vsyncpa [#allocation3], 0  ;;  %s4518_s0 = inlined_call_operand.hbm [shape: f32[2,136], index: 0, kind: input, shape index: {}]   ;;  %s4519_s1 = inlined_call_operand.hbm [shape: bf16[2208,256], index: 1, kind: input, shape index: {}]   ;;  %s4520_s2 = inlined_call_operand.hbm [shape: f32[296,256], index: 2, kind: input, shape index: {}]   ;;  %s4521_s3 = inlined_call_operand.hbm [shape: f32[2,134], index: 3, kind: output, shape index: {}]  }
   0x1   :  { %9 = vsyncpa [#allocation6], 0  ;;  %s26_s14 = sshll.u32 %s4519_s1, 4  ;;  %s27_s14 = int_to_ptr.hbm [resolvable:$true] %s26_s14 }
   0x2   :  { %10 = vsyncpa [#allocation4], 0  ;;  %s4250_s15 = smov [#allocation5]   ;;  %s16_s19 = sshll.u32 %s4518_s0, 4  ;;  %s17_s19 = int_to_ptr.hbm [resolvable:$true] %s16_s19 }
   0x3   :  { %s28_s16 = sshll.u32 %s4250_s15, 4  ;;  %s4251_s20 = smov 128   ;;  %s29_s16 = int_to_ptr.vmem [resolvable:$true] %s28_s16 }
   0x4   :  { %s4252_s21 = smov 8   ;;  %s4253_s22 = smov [#allocation2]  }
   0x5   :  { %34 = dma.hbm_to_vmem [thread:$0]  %s27_s14, 35328, %s29_s16, [#allocation6], %s4251_s20, %s4251_s20, %s4252_s21  }
   0x6   :  { %s18_s23 = sshll.u32 %s4253_s22, 4  ;;  %s39_s26 = sshll.u32 %s4520_s2, 4  ;;  %s19_s23 = int_to_ptr.vmem [resolvable:$true] %s18_s23  ;;  %s40_s26 = int_to_ptr.hbm [resolvable:$true] %s39_s26 }
   0x7   :  { %21 = dma.hbm_to_vmem [thread:$0]  %s17_s19, 64, %s19_s23, [#allocation3]  }
   0x8   :  { %s4254_s1 = smov [#allocation7]   ;;  %s4255_s28 = smov 256  }
   0x9   :  { %s41_s27 = sshll.u32 %s4254_s1, 4  ;;  %s4256_s29 = smov 16   ;;  %s42_s27 = int_to_ptr.vmem [resolvable:$true] %s41_s27 }
   0xa   :  { %47 = dma.hbm_to_vmem [thread:$0]  %s40_s26, 9472, %s42_s27, [#allocation6], %s4255_s28, %s4255_s28, %s4256_s29  }
   0xb   :  { %4244 = dma.done.wait [#allocation3], 64  }
   0xc   :  { %4245 = vsyncadd [#allocation3], 4294967232 }
   0xd   :  { %4246 = dma.done.wait [#allocation6], 44800  }
   0xe   :  { %4247 = vsyncadd [#allocation6], 4294922496  ;;  %v3180_v0 = vld [vmem:[#allocation5 + $0x70] sm:$0xf]  ;;  %v3883_v1 = vld [vmem:[#allocation5 + $0x74] sm:$0xf0] }
   0xf   :  { %v78_v2 = vld [vmem:[#allocation5 + $0x80] sm:$0xff]  ;;  %v3181_v3 = vor.u32 %v3883_v1, %v3180_v0  ;;  %v3881_v6 = vld [vmem:[#allocation5 + $0x64] sm:$0xf0]  ;;  %v3882_v7 = vld [vmem:[#allocation5 + $0x74] sm:$0xf]  ;;  %vm182_vm0 = vcmask 1043456  }
  0x10   :  { %v142_v4 = vunpack.c.l.b16 %v78_v2  ;;  %v3172_v5 = vld [vmem:[#allocation5 + $0x60] sm:$0xf]  ;;  %v143_v8 = vunpack.c.h.b16 %v78_v2  ;;  %v3182_v9 = vld [vmem:[#allocation5 + $0x78] sm:$0xf0]  ;;  %v3164_v13 = vld [vmem:[#allocation5 + $0x50] sm:$0xf] }
  0x11   :  { %189 = vmatpush.bf16.msra.mxu0 %v3181_v3  ;;  %v3173_v11 = vor.u32 %v3881_v6, %v3172_v5  ;;  %v3185_v12 = vor.u32 %v3882_v7, %v3182_v9  ;;  %v3879_v14 = vld [vmem:[#allocation5 + $0x54] sm:$0xf0]  ;;  %v61_v15 = vld [vmem:[#allocation2] sm:$0xf]  ;;  %v3880_v17 = vld [vmem:[#allocation5 + $0x64] sm:$0xf] }
  0x12   :  { %v160_v10 = vpack.c.b16 %v142_v4, %v142_v4  ;;  %v161_v16 = vpack.c.b16 %v143_v8, %v143_v8  ;;  %v3174_v18 = vld [vmem:[#allocation5 + $0x68] sm:$0xf0]  ;;  %80 = vst [vmem:[#allocation1] ss:$4 sm:$0xff] %v61_v15  ;;  %v3165_v21 = vor.u32 %v3879_v14, %v3164_v13  ;;  %v3156_v23 = vld [vmem:[#allocation5 + $0x40] sm:$0xf] }
  0x13   :  { %v3177_v22 = vor.u32 %v3880_v17, %v3174_v18  ;;  %v3877_v24 = vld [vmem:[#allocation5 + $0x44] sm:$0xf0]  ;;  %v3878_v25 = vld [vmem:[#allocation5 + $0x54] sm:$0xf]  ;;  %v3166_v26 = vld [vmem:[#allocation5 + $0x58] sm:$0xf0] }
  0x14   :  { %v184_v19 = vsel %vm182_vm0, %v160_v10, 0  ;;  %v187_v20 = vsel %vm182_vm0, %v161_v16, 0  ;;  %vm178_vm1 = vcmask 64512   ;;  %v3157_v28 = vor.u32 %v3877_v24, %v3156_v23  ;;  %v3148_v30 = vld [vmem:[#allocation5 + $0x30] sm:$0xf]  ;;  %s4258_s0 = smov 32  }
  0x15   :  { %209 = vmatpush.bf16.msra.mxu2 %v184_v19  ;;  %235 = vmatpush.bf16.msra.mxu3 %v187_v20  ;;  %v3169_v29 = vor.u32 %v3878_v25, %v3166_v26  ;;  %v3875_v32 = vld [vmem:[#allocation5 + $0x34] sm:$0xf0]  ;;  %v3876_v33 = vld [vmem:[#allocation5 + $0x44] sm:$0xf]  ;;  %v3158_v34 = vld [vmem:[#allocation5 + $0x48] sm:$0xf0] }
  0x16   :  { %190 = vmatpush.bf16.msra.mxu0 %v3173_v11  ;;  %v3149_v35 = vor.u32 %v3875_v32, %v3148_v30  ;;  %v3161_v36 = vor.u32 %v3876_v33, %v3158_v34  ;;  %v3140_v37 = vld [vmem:[#allocation5 + $0x20] sm:$0xf]  ;;  %v3873_v38 = vld [vmem:[#allocation5 + $0x24] sm:$0xf0]  ;;  %v3874_v39 = vld [vmem:[#allocation5 + $0x34] sm:$0xf] }
  0x17   :  { %v3150_v40 = vld [vmem:[#allocation5 + $0x38] sm:$0xf0]  ;;  %v3141_v41 = vor.u32 %v3873_v38, %v3140_v37  ;;  %v3132_v43 = vld [vmem:[#allocation5 + $0x10] sm:$0xf]  ;;  %v3871_v44 = vld [vmem:[#allocation5 + $0x14] sm:$0xf0] }
  0x18   :  { %v3153_v42 = vor.u32 %v3874_v39, %v3150_v40  ;;  %v3872_v45 = vld [vmem:[#allocation5 + $0x24] sm:$0xf]  ;;  %v3142_v46 = vld [vmem:[#allocation5 + $0x28] sm:$0xf0]  ;;  %v3133_v47 = vor.u32 %v3871_v44, %v3132_v43  ;;  %v3124_v49 = vld [vmem:[#allocation5] sm:$0xf] }
  0x19   :  { %215 = vmatpush.bf16.msrb.mxu2 %v3185_v12  ;;  %v82_v27 = vld.sshfl [vmem:[#allocation1 + $0x8] sm:$0xff pattern:$0x73625140]  ;;  %v3145_v48 = vor.u32 %v3872_v45, %v3142_v46  ;;  %v3869_v50 = vld [vmem:[#allocation5 + $0x4] sm:$0xf0]  ;;  %vm266_vm2 = vcmask 1040384  }
  0x1a   :  { %191 = vmatpush.bf16.msra.mxu0 %v3165_v21  ;;  %v86_v31 = vpack.c.bf16 %v82_v27, %v82_v27  ;;  %v3870_v51 = vld [vmem:[#allocation5 + $0x14] sm:$0xf]  ;;  %v3134_v52 = vld [vmem:[#allocation5 + $0x18] sm:$0xf0]  ;;  %v3125_v53 = vor.u32 %v3869_v50, %v3124_v49  ;;  %v3868_v56 = vld [vmem:[#allocation5 + $0x4] sm:$0xf] }
  0x1b   :  { %v3137_v54 = vor.u32 %v3870_v51, %v3134_v52  ;;  %v81_v55 = vld.sshfl [vmem:[#allocation1] sm:$0xff pattern:$0x73625140]  ;;  %v3126_v57 = vld [vmem:[#allocation5 + $0x8] sm:$0xf0]  ;;  %vm259_vm3 = vcmask 15360  }
  0x1c   :  { %3186 = vmatmul.msk.bf16.vlgmr.msra.gmra.mxu2 %vm178_vm1, %v86_v31  ;;  %3187 = vmatmul.msk.bf16.vlgmr.msra.gmra.mxu3 %vm178_vm1, %v86_v31  ;;  %v85_v58 = vpack.c.bf16 %v81_v55, %v81_v55  ;;  %v3129_v59 = vor.u32 %v3868_v56, %v3126_v57  ;;  %v87_v63 = vld [vmem:[#allocation7] ss:$8 sm:$0x3]  ;;  %v3190_v6 = vld [vmem:[#allocation5 + $0x90] sm:$0xf]  ;;  %vm519_vm4 = vcmask 261120  }
  0x1d   :  { %216 = vmatpush.bf16.msrb.mxu2 %v3177_v22  ;;  %v89_v1 = vperm.slane %v87_v63, 0  ;;  %v3884_v7 = vld [vmem:[#allocation5 + $0x94] sm:$0xf0]  ;;  %v90_v8 = vperm.slane %v87_v63, 1  ;;  %v3230_v10 = vld [vmem:[#allocation5 + $0x120] sm:$0xf] }
  0x1e   :  { %192 = vmatpush.bf16.msra.mxu0 %v3157_v28  ;;  %v3893_v11 = vld [vmem:[#allocation5 + $0x124] sm:$0xf0]  ;;  %v3226_v14 = vld [vmem:[#allocation5 + $0x110] sm:$0xf]  ;;  %v3892_v15 = vld [vmem:[#allocation5 + $0x114] sm:$0xf0]  ;;  %v3191_v17 = vor.u32 %v3884_v7, %v3190_v6 }
  0x1f   :  { %v3231_v13 = vor.u32 %v3893_v11, %v3230_v10  ;;  %v3227_v20 = vor.u32 %v3892_v15, %v3226_v14  ;;  %v3222_v21 = vld [vmem:[#allocation5 + $0x100] sm:$0xf]  ;;  %v3891_v22 = vld [vmem:[#allocation5 + $0x104] sm:$0xf0]  ;;  %v3218_v28 = vld [vmem:[#allocation5 + $0xf0] sm:$0xf] }
  0x20   :  { %v3262_v24 = vld [vmem:[#allocation5 + $0x1a0] sm:$0xf]  ;;  %v3901_v25 = vld [vmem:[#allocation5 + $0x1a4] sm:$0xf0]  ;;  %v3223_v27 = vor.u32 %v3891_v22, %v3222_v21  ;;  %v3258_v33 = vld [vmem:[#allocation5 + $0x190] sm:$0xf] }
  0x21   :  { %217 = vmatpush.bf16.msrb.mxu2 %v3169_v29  ;;  %v3890_v29 = vld [vmem:[#allocation5 + $0xf4] sm:$0xf0]  ;;  %v3263_v31 = vor.u32 %v3901_v25, %v3262_v24  ;;  %v3214_v37 = vld [vmem:[#allocation5 + $0xe0] sm:$0xf]  ;;  %v3889_v38 = vld [vmem:[#allocation5 + $0xe4] sm:$0xf0] }
  0x22   :  { %193 = vmatpush.bf16.msra.mxu0 %v3149_v35  ;;  %v3900_v34 = vld [vmem:[#allocation5 + $0x194] sm:$0xf0]  ;;  %v3194_v40 = vld [vmem:[#allocation5 + $0xa0] sm:$0xf]  ;;  %v3899_v45 = vld [vmem:[#allocation5 + $0x184] sm:$0xf0] }
  0x23   :  { %v3259_v39 = vor.u32 %v3900_v34, %v3258_v33  ;;  %v3254_v44 = vld [vmem:[#allocation5 + $0x180] sm:$0xf]  ;;  %v3210_v46 = vld [vmem:[#allocation5 + $0xd0] sm:$0xf]  ;;  %v3898_v50 = vld [vmem:[#allocation5 + $0x174] sm:$0xf0] }
  0x24   :  { %v3250_v49 = vld [vmem:[#allocation5 + $0x170] sm:$0xf]  ;;  %v3206_v52 = vld [vmem:[#allocation5 + $0xc0] sm:$0xf]  ;;  %v3897_v57 = vld [vmem:[#allocation5 + $0x164] sm:$0xf0] }
  0x25   :  { %218 = vmatpush.bf16.msrb.mxu2 %v3161_v36  ;;  %v3219_v36 = vor.u32 %v3890_v29, %v3218_v28  ;;  %v3246_v56 = vld [vmem:[#allocation5 + $0x160] sm:$0xf]  ;;  %v3896_v63 = vld [vmem:[#allocation5 + $0x154] sm:$0xf0]  ;;  %vm553_vm5 = vcmask 130048   ;;  %vm634_vm6 = vcmask 269312  }
  0x26   :  { %194 = vmatpush.bf16.msra.mxu0 %v3141_v41  ;;  %v3885_v41 = vld [vmem:[#allocation5 + $0xa4] sm:$0xf0]  ;;  %v316_v29 = vld [vmem:[#allocation7 + $0x38] sm:$0xff]  ;;  %s4259_s2 = smov 64   ;;  %s4260_s30 = smov 112   ;;  %vm1037_vm7 = vcmask 392192  }
  0x27   :  { %v3195_v43 = vor.u32 %v3885_v41, %v3194_v40  ;;  %s4261_s4 = smov 48   ;;  %s4262_s5 = smov 80   ;;  %vm1074_vm8 = vcmask 523264  }
  0x28   :  { %s4263_s6 = smov 96   ;;  %s4268_s7 = smov [#allocation8]  }
  0x29   :  { %219 = vmatpush.bf16.msrb.mxu2 %v3153_v42  ;;  %v3215_v42 = vor.u32 %v3889_v38, %v3214_v37  ;;  %s3109_s8 = sshll.u32 %s4268_s7, 4  ;;  %s3111_s11 = sshll.u32 %s4521_s3, 4  ;;  %s3110_s8 = int_to_ptr.vmem [resolvable:$true] %s3109_s8  ;;  %s3112_s11 = int_to_ptr.hbm [resolvable:$true] %s3111_s11 }
  0x2a   :  { %195 = vmatpush.bf16.msra.mxu0 %v3133_v47  ;;  %v3255_v47 = vor.u32 %v3899_v45, %v3254_v44 }
  0x2d   :  { %220 = vmatpush.bf16.msrb.mxu2 %v3145_v48  ;;  %v3888_v48 = vld [vmem:[#allocation5 + $0xd4] sm:$0xf0] }
  0x2e   :  { %196 = vmatpush.bf16.msra.mxu0 %v3125_v53  ;;  %v3211_v51 = vor.u32 %v3888_v48, %v3210_v46  ;;  %v3887_v53 = vld [vmem:[#allocation5 + $0xc4] sm:$0xf0]  ;;  %v3266_v48 = vld [vmem:[#allocation5 + $0x1b0] sm:$0xf] }
  0x2f   :  { %v3207_v55 = vor.u32 %v3887_v53, %v3206_v52  ;;  %v3270_v52 = vld [vmem:[#allocation5 + $0x1c0] sm:$0xf]  ;;  %v3903_v53 = vld [vmem:[#allocation5 + $0x1c4] sm:$0xf0] }
  0x31   :  { %221 = vmatpush.bf16.msrb.mxu2 %v3137_v54  ;;  %197 = vmatmul.bf16.vlgmr.msra.gmra.mxu0 %v85_v58  ;;  %v3251_v54 = vor.u32 %v3898_v50, %v3250_v49  ;;  %v3902_v49 = vld [vmem:[#allocation5 + $0x1b4] sm:$0xf0] }
  0x35   :  { %222 = vmatpush.bf16.msrb.mxu2 %v3129_v59  ;;  %v3202_v59 = vld [vmem:[#allocation5 + $0xb0] sm:$0xf] }
  0x38   :  { %223 = vmatmul.bf16.vlgmr.msrb.gmra.mxu2 %v85_v58  ;;  %v3247_v58 = vor.u32 %v3897_v57, %v3246_v56  ;;  %v3905_v56 = vld [vmem:[#allocation5 + $0x1e4] sm:$0xf0] }
  0x9f   :  { %v211_v60 = vpop.f32.mrf.mxu2  ;;  %v237_v61 = vpop.f32.mrf.mxu3 }
  0xa7   :  { %v213_v62 = vpop.f32.mrf.mxu2  ;;  %v239_v0 = vpop.f32.mrf.mxu3 }
  0xa8   :  { %v3242_v62 = vld [vmem:[#allocation5 + $0x150] sm:$0xf] }
  0xa9   :  { %v3243_v0 = vor.u32 %v3896_v63, %v3242_v62 }
  0xae   :  { %v198_v2 = vpop.f32.mrf.mxu0 }
  0xaf   :  { %v199_v3 = vadd.f32 %v198_v2, %v89_v1  ;;  %v3238_v1 = vld [vmem:[#allocation5 + $0x140] sm:$0xf]  ;;  %v3895_v2 = vld [vmem:[#allocation5 + $0x144] sm:$0xf0] }
  0xb1   :  { %v212_v4 = vadd.f32 %v211_v60, %v199_v3  ;;  %v3886_v60 = vld [vmem:[#allocation5 + $0xb4] sm:$0xf0]  ;;  %v3239_v3 = vor.u32 %v3895_v2, %v3238_v1 }
  0xb3   :  { %v241_v5 = vmax.f32 %v212_v4, 0.0  ;;  %v3234_v4 = vld [vmem:[#allocation5 + $0x130] sm:$0xf] }
  0xb5   :  { %v247_v9 = vpack.c.bf16 %v241_v5, %v241_v5  ;;  %v3894_v5 = vld [vmem:[#allocation5 + $0x134] sm:$0xf0] }
  0xb6   :  { %v200_v12 = vpop.f32.mrf.mxu0  ;;  %v3235_v6 = vor.u32 %v3894_v5, %v3234_v4  ;;  %v4257_v5 = vmov 0  }
  0xb7   :  { %v268_v16 = vsel %vm266_vm2, %v247_v9, 0  ;;  %v313_v9 = vld [vmem:[#allocation7 + $0x20] sm:$0xff] }
  0xb8   :  { %280 = vmatpush.bf16.msra.mxu1 %v268_v16  ;;  %v315_v16 = vld [vmem:[#allocation7 + $0x30] sm:$0xff] }
  0xbb   :  { %v224_v18 = vpop.f32.mrf.mxu2  ;;  %3196 = vmatmul.msk.bf16.vlgmr.msra.gmra.mxu1 %vm259_vm3, %v3191_v17 }
  0xbc   :  { %v225_v19 = vadd.f32 %v224_v18, %v90_v8  ;;  %459 = vmatpush.bf16.msrb.mxu1 %v3231_v13  ;;  %v311_v8 = vld [vmem:[#allocation7 + $0x10] sm:$0xff]  ;;  %v314_v18 = vld [vmem:[#allocation7 + $0x28] sm:$0xff] }
  0xbe   :  { %v238_v23 = vadd.f32 %v237_v61, %v225_v19  ;;  %v3203_v61 = vor.u32 %v3886_v60, %v3202_v59  ;;  %v317_v19 = vld [vmem:[#allocation7 + $0x40] sm:$0xff]  ;;  %v3904_v59 = vld [vmem:[#allocation5 + $0x1d4] sm:$0xf0] }
  0xc0   :  { %v242_v26 = vmax.f32 %v238_v23, 0.0  ;;  %460 = vmatpush.bf16.msrb.mxu1 %v3227_v20 }
  0xc2   :  { %v248_v30 = vpack.c.bf16 %v242_v26, %v242_v26 }
  0xc3   :  { %v226_v32 = vpop.f32.mrf.mxu2 }
  0xc4   :  { %v271_v35 = vsel %vm266_vm2, %v248_v30, 0  ;;  %461 = vmatpush.bf16.msrb.mxu1 %v3223_v27  ;;  %v318_v30 = vld [vmem:[#allocation7 + $0x48] sm:$0xff] }
  0xc5   :  { %299 = vmatpush.bf16.msrb.mxu3 %v271_v35 }
  0xc8   :  { %3198 = vmatmul.msk.bf16.vlgmr.msrb.gmra.mxu3 %vm259_vm3, %v3191_v17  ;;  %462 = vmatpush.bf16.msrb.mxu1 %v3219_v36  ;;  %v312_v17 = vld [vmem:[#allocation7 + $0x18] sm:$0xff] }
  0xc9   :  { %478 = vmatpush.bf16.msra.mxu3 %v3263_v31 }
  0xcb   :  { %3197 = vmatmul.msk.bf16.gmra.mxu1 %vm259_vm3, %v3195_v43 }
  0xcc   :  { %463 = vmatpush.bf16.msrb.mxu1 %v3215_v42 }
  0xcd   :  { %479 = vmatpush.bf16.msra.mxu3 %v3259_v39 }
  0xd0   :  { %464 = vmatpush.bf16.msrb.mxu1 %v3211_v51  ;;  %v3267_v51 = vor.u32 %v3902_v49, %v3266_v48 }
  0xd1   :  { %480 = vmatpush.bf16.msra.mxu3 %v3255_v47 }
  0xd4   :  { %465 = vmatpush.bf16.msrb.mxu1 %v3207_v55  ;;  %v3276_v55 = vld [vmem:[#allocation5 + $0x1e0] sm:$0xf] }
  0xd5   :  { %481 = vmatpush.bf16.msra.mxu3 %v3251_v54  ;;  %v3271_v54 = vor.u32 %v3903_v53, %v3270_v52  ;;  %v3277_v57 = vor.u32 %v3905_v56, %v3276_v55 }
  0xd7   :  { %564 = vmatpush.bf16.msra.mxu2 %v3277_v57 }
  0xd8   :  { %3199 = vmatmul.msk.bf16.gmra.mxu3 %vm259_vm3, %v3195_v43  ;;  %466 = vmatpush.bf16.msrb.mxu1 %v3203_v61 }
  0xd9   :  { %482 = vmatpush.bf16.msra.mxu3 %v3247_v58  ;;  %v3281_v58 = vld [vmem:[#allocation5 + $0x1d0] sm:$0xf] }
  0xda   :  { %v3282_v60 = vor.u32 %v3904_v59, %v3281_v58 }
  0xdc   :  { %587 = vmatpush.bf16.msrb.mxu2 %v3282_v60 }
  0xdd   :  { %483 = vmatpush.bf16.msra.mxu3 %v3243_v0 }
  0xe1   :  { %484 = vmatpush.bf16.msra.mxu3 %v3239_v3  ;;  %v600_v3 = vld [vmem:[#allocation5 + $0x330] sm:$0x11] }
  0xe2   :  { %v622_v4 = vunpack.c.l.b16 %v600_v3 }
  0xe5   :  { %485 = vmatpush.bf16.msra.mxu3 %v3235_v6  ;;  %v4314_v6 = vsel %vm266_vm2, 65535, %v4257_v5 }
 0x138   :  { %v282_v7 = vpop.f32.mrf.mxu1 }
 0x139   :  { %v319_v10 = vmul.f32 %v311_v8, %v282_v7  ;;  %v628_v7 = vpack.c.b16 %v622_v4, %v622_v4 }
 0x13b   :  { %v641_v8 = vand.u32 %v4314_v6, %v628_v7 }
 0x140   :  { %v284_v11 = vpop.f32.mrf.mxu1 }
 0x141   :  { %v321_v12 = vmul.f32 %v313_v9, %v284_v11  ;;  %v623_v9 = vunpack.c.h.b16 %v600_v3 }
 0x143   :  { %v359_v13 = vpack.c.bf16 %v321_v12, %v319_v10  ;;  %v629_v10 = vpack.c.b16 %v623_v9, %v623_v9  ;;  %v3294_v12 = vld [vmem:[#allocation5 + $0x320] sm:$0xf] }
 0x145   :  { %467 = vmatmul.bf16.vlgmr.msrb.gmra.mxu1 %v359_v13  ;;  %v644_v11 = vand.u32 %v4314_v6, %v629_v10  ;;  %v3909_v13 = vld [vmem:[#allocation5 + $0x324] sm:$0xf0] }
 0x148   :  { %v287_v15 = vpop.f32.mrf.mxu1 }
 0x149   :  { %v323_v20 = vmul.f32 %v315_v16, %v287_v15  ;;  %v3908_v15 = vld [vmem:[#allocation5 + $0x324] sm:$0xf]  ;;  %v3296_v16 = vld [vmem:[#allocation5 + $0x328] sm:$0xf0] }
 0x14b   :  { %v301_v14 = vpop.f32.mrf.mxu3 }
 0x14c   :  { %v320_v23 = vmul.f32 %v312_v17, %v301_v14  ;;  %v3295_v14 = vor.u32 %v3909_v13, %v3294_v12  ;;  %v3299_v17 = vor.u32 %v3908_v15, %v3296_v16 }
 0x150   :  { %v289_v22 = vpop.f32.mrf.mxu1 }
 0x151   :  { %v325_v25 = vmul.f32 %v317_v19, %v289_v22  ;;  %v3907_v19 = vld [vmem:[#allocation5 + $0x314] sm:$0xf0]  ;;  %v3288_v22 = vld [vmem:[#allocation5 + $0x318] sm:$0xf0] }
 0x153   :  { %v303_v21 = vpop.f32.mrf.mxu3  ;;  %v361_v27 = vpack.c.bf16 %v325_v25, %v323_v20  ;;  %v3906_v20 = vld [vmem:[#allocation5 + $0x314] sm:$0xf] }
 0x154   :  { %v322_v24 = vmul.f32 %v314_v18, %v303_v21  ;;  %v3286_v18 = vld [vmem:[#allocation5 + $0x310] sm:$0xf] }
 0x155   :  { %472 = vmatmul.bf16.gmra.mxu1 %v361_v27  ;;  %v3287_v21 = vor.u32 %v3907_v19, %v3286_v18 }
 0x156   :  { %v360_v26 = vpack.c.bf16 %v322_v24, %v320_v23  ;;  %v3291_v23 = vor.u32 %v3906_v20, %v3288_v22 }
 0x158   :  { %486 = vmatmul.bf16.vlgmr.msra.gmra.mxu3 %v360_v26 }
 0x15b   :  { %v306_v28 = vpop.f32.mrf.mxu3 }
 0x15c   :  { %v324_v32 = vmul.f32 %v316_v29, %v306_v28  ;;  %v505_v28 = vld [vmem:[#allocation7 + $0x50] sm:$0xff]  ;;  %v506_v29 = vld [vmem:[#allocation7 + $0x60] sm:$0xff] }
 0x163   :  { %v308_v31 = vpop.f32.mrf.mxu3 }
 0x164   :  { %v326_v33 = vmul.f32 %v318_v30, %v308_v31 }
 0x166   :  { %v362_v34 = vpack.c.bf16 %v326_v33, %v324_v32 }
 0x168   :  { %491 = vmatmul.bf16.gmra.mxu3 %v362_v34 }
 0x1c2   :  { %v468_v35 = vpop.f32.mrf.mxu1 }
 0x1ca   :  { %v470_v37 = vpop.f32.mrf.mxu1 }
 0x1d2   :  { %v473_v39 = vpop.f32.mrf.mxu1 }
 0x1da   :  { %v475_v41 = vpop.f32.mrf.mxu1 }
 0x1db   :  { %v487_v36 = vpop.f32.mrf.mxu3 }
 0x1dc   :  { %v488_v47 = vadd.f32 %v487_v36, %v468_v35  ;;  %v603_v36 = vld [vmem:[#allocation7 + $0x90] ss:$8 sm:$0x3] }
 0x1e3   :  { %v489_v38 = vpop.f32.mrf.mxu3 }
 0x1e4   :  { %v490_v45 = vadd.f32 %v489_v38, %v470_v37  ;;  %v605_v37 = vperm.slane %v603_v36, 0 }
 0x1e6   :  { %v507_v50 = vpack.c.bf16 %v490_v45, %v488_v47 }
 0x1eb   :  { %v492_v40 = vpop.f32.mrf.mxu3 }
 0x1ec   :  { %v493_v43 = vadd.f32 %v492_v40, %v473_v39 }
 0x1f3   :  { %v494_v42 = vpop.f32.mrf.mxu3 }
 0x1f4   :  { %v495_v44 = vadd.f32 %v494_v42, %v475_v41  ;;  %v606_v42 = vperm.slane %v603_v36, 1 }
 0x1f6   :  { %v508_v46 = vpack.c.bf16 %v495_v44, %v493_v43 }
 0x1f8   :  { %532 = vmatpush.bf16.msrb.mxu0 %v508_v46 }
 0x1fc   :  { %533 = vmatpush.bf16.msrb.mxu0 %v507_v50 }
 0x1ff   :  { %3272 = vmatmul.msk.bf16.vlgmr.msrb.gmra.mxu0 %vm519_vm4, %v3267_v51 }
 0x200   :  { %651 = vmatpush.bf16.msra.mxu0 %v641_v8 }
 0x204   :  { %652 = vmatpush.bf16.msra.mxu0 %v3295_v14 }
 0x208   :  { %653 = vmatpush.bf16.msra.mxu0 %v3287_v21 }
 0x20f   :  { %3273 = vmatmul.msk.bf16.gmra.mxu0 %vm519_vm4, %v3271_v54 }
 0x27c   :  { %v535_v61 = vpop.f32.mrf.mxu0 }
 0x284   :  { %v537_v62 = vpop.f32.mrf.mxu0 }
 0x285   :  { %v545_v2 = vpack.c.bf16 %v537_v62, %v535_v61 }
 0x28c   :  { %v540_v63 = vpop.f32.mrf.mxu0 }
 0x294   :  { %v542_v0 = vpop.f32.mrf.mxu0 }
 0x295   :  { %v546_v1 = vpack.c.bf16 %v542_v0, %v540_v63 }
 0x297   :  { %3278 = vmatmul.msk.bf16.vlgmr.msra.gmra.mxu2 %vm553_vm5, %v546_v1 }
 0x298   :  { %665 = vmatpush.bf16.msra.mxu2 %v644_v11 }
 0x29c   :  { %666 = vmatpush.bf16.msra.mxu2 %v3299_v17 }
 0x2a0   :  { %667 = vmatpush.bf16.msra.mxu2 %v3291_v23 }
 0x2a7   :  { %3283 = vmatmul.msk.bf16.vlgmr.msrb.gmra.mxu2 %vm553_vm5, %v545_v2 }
 0x31a   :  { %v566_v24 = vpop.f32.mrf.mxu2 }
 0x322   :  { %v568_v25 = vpop.f32.mrf.mxu2 }
 0x32a   :  { %v589_v26 = vpop.f32.mrf.mxu2 }
 0x32b   :  { %v590_v27 = vadd.f32 %v589_v26, %v566_v24 }
 0x32d   :  { %v4318_v32 = vadd.f32 %v590_v27, %v505_v28  ;;  %v674_v28 = vld [vmem:[#allocation7 + $0x110] sm:$0xff] }
 0x332   :  { %v591_v30 = vpop.f32.mrf.mxu2 }
 0x333   :  { %v592_v31 = vadd.f32 %v591_v30, %v568_v25 }
 0x335   :  { %v4320_v33 = vadd.f32 %v592_v31, %v506_v29  ;;  %v675_v29 = vld [vmem:[#allocation7 + $0x120] sm:$0xff] }
 0x337   :  { %v601_v34 = vpack.c.bf16 %v4320_v33, %v4318_v32 }
 0x339   :  { %3300 = vmatmul.msk.bf16.vlgmr.msra.gmra.mxu0 %vm634_vm6, %v601_v34  ;;  %3301 = vmatmul.msk.bf16.vlgmr.msra.gmra.mxu2 %vm634_vm6, %v601_v34 }
 0x3b6   :  { %v655_v35 = vpop.f32.mrf.mxu0 }
 0x3b7   :  { %v656_v40 = vadd.f32 %v655_v35, %v605_v37 }
 0x3bc   :  { %v669_v38 = vpop.f32.mrf.mxu2 }
 0x3bd   :  { %v670_v46 = vadd.f32 %v669_v38, %v606_v42 }
 0x3be   :  { %v657_v39 = vpop.f32.mrf.mxu0 }
 0x3bf   :  { %v658_v41 = vadd.f32 %v657_v39, %v605_v37 }
 0x3c1   :  { %v4073_v43 = vpack.i.bf16 %v658_v41, %v656_v40  ;;  %v716_v44 = vpack.c.bf16 %v658_v41, %v656_v40 }
 0x3c3   :  { %4074 = vrot.lane.b32.xlu1 %v4073_v43, %s4258_s0  ;;  %4064 = vrot.lane.b32.xlu0 %v4073_v43, %s4259_s2 }
 0x3c4   :  { %798 = vrot.lane.b32.xlu2 %v716_v44, %s4260_s30  ;;  %v671_v45 = vpop.f32.mrf.mxu2 }
 0x3c5   :  { %v672_v47 = vadd.f32 %v671_v45, %v606_v42 }
 0x3c7   :  { %v740_v48 = vpack.c.bf16 %v672_v47, %v670_v46 }
 0x3c9   :  { %751 = vmatpush.bf16.msrb.mxu3 %v740_v48 }
 0x3cb   :  { %4079 = vrot.lane.b32.xlu1 %v4073_v43, %s4256_s29  ;;  %4069 = vrot.lane.b32.xlu0 %v4073_v43, %s4261_s4 }
 0x3d3   :  { %965 = vrot.lane.b32.xlu1 %v716_v44, %s4262_s5  ;;  %882 = vrot.lane.b32.xlu0 %v716_v44, %s4263_s6 }
 0x3db   :  { %823 = vrot.lane.b32.xlu1 %v740_v48, %s4260_s30 }
 0x3e3   :  { %906 = vrot.lane.b32.xlu1 %v740_v48, %s4263_s6 }
 0x3eb   :  { %989 = vrot.lane.b32.xlu1 %v740_v48, %s4262_s5 }
 0x41e   :  { %v799_v5 = vpop.permute.xlu2 %798 }
 0x435   :  { %v4075_v49 = vpop.permute.xlu1 %4074  ;;  %v4065_v50 = vpop.permute.xlu0 %4064 }
 0x436   :  { %v4076_v53 = vunpack.i.l.bf16 %v4075_v49  ;;  %v4066_v54 = vunpack.i.l.bf16 %v4065_v50  ;;  %v4077_v62 = vunpack.i.h.bf16 %v4075_v49  ;;  %v4067_v63 = vunpack.i.h.bf16 %v4065_v50 }
 0x43d   :  { %v4080_v51 = vpop.permute.xlu1 %4079  ;;  %v4070_v52 = vpop.permute.xlu0 %4069 }
 0x43e   :  { %v4081_v55 = vunpack.i.l.bf16 %v4080_v51  ;;  %v4071_v56 = vunpack.i.l.bf16 %v4070_v52  ;;  %v4082_v59 = vunpack.i.h.bf16 %v4080_v51  ;;  %v4072_v60 = vunpack.i.h.bf16 %v4070_v52 }
 0x440   :  { %v4097_v57 = vpack.i.bf16 %v4081_v55, %v4076_v53  ;;  %v4083_v58 = vpack.i.bf16 %v4071_v56, %v4066_v54  ;;  %v4099_v0 = vpack.i.bf16 %v4082_v59, %v4077_v62  ;;  %v4085_v1 = vpack.i.bf16 %v4072_v60, %v4067_v63 }
 0x442   :  { %4098 = vxpose.xlu0.b32.start [1/2] (short) (narrow) %v4097_v57, 16  ;;  %4084 = vxpose.xlu2.b32.start [1/2] (short) (narrow) %v4083_v58, 16 }
 0x445   :  { %v966_v61 = vpop.permute.xlu1 %965  ;;  %v883_v8 = vpop.permute.xlu0 %882 }
 0x44a   :  { %4100 = vxpose.xlu0.b32.end [2/2] (short) (narrow) %v4099_v0, 16  ;;  %4086 = vxpose.xlu2.b32.end [2/2] (short) (narrow) %v4085_v1, 16 }
 0x44d   :  { %v824_v2 = vpop.permute.xlu1 %823 }
 0x44e   :  { %836 = vmatpush.bf16.msrb.mxu2 %v824_v2 }
 0x455   :  { %v907_v3 = vpop.permute.xlu1 %906 }
 0x456   :  { %919 = vmatpush.bf16.msra.mxu3 %v907_v3  ;;  %v3324_v3 = vld [vmem:[#allocation5 + $0x370] sm:$0xf] }
 0x45d   :  { %v990_v4 = vpop.permute.xlu1 %989 }
 0x45e   :  { %1002 = vmatpush.bf16.msra.mxu2 %v990_v4  ;;  %v3913_v4 = vld [vmem:[#allocation5 + $0x374] sm:$0xf0] }
 0x4db   :  { %v4087_v7 = vpop.trf.xlu2 }
 0x4dc   :  { %v4091_v9 = vunpack.i.h.bf16 %v4087_v7  ;;  %v4088_v10 = vunpack.i.l.bf16 %v4087_v7  ;;  %v3325_v7 = vor.u32 %v3913_v4, %v3324_v3  ;;  %v3916_v3 = vld [vmem:[#allocation5 + $0x394] sm:$0xf] }
 0x4e3   :  { %v4092_v11 = vpop.trf.xlu2 }
 0x4e4   :  { %v4096_v12 = vunpack.i.h.bf16 %v4092_v11  ;;  %v4093_v13 = vunpack.i.l.bf16 %v4092_v11  ;;  %v3911_v11 = vld [vmem:[#allocation5 + $0x354] sm:$0xf0] }
 0x4e6   :  { %v4101_v14 = vpop.trf.xlu0  ;;  %v717_v15 = vpack.c.bf16 %v4093_v13, %v4088_v10  ;;  %v796_v16 = vpack.c.bf16 %v4096_v12, %v4091_v9  ;;  %v3316_v10 = vld [vmem:[#allocation5 + $0x350] sm:$0xf]  ;;  %v3312_v13 = vld [vmem:[#allocation5 + $0x340] sm:$0xf] }
 0x4e7   :  { %v4105_v17 = vunpack.i.h.bf16 %v4101_v14  ;;  %v4102_v18 = vunpack.i.l.bf16 %v4101_v14  ;;  %v3317_v12 = vor.u32 %v3911_v11, %v3316_v10  ;;  %v3910_v14 = vld [vmem:[#allocation5 + $0x344] sm:$0xf0]  ;;  %v3329_v10 = vld [vmem:[#allocation5 + $0x380] sm:$0xf] }
 0x4e8   :  { %728 = vmatpush.bf16.msra.mxu1 %v717_v15  ;;  %810 = vmatpush.bf16.msrb.mxu0 %v796_v16  ;;  %v3313_v15 = vor.u32 %v3910_v14, %v3312_v13  ;;  %v3915_v11 = vld [vmem:[#allocation5 + $0x384] sm:$0xf0] }
 0x4e9   :  { %v3330_v14 = vor.u32 %v3915_v11, %v3329_v10  ;;  %v3359_v11 = vld [vmem:[#allocation5 + $0x3e0] sm:$0xf] }
 0x4eb   :  { %3302 = vmatmul.msk.bf16.vlgmr.msra.gmra.mxu1 %vm553_vm5, %v716_v44  ;;  %3304 = vmatmul.msk.bf16.vlgmr.msrb.gmra.mxu0 %vm553_vm5, %v799_v5  ;;  %v3320_v5 = vld [vmem:[#allocation5 + $0x360] sm:$0xf] }
 0x4ee   :  { %v4106_v19 = vpop.trf.xlu0 }
 0x4ef   :  { %v4110_v20 = vunpack.i.h.bf16 %v4106_v19  ;;  %v4107_v21 = vunpack.i.l.bf16 %v4106_v19 }
 0x4f1   :  { %v881_v22 = vpack.c.bf16 %v4107_v21, %v4102_v18  ;;  %v964_v23 = vpack.c.bf16 %v4110_v20, %v4105_v17 }
 0x4f3   :  { %894 = vmatpush.bf16.msrb.mxu1 %v881_v22  ;;  %977 = vmatpush.bf16.msra.mxu0 %v964_v23 }
 0x4f7   :  { %1082 = vmatpush.bf16.msra.mxu1 %v3325_v7 }
 0x4fb   :  { %3306 = vmatmul.msk.bf16.vlgmr.msrb.gmra.mxu1 %vm553_vm5, %v883_v8  ;;  %3308 = vmatmul.msk.bf16.vlgmr.msra.gmra.mxu0 %vm553_vm5, %v966_v61  ;;  %v3912_v8 = vld [vmem:[#allocation5 + $0x364] sm:$0xf0] }
 0x4fc   :  { %v3321_v9 = vor.u32 %v3912_v8, %v3320_v5  ;;  %v3339_v5 = vld [vmem:[#allocation5 + $0x398] sm:$0xf0] }
 0x4fd   :  { %v3342_v8 = vor.u32 %v3916_v3, %v3339_v5  ;;  %v3929_v3 = vld [vmem:[#allocation5 + $0x464] sm:$0xf0]  ;;  %v3363_v5 = vld [vmem:[#allocation5 + $0x3f0] sm:$0xf] }
 0x4fe   :  { %1083 = vmatpush.bf16.msra.mxu1 %v3321_v9 }
 0x502   :  { %1084 = vmatpush.bf16.msra.mxu1 %v3317_v12  ;;  %v3914_v12 = vld [vmem:[#allocation5 + $0x384] sm:$0xf] }
 0x506   :  { %1085 = vmatpush.bf16.msra.mxu1 %v3313_v15  ;;  %v3331_v15 = vld [vmem:[#allocation5 + $0x388] sm:$0xf0] }
 0x568   :  { %v730_v24 = vpop.f32.mrf.mxu1  ;;  %v812_v25 = vpop.f32.mrf.mxu0 }
 0x569   :  { %v735_v26 = vmul.f32 0.25, %v730_v24  ;;  %v817_v27 = vmul.f32 0.25, %v812_v25 }
 0x56b   :  { %v737_v36 = vmul.f32 %v735_v26, %v674_v28  ;;  %v819_v37 = vmul.f32 %v817_v27, %v674_v28 }
 0x570   :  { %v732_v30 = vpop.f32.mrf.mxu1  ;;  %v814_v31 = vpop.f32.mrf.mxu0 }
 0x571   :  { %v736_v34 = vmul.f32 0.25, %v732_v30  ;;  %v818_v35 = vmul.f32 0.25, %v814_v31 }
 0x573   :  { %v738_v38 = vmul.f32 %v736_v34, %v675_v29  ;;  %v820_v39 = vmul.f32 %v818_v35, %v675_v29  ;;  %v1049_v34 = vld [vmem:[#allocation7 + $0xa0] ss:$0 sm:$0xff] }
 0x575   :  { %v739_v40 = vpack.c.bf16 %v738_v38, %v737_v36  ;;  %v821_v41 = vpack.c.bf16 %v820_v39, %v819_v37 }
 0x577   :  { %3303 = vmatmul.msk.bf16.vlgmr.msrb.gmra.mxu3 %vm553_vm5, %v739_v40  ;;  %3305 = vmatmul.msk.bf16.vlgmr.msrb.gmra.mxu2 %vm553_vm5, %v821_v41 }
 0x578   :  { %v896_v42 = vpop.f32.mrf.mxu1  ;;  %v979_v43 = vpop.f32.mrf.mxu0 }
 0x579   :  { %v901_v44 = vmul.f32 0.25, %v896_v42  ;;  %v984_v45 = vmul.f32 0.25, %v979_v43  ;;  %v4264_v43 = vmov 33.0  }
 0x57a   :  { %4126 = vrcp.f32 %v4264_v43  ;;  %v3930_v43 = vld [vmem:[#allocation5 + $0x474] sm:$0xf0] }
 0x57b   :  { %v903_v50 = vmul.f32 %v901_v44, %v674_v28  ;;  %v986_v51 = vmul.f32 %v984_v45, %v674_v28 }
 0x580   :  { %v898_v46 = vpop.f32.mrf.mxu1  ;;  %v981_v47 = vpop.f32.mrf.mxu0 }
 0x581   :  { %v902_v48 = vmul.f32 0.25, %v898_v46  ;;  %v985_v49 = vmul.f32 0.25, %v981_v47  ;;  %v4127_v44 = vpop.eup %4126 }
 0x582   :  { %v1103_v45 = vmul.f32 33.0, %v4127_v44  ;;  %vm1107_vm9 = vweird.f32 %v4127_v44 }
 0x583   :  { %v904_v52 = vmul.f32 %v902_v48, %v675_v29  ;;  %v987_v53 = vmul.f32 %v985_v49, %v675_v29 }
 0x584   :  { %v1104_v46 = vsub.f32 1.0, %v1103_v45 }
 0x585   :  { %v905_v54 = vpack.c.bf16 %v904_v52, %v903_v50  ;;  %v988_v55 = vpack.c.bf16 %v987_v53, %v986_v51 }
 0x586   :  { %v1105_v47 = vmul.f32 %v4127_v44, %v1104_v46 }
 0x587   :  { %3307 = vmatmul.msk.bf16.vlgmr.msra.gmra.mxu3 %vm553_vm5, %v905_v54  ;;  %3309 = vmatmul.msk.bf16.vlgmr.msra.gmra.mxu2 %vm553_vm5, %v988_v55 }
 0x588   :  { %v1106_v48 = vadd.f32 %v4127_v44, %v1105_v47 }
 0x58a   :  { %v4355_v49 = vsel %vm1107_vm9, %v4127_v44, %v1106_v48 }
 0x5fa   :  { %v753_v56 = vpop.f32.mrf.mxu3  ;;  %v838_v57 = vpop.f32.mrf.mxu2 }
 0x602   :  { %v755_v58 = vpop.f32.mrf.mxu3  ;;  %v840_v59 = vpop.f32.mrf.mxu2 }
 0x603   :  { %v4111_v60 = vpack.i.bf16 %v840_v59, %v838_v57 }
 0x605   :  { %4112 = vrot.lane.b32.xlu1 %v4111_v60, %s4256_s29 }
 0x60a   :  { %v921_v61 = vpop.f32.mrf.mxu3  ;;  %v1004_v62 = vpop.f32.mrf.mxu2 }
 0x612   :  { %v923_v63 = vpop.f32.mrf.mxu3  ;;  %v1006_v0 = vpop.f32.mrf.mxu2 }
 0x613   :  { %v4116_v1 = vpack.i.bf16 %v923_v63, %v921_v61  ;;  %v4121_v2 = vpack.i.bf16 %v1006_v0, %v1004_v62 }
 0x615   :  { %4122 = vrot.lane.b32.xlu1 %v4121_v2, %s4261_s4  ;;  %4117 = vrot.lane.b32.xlu2 %v4116_v1, %s4258_s0  ;;  %v3337_v1 = vld [vmem:[#allocation5 + $0x390] sm:$0xf]  ;;  %v3917_v2 = vld [vmem:[#allocation5 + $0x394] sm:$0xf0] }
 0x616   :  { %v3338_v4 = vor.u32 %v3917_v2, %v3337_v1 }
 0x66f   :  { %v4118_v19 = vpop.permute.xlu2 %4117 }
 0x670   :  { %v4120_v22 = vunpack.i.h.bf16 %v4118_v19  ;;  %v4119_v23 = vunpack.i.l.bf16 %v4118_v19  ;;  %v3403_v19 = vld [vmem:[#allocation5 + $0x490] sm:$0xf] }
 0x677   :  { %v4113_v16 = vpop.permute.xlu1 %4112 }
 0x678   :  { %v4115_v17 = vunpack.i.h.bf16 %v4113_v16  ;;  %v4114_v18 = vunpack.i.l.bf16 %v4113_v16  ;;  %v3334_v16 = vor.u32 %v3914_v12, %v3331_v15  ;;  %v3921_v12 = vld [vmem:[#allocation5 + $0x3e4] sm:$0xf0] }
 0x679   :  { %v3927_v15 = vld [vmem:[#allocation5 + $0x444] sm:$0xf0] }
 0x67a   :  { %v1033_v20 = vsel %vm553_vm5, %v753_v56, %v4114_v18  ;;  %v1034_v21 = vsel %vm553_vm5, %v755_v58, %v4115_v17  ;;  %v1155_v58 = vld [vmem:[#allocation5 + $0x3a0] sm:$0x11]  ;;  %v3933_v18 = vld [vmem:[#allocation5 + $0x4a4] sm:$0xf0] }
 0x67b   :  { %v1035_v27 = vsel %vm519_vm4, %v1033_v20, %v4119_v23  ;;  %v1036_v28 = vsel %vm519_vm4, %v1034_v21, %v4120_v22  ;;  %v1177_v59 = vunpack.c.l.b16 %v1155_v58  ;;  %v1178_v60 = vunpack.c.h.b16 %v1155_v58  ;;  %v3407_v17 = vld [vmem:[#allocation5 + $0x4a0] sm:$0xf]  ;;  %v3932_v22 = vld [vmem:[#allocation5 + $0x494] sm:$0xf0] }
 0x67c   :  { %v3408_v21 = vor.u32 %v3933_v18, %v3407_v17  ;;  %v3375_v23 = vld [vmem:[#allocation5 + $0x420] sm:$0xf]  ;;  %v3355_v17 = vld [vmem:[#allocation5 + $0x3d0] sm:$0xf]  ;;  %v3920_v18 = vld [vmem:[#allocation5 + $0x3d4] sm:$0xf0] }
 0x67d   :  { %v1183_v61 = vpack.c.b16 %v1177_v59, %v1177_v59  ;;  %v1184_v62 = vpack.c.b16 %v1178_v60, %v1178_v60 }
 0x67e   :  { %1375 = vmatpush.bf16.msrb.mxu1 %v3408_v21  ;;  %v3926_v21 = vld [vmem:[#allocation5 + $0x434] sm:$0xf0] }
 0x67f   :  { %v1193_v63 = vand.u32 %v1183_v61, %v4314_v6  ;;  %v1196_v0 = vand.u32 %v1184_v62, %v4314_v6  ;;  %v1095_v62 = vld [vmem:[#allocation7 + $0xe0] ss:$0 sm:$0xff] }
 0x681   :  { %1203 = vmatpush.bf16.msrb.mxu3 %v1193_v63  ;;  %1217 = vmatpush.bf16.msrb.mxu0 %v1196_v0 }
 0x685   :  { %1204 = vmatpush.bf16.msrb.mxu3 %v3338_v4  ;;  %1218 = vmatpush.bf16.msrb.mxu0 %v3342_v8  ;;  %v3387_v8 = vld [vmem:[#allocation5 + $0x450] sm:$0xf] }
 0x687   :  { %v4123_v24 = vpop.permute.xlu1 %4122 }
 0x688   :  { %v4125_v25 = vunpack.i.h.bf16 %v4123_v24  ;;  %v4124_v26 = vunpack.i.l.bf16 %v4123_v24  ;;  %v3925_v24 = vld [vmem:[#allocation5 + $0x424] sm:$0xf0] }
 0x689   :  { %1205 = vmatpush.bf16.msrb.mxu3 %v3330_v14  ;;  %1219 = vmatpush.bf16.msrb.mxu0 %v3334_v16  ;;  %v3383_v14 = vld [vmem:[#allocation5 + $0x440] sm:$0xf] }
 0x68a   :  { %v1038_v29 = vsel %vm1037_vm7, %v1035_v27, %v4124_v26  ;;  %v1039_v30 = vsel %vm1037_vm7, %v1036_v28, %v4125_v25  ;;  %v3376_v26 = vor.u32 %v3925_v24, %v3375_v23  ;;  %v3371_v27 = vld [vmem:[#allocation5 + $0x410] sm:$0xf]  ;;  %v3404_v28 = vor.u32 %v3932_v22, %v3403_v19  ;;  %v3351_v23 = vld [vmem:[#allocation5 + $0x3c0] sm:$0xf]  ;;  %v3919_v24 = vld [vmem:[#allocation5 + $0x3c4] sm:$0xf0] }
 0x68b   :  { %v1048_v31 = vpack.c.bf16 %v1039_v30, %v1038_v29  ;;  %v3924_v29 = vld [vmem:[#allocation5 + $0x414] sm:$0xf0]  ;;  %v3384_v16 = vor.u32 %v3927_v15, %v3383_v14  ;;  %v3356_v19 = vor.u32 %v3920_v18, %v3355_v17 }
 0x68c   :  { %1361 = vmatpush.bf16.msrb.mxu2 %v3376_v26  ;;  %1376 = vmatpush.bf16.msrb.mxu1 %v3404_v28  ;;  %v3347_v26 = vld [vmem:[#allocation5 + $0x3b0] sm:$0xf] }
 0x68d   :  { %3326 = vmatmul.msk.bf16.vlgmr.msra.gmra.mxu1 %vm1074_vm8, %v1048_v31 }
 0x70a   :  { %v1087_v35 = vpop.f32.mrf.mxu1 }
 0x70b   :  { %v1088_v36 = vadd.f32 %v1087_v35, %v1049_v34  ;;  %v3931_v35 = vld [vmem:[#allocation5 + $0x484] sm:$0xf0] }
 0x70d   :  { %v1092_v37 = vadd.f32 %v1088_v36, %v4318_v32  ;;  %v3372_v36 = vor.u32 %v3924_v29, %v3371_v27  ;;  %v3918_v27 = vld [vmem:[#allocation5 + $0x3b4] sm:$0xf0] }
 0x70e   :  { %v3348_v28 = vor.u32 %v3918_v27, %v3347_v26  ;;  %v1158_v29 = vld [vmem:[#allocation7 + $0xb0] ss:$8 sm:$0x3] }
 0x70f   :  { %v1096_v38 = vsel %vm634_vm6, %v1092_v37, 0.0  ;;  %1362 = vmatpush.bf16.msrb.mxu2 %v3372_v36  ;;  %v1391_v27 = vld [vmem:[#allocation7 + $0xf0] ss:$0 sm:$0xff] }
 0x710   :  { %1097 = vadd.xlane.f32.xlu1 %v1096_v38  ;;  %v3367_v38 = vld [vmem:[#allocation5 + $0x400] sm:$0xf] }
 0x712   :  { %v1089_v39 = vpop.f32.mrf.mxu1 }
 0x713   :  { %v1090_v40 = vadd.f32 %v1089_v39, %v1049_v34  ;;  %v3399_v34 = vld [vmem:[#allocation5 + $0x480] sm:$0xf]  ;;  %v3923_v39 = vld [vmem:[#allocation5 + $0x404] sm:$0xf0] }
 0x714   :  { %v3368_v44 = vor.u32 %v3923_v39, %v3367_v38 }
 0x715   :  { %v1093_v41 = vadd.f32 %v1090_v40, %v4320_v33 }
 0x716   :  { %1363 = vmatpush.bf16.msrb.mxu2 %v3368_v44 }
 0x717   :  { %v1099_v42 = vsel %vm634_vm6, %v1093_v41, 0.0 }
 0x718   :  { %1100 = vadd.xlane.f32.xlu0 %v1099_v42  ;;  %v3395_v42 = vld [vmem:[#allocation5 + $0x470] sm:$0xf] }
 0x719   :  { %v3396_v47 = vor.u32 %v3930_v43, %v3395_v42 }
 0x783   :  { %v1098_v32 = vpop.xlane.xlu1 %1097 }
 0x784   :  { %v1109_v50 = vmul.f32 %v4355_v49, %v1098_v32 }
 0x786   :  { %v4358_v51 = vsub.f32 %v1092_v37, %v1109_v50 }
 0x788   :  { %v1113_v33 = vmul.f32 %v4358_v51, %v4358_v51 }
 0x78a   :  { %v1115_v52 = vsel %vm634_vm6, %v1113_v33, 0.0 }
 0x78b   :  { %v1101_v53 = vpop.xlane.xlu0 %1100  ;;  %1116 = vadd.xlane.f32.xlu1 %v1115_v52 }
 0x78c   :  { %v1110_v54 = vmul.f32 %v4355_v49, %v1101_v53 }
 0x78e   :  { %v4364_v55 = vsub.f32 %v1093_v41, %v1110_v54  ;;  %v3400_v41 = vor.u32 %v3931_v35, %v3399_v34 }
 0x790   :  { %v1114_v56 = vmul.f32 %v4364_v55, %v4364_v55  ;;  %1377 = vmatpush.bf16.msrb.mxu1 %v3400_v41 }
 0x792   :  { %v1118_v57 = vsel %vm634_vm6, %v1114_v56, 0.0 }
 0x793   :  { %1119 = vadd.xlane.f32.xlu1 %v1118_v57  ;;  %v1094_v57 = vld [vmem:[#allocation7 + $0xd0] ss:$0 sm:$0xff] }
 0x794   :  { %1378 = vmatpush.bf16.msrb.mxu1 %v3396_v47 }
 0x7fe   :  { %v1117_v7 = vpop.xlane.xlu1 %1116 }
 0x7ff   :  { %v1121_v9 = vmul.f32 %v1117_v7, %v4355_v49  ;;  %v3922_v7 = vld [vmem:[#allocation5 + $0x3f4] sm:$0xf0] }
 0x801   :  { %v1123_v13 = vadd.f32 1e-05, %v1121_v9  ;;  %v3928_v9 = vld [vmem:[#allocation5 + $0x454] sm:$0xf0] }
 0x802   :  { %v3388_v10 = vor.u32 %v3928_v9, %v3387_v8 }
 0x803   :  { %4128 = vrsqrt.f32 %v1123_v13  ;;  %vm1131_vm11 = vweird.f32 %v1123_v13 }
 0x806   :  { %v1120_v20 = vpop.xlane.xlu1 %1119 }
 0x807   :  { %v1122_v25 = vmul.f32 %v1120_v20, %v4355_v49  ;;  %v3379_v20 = vld [vmem:[#allocation5 + $0x430] sm:$0xf] }
 0x808   :  { %v3380_v22 = vor.u32 %v3926_v21, %v3379_v20 }
 0x809   :  { %v4129_v30 = vpop.eup %4128  ;;  %v1124_v31 = vadd.f32 1e-05, %v1122_v25  ;;  %v3352_v25 = vor.u32 %v3919_v24, %v3351_v23  ;;  %v1447_v24 = vld [vmem:[#allocation5 + $0x220] sm:$0x1] }
 0x80a   :  { %v1126_v37 = vmul.f32 %v4129_v30, %v1123_v13  ;;  %vm1132_vm10 = vweird.f32 %v4129_v30  ;;  %v3360_v13 = vor.u32 %v3921_v12, %v3359_v11 }
 0x80b   :  { %4130 = vrsqrt.f32 %v1124_v31  ;;  %vm1133_vm12 = vmor %vm1131_vm11, %vm1132_vm10  ;;  %vm1141_vm14 = vweird.f32 %v1124_v31 }
 0x80c   :  { %v1127_v40 = vmul.f32 %v4129_v30, %v1126_v37  ;;  %v1160_v37 = vperm.slane %v1158_v29, 0 }
 0x80e   :  { %v1128_v45 = vmul.f32 0.5, %v1127_v40 }
 0x810   :  { %v1129_v46 = vsub.f32 1.5, %v1128_v45 }
 0x811   :  { %v4131_v48 = vpop.eup %4130 }
 0x812   :  { %v1130_v32 = vmul.f32 %v4129_v30, %v1129_v46  ;;  %v1136_v50 = vmul.f32 %v4131_v48, %v1124_v31  ;;  %vm1142_vm13 = vweird.f32 %v4131_v48  ;;  %v1161_v31 = vperm.slane %v1158_v29, 1 }
 0x813   :  { %vm1143_vm15 = vmor %vm1141_vm14, %vm1142_vm13  ;;  %vm1590_vm13 = vcmask 1041408   ;;  %vm1586_vm14 = vcmask 547840  }
 0x814   :  { %v1137_v33 = vmul.f32 %v4131_v48, %v1136_v50  ;;  %v1134_v52 = vsel %vm1133_vm12, %v4129_v30, %v1130_v32 }
 0x815   :  { %v1145_v56 = vmul.f32 %v1134_v52, %v4358_v51  ;;  %v3391_v51 = vld [vmem:[#allocation5 + $0x460] sm:$0xf] }
 0x816   :  { %v1138_v53 = vmul.f32 0.5, %v1137_v33  ;;  %v3392_v4 = vor.u32 %v3929_v3, %v3391_v51 }
 0x817   :  { %v1147_v60 = vmul.f32 %v1145_v56, %v1094_v57 }
 0x818   :  { %v1139_v54 = vsub.f32 1.5, %v1138_v53  ;;  %1379 = vmatpush.bf16.msrb.mxu1 %v3392_v4 }
 0x819   :  { %v4375_v0 = vadd.f32 %v1147_v60, %v1095_v62 }
 0x81a   :  { %v1140_v58 = vmul.f32 %v4131_v48, %v1139_v54 }
 0x81c   :  { %v1144_v59 = vsel %vm1143_vm15, %v4131_v48, %v1140_v58  ;;  %1380 = vmatpush.bf16.msrb.mxu1 %v3388_v10  ;;  %v1264_v48 = vld [vmem:[#allocation7 + $0xc0] ss:$0 sm:$0xff] }
 0x81d   :  { %v1146_v61 = vmul.f32 %v1144_v59, %v4364_v55  ;;  %v3364_v55 = vor.u32 %v3922_v7, %v3363_v5 }
 0x81f   :  { %v1148_v63 = vmul.f32 %v1146_v61, %v1094_v57  ;;  %1364 = vmatpush.bf16.msrb.mxu2 %v3364_v55 }
 0x820   :  { %1381 = vmatpush.bf16.msrb.mxu1 %v3384_v16 }
 0x821   :  { %v4377_v1 = vadd.f32 %v1148_v63, %v1095_v62 }
 0x823   :  { %v1156_v2 = vpack.c.bf16 %v4377_v1, %v4375_v0  ;;  %1365 = vmatpush.bf16.msrb.mxu2 %v3360_v13 }
 0x824   :  { %1382 = vmatpush.bf16.msrb.mxu1 %v3380_v22 }
 0x825   :  { %3343 = vmatmul.msk.bf16.vlgmr.msrb.gmra.mxu3 %vm634_vm6, %v1156_v2  ;;  %3344 = vmatmul.msk.bf16.vlgmr.msrb.gmra.mxu0 %vm634_vm6, %v1156_v2 }
 0x827   :  { %1366 = vmatpush.bf16.msrb.mxu2 %v3356_v19 }
 0x82b   :  { %1367 = vmatpush.bf16.msrb.mxu2 %v3352_v25 }
 0x82f   :  { %1368 = vmatpush.bf16.msrb.mxu2 %v3348_v28  ;;  %v1522_v28 = vunpack.c.l.b16 %v1447_v24 }
 0x8a2   :  { %v1221_v30 = vpop.f32.mrf.mxu0 }
 0x8a3   :  { %v1222_v35 = vadd.f32 %v1221_v30, %v1161_v31 }
 0x8a5   :  { %v1227_v39 = vmax.f32 %v1222_v35, 0.0  ;;  %v1525_v35 = vpack.c.b16 %v1522_v28, %v1522_v28 }
 0x8a8   :  { %v1207_v34 = vpop.f32.mrf.mxu3 }
 0x8a9   :  { %v1208_v41 = vadd.f32 %v1207_v34, %v1160_v37  ;;  %v1392_v34 = vld [vmem:[#allocation7 + $0x100] ss:$0 sm:$0xff] }
 0x8aa   :  { %v1223_v36 = vpop.f32.mrf.mxu0 }
 0x8ab   :  { %v1224_v38 = vadd.f32 %v1223_v36, %v1161_v31  ;;  %v1226_v45 = vmax.f32 %v1208_v41, 0.0  ;;  %v1532_v41 = vand.u32 %v1525_v35, %v4314_v6 }
 0x8ad   :  { %v1229_v40 = vmax.f32 %v1224_v38, 0.0 }
 0x8af   :  { %v1263_v42 = vpack.c.bf16 %v1229_v40, %v1227_v39  ;;  %v3411_v39 = vld [vmem:[#allocation5 + $0x1f0] sm:$0xf]  ;;  %v3934_v40 = vld [vmem:[#allocation5 + $0x1f4] sm:$0xf0] }
 0x8b0   :  { %v1209_v43 = vpop.f32.mrf.mxu3 }
 0x8b1   :  { %v1210_v44 = vadd.f32 %v1209_v43, %v1160_v37  ;;  %1383 = vmatmul.bf16.vlgmr.msrb.gmra.mxu1 %v1263_v42  ;;  %v3429_v43 = vld [vmem:[#allocation5 + $0x210] sm:$0xf] }
 0x8b3   :  { %v1228_v46 = vmax.f32 %v1210_v44, 0.0  ;;  %v3936_v44 = vld [vmem:[#allocation5 + $0x214] sm:$0xf0] }
 0x8b5   :  { %v1262_v47 = vpack.c.bf16 %v1228_v46, %v1226_v45  ;;  %v3412_v45 = vor.u32 %v3934_v40, %v3411_v39  ;;  %v3430_v46 = vor.u32 %v3936_v44, %v3429_v43 }
 0x8b7   :  { %1369 = vmatmul.bf16.vlgmr.msrb.gmra.mxu2 %v1262_v47  ;;  %v1452_v47 = vld [vmem:[#allocation5 + $0x250] sm:$0x1] }
 0x92e   :  { %v1384_v32 = vpop.f32.mrf.mxu1 }
 0x936   :  { %v1386_v58 = vpop.f32.mrf.mxu1 }
 0x93a   :  { %v1370_v50 = vpop.f32.mrf.mxu2 }
 0x93b   :  { %v1371_v33 = vadd.f32 %v1370_v50, %v1264_v48  ;;  %v3425_v50 = vld [vmem:[#allocation5 + $0x200] sm:$0xf] }
 0x93d   :  { %v1385_v52 = vadd.f32 %v1384_v32, %v1371_v33  ;;  %v3935_v33 = vld [vmem:[#allocation5 + $0x204] sm:$0xf0] }
 0x93f   :  { %v1389_v53 = vadd.f32 %v1385_v52, %v4375_v0 }
 0x941   :  { %v1393_v54 = vsel %vm634_vm6, %v1389_v53, 0.0 }
 0x942   :  { %v1372_v56 = vpop.f32.mrf.mxu2  ;;  %1394 = vadd.xlane.f32.xlu1 %v1393_v54  ;;  %v3420_v54 = vld [vmem:[#allocation5 + $0x240] sm:$0xf] }
 0x943   :  { %v1373_v57 = vadd.f32 %v1372_v56, %v1264_v48  ;;  %v1488_v48 = vunpack.c.l.b16 %v1452_v47  ;;  %v3938_v56 = vld [vmem:[#allocation5 + $0x244] sm:$0xf0] }
 0x945   :  { %v1387_v59 = vadd.f32 %v1386_v58, %v1373_v57  ;;  %v1491_v32 = vpack.c.b16 %v1488_v48, %v1488_v48  ;;  %v3421_v57 = vor.u32 %v3938_v56, %v3420_v54  ;;  %v3416_v58 = vld [vmem:[#allocation5 + $0x230] sm:$0xf] }
 0x947   :  { %v1390_v60 = vadd.f32 %v1387_v59, %v4377_v1  ;;  %v1498_v52 = vand.u32 %v1491_v32, %v4314_v6  ;;  %v3937_v59 = vld [vmem:[#allocation5 + $0x234] sm:$0xf0] }
 0x949   :  { %v1396_v61 = vsel %vm634_vm6, %v1390_v60, 0.0  ;;  %1505 = vmatpush.bf16.msra.mxu0 %v1498_v52 }
 0x94a   :  { %1397 = vadd.xlane.f32.xlu1 %v1396_v61  ;;  %v4265_v61 = vmov 65535  }
 0x94d   :  { %1506 = vmatpush.bf16.msra.mxu0 %v3421_v57  ;;  %v3459_v57 = vld [vmem:[#allocation5 + $0x510] sm:$0xf] }
 0x9b5   :  { %v1395_v62 = vpop.xlane.xlu1 %1394 }
 0x9b6   :  { %v1399_v63 = vmul.f32 %v1395_v62, %v4355_v49  ;;  %v1591_v62 = vsel %vm266_vm2, 4294967295, %v4265_v61 }
 0x9b8   :  { %v1401_v2 = vsub.f32 %v1389_v53, %v1399_v63  ;;  %v3426_v53 = vor.u32 %v3935_v33, %v3425_v50  ;;  %v1556_v63 = vld [vmem:[#allocation5 + $0x4f0] sm:$0x3] }
 0x9ba   :  { %v1403_v51 = vmul.f32 %v1401_v2, %v1401_v2 }
 0x9bc   :  { %v1405_v3 = vsel %vm634_vm6, %v1403_v51, 0.0  ;;  %v4398_v51 = vsel %vm1590_vm13, %v1591_v62, 0 }
 0x9bd   :  { %1406 = vadd.xlane.f32.xlu1 %v1405_v3  ;;  %v1398_v0 = vpop.xlane.xlu1 %1397  ;;  %v3446_v3 = vld [vmem:[#allocation5 + $0x4e0] sm:$0xf] }
 0x9be   :  { %v1400_v4 = vmul.f32 %v1398_v0, %v4355_v49  ;;  %v3942_v0 = vld [vmem:[#allocation5 + $0x4e4] sm:$0xf0] }
 0x9c0   :  { %v1402_v5 = vsub.f32 %v1390_v60, %v1400_v4  ;;  %v3417_v60 = vor.u32 %v3937_v59, %v3416_v58  ;;  %v3944_v58 = vld [vmem:[#allocation5 + $0x514] sm:$0xf0] }
 0x9c1   :  { %v3460_v59 = vor.u32 %v3944_v58, %v3459_v57  ;;  %v3960_v57 = vld [vmem:[#allocation5 + $0x5e4] sm:$0xf0]  ;;  %v3522_v58 = vld [vmem:[#allocation5 + $0x5d0] sm:$0xf] }
 0x9c2   :  { %v1404_v7 = vmul.f32 %v1402_v5, %v1402_v5  ;;  %1507 = vmatpush.bf16.msra.mxu0 %v3417_v60 }
 0x9c4   :  { %v1408_v55 = vsel %vm634_vm6, %v1404_v7, 0.0  ;;  %v3442_v7 = vld [vmem:[#allocation5 + $0x4d0] sm:$0xf] }
 0x9c5   :  { %1409 = vadd.xlane.f32.xlu1 %v1408_v55  ;;  %v3941_v55 = vld [vmem:[#allocation5 + $0x4d4] sm:$0xf0] }
 0xa30   :  { %v1407_v1 = vpop.xlane.xlu1 %1406 }
 0xa31   :  { %v1411_v8 = vmul.f32 %v1407_v1, %v4355_v49  ;;  %v3443_v1 = vor.u32 %v3941_v55, %v3442_v7  ;;  %v1777_v7 = vld [vmem:[#allocation7 + $0x140] ss:$0 sm:$0xff] }
 0xa33   :  { %v1413_v9 = vadd.f32 1e-05, %v1411_v8 }
 0xa35   :  { %4132 = vrsqrt.f32 %v1413_v9  ;;  %vm1421_vm8 = vweird.f32 %v1413_v9 }
 0xa38   :  { %v1410_v10 = vpop.xlane.xlu1 %1409 }
 0xa39   :  { %v1412_v11 = vmul.f32 %v1410_v10, %v4355_v49 }
 0xa3b   :  { %v4133_v12 = vpop.eup %4132  ;;  %v1414_v13 = vadd.f32 1e-05, %v1412_v11 }
 0xa3c   :  { %v1416_v14 = vmul.f32 %v4133_v12, %v1413_v9  ;;  %vm1422_vm7 = vweird.f32 %v4133_v12 }
 0xa3d   :  { %4134 = vrsqrt.f32 %v1414_v13  ;;  %vm1423_vm9 = vmor %vm1421_vm8, %vm1422_vm7  ;;  %vm1431_vm11 = vweird.f32 %v1414_v13 }
 0xa3e   :  { %v1417_v15 = vmul.f32 %v4133_v12, %v1416_v14 }
 0xa40   :  { %v1418_v16 = vmul.f32 0.5, %v1417_v15  ;;  %v3434_v15 = vld [vmem:[#allocation5 + $0x4b0] sm:$0xf] }
 0xa42   :  { %v1419_v17 = vsub.f32 1.5, %v1418_v16  ;;  %v3939_v16 = vld [vmem:[#allocation5 + $0x4b4] sm:$0xf0] }
 0xa43   :  { %v4135_v18 = vpop.eup %4134 }
 0xa44   :  { %v1420_v19 = vmul.f32 %v4133_v12, %v1419_v17  ;;  %v1426_v20 = vmul.f32 %v4135_v18, %v1414_v13  ;;  %vm1432_vm10 = vweird.f32 %v4135_v18  ;;  %v3940_v13 = vld [vmem:[#allocation5 + $0x4c4] sm:$0xf0]  ;;  %v3435_v17 = vor.u32 %v3939_v16, %v3434_v15 }
 0xa45   :  { %vm1433_vm12 = vmor %vm1431_vm11, %vm1432_vm10 }
 0xa46   :  { %v1427_v21 = vmul.f32 %v4135_v18, %v1426_v20  ;;  %v1424_v22 = vsel %vm1423_vm9, %v4133_v12, %v1420_v19  ;;  %v3438_v12 = vld [vmem:[#allocation5 + $0x4c0] sm:$0xf]  ;;  %v1453_v19 = vld [vmem:[#allocation7 + $0x70] sm:$0xff] }
 0xa47   :  { %v1435_v49 = vmul.f32 %v1424_v22, %v1401_v2  ;;  %v1576_v2 = vunpack.c.l.b16 %v1556_v63  ;;  %v3439_v14 = vor.u32 %v3940_v13, %v3438_v12 }
 0xa48   :  { %v1428_v23 = vmul.f32 0.5, %v1427_v21 }
 0xa49   :  { %v1437_v31 = vmul.f32 %v1435_v49, %v1391_v27  ;;  %v1581_v6 = vpack.c.b16 %v1576_v2, %v1576_v2  ;;  %v1558_v49 = vld [vmem:[#allocation7 + $0x130] ss:$0 sm:$0xff]  ;;  %v3455_v2 = vld [vmem:[#allocation5 + $0x500] sm:$0xf] }
 0xa4a   :  { %v1429_v25 = vsub.f32 1.5, %v1428_v23 }
 0xa4b   :  { %v1439_v37 = vadd.f32 %v1437_v31, %v1392_v34  ;;  %v1594_v4 = vand.u32 %v4398_v51, %v1581_v6  ;;  %v3943_v6 = vld [vmem:[#allocation5 + $0x504] sm:$0xf0] }
 0xa4c   :  { %v1430_v26 = vmul.f32 %v4135_v18, %v1429_v25 }
 0xa4d   :  { %1599 = vmatpush.bf16.msrb.mxu0 %v1594_v4 }
 0xa4e   :  { %v1434_v29 = vsel %vm1433_vm12, %v4135_v18, %v1430_v26 }
 0xa4f   :  { %v1436_v30 = vmul.f32 %v1434_v29, %v1402_v5  ;;  %v3447_v5 = vor.u32 %v3942_v0, %v3446_v3  ;;  %v3456_v3 = vor.u32 %v3943_v6, %v3455_v2 }
 0xa51   :  { %v1438_v36 = vmul.f32 %v1436_v30, %v1391_v27  ;;  %1600 = vmatpush.bf16.msrb.mxu0 %v3447_v5 }
 0xa53   :  { %v1440_v38 = vadd.f32 %v1438_v36, %v1392_v34 }
 0xa55   :  { %v1454_v42 = vpack.c.bf16 %v1440_v38, %v1439_v37  ;;  %1601 = vmatpush.bf16.msrb.mxu0 %v3443_v1 }
 0xa57   :  { %1470 = vmatpush.bf16.msra.mxu3 %v1454_v42 }
 0xa59   :  { %1602 = vmatpush.bf16.msrb.mxu0 %v3439_v14 }
 0xa5a   :  { %3413 = vmatmul.msk.bf16.vlgmr.msra.gmra.mxu3 %vm553_vm5, %v3412_v45  ;;  %v1609_v45 = vld [vmem:[#allocation7 + $0x1b0] sm:$0xff] }
 0xa5b   :  { %1539 = vmatpush.bf16.msrb.mxu3 %v1532_v41 }
 0xa5d   :  { %1603 = vmatpush.bf16.msrb.mxu0 %v3435_v17 }
 0xa5f   :  { %1540 = vmatpush.bf16.msrb.mxu3 %v3430_v46 }
 0xa63   :  { %1541 = vmatpush.bf16.msrb.mxu3 %v3426_v53 }
 0xadd   :  { %v1472_v8 = vpop.f32.mrf.mxu3 }
 0xade   :  { %v1477_v9 = vpack.c.bf16 %v1472_v8, %v1472_v8 }
 0xae0   :  { %3431 = vmatmul.msk.bf16.vlgmr.msrb.gmra.mxu3 %vm634_vm6, %v1477_v9 }
 0xae5   :  { %v1474_v10 = vpop.f32.mrf.mxu3 }
 0xae6   :  { %v1478_v11 = vpack.c.bf16 %v1474_v10, %v1474_v10 }
 0xae8   :  { %3422 = vmatmul.msk.bf16.vlgmr.msra.gmra.mxu0 %vm634_vm6, %v1478_v11  ;;  %v4266_v11 = vmov 67.0  }
 0xae9   :  { %1799 = vmatpush.bf16.msra.mxu0 %v3460_v59  ;;  %4136 = vrcp.f32 %v4266_v11  ;;  %v3514_v11 = vld [vmem:[#allocation5 + $0x5b0] sm:$0xf] }
 0xaed   :  { %1800 = vmatpush.bf16.msra.mxu0 %v3456_v3  ;;  %v3554_v3 = vld [vmem:[#allocation5 + $0x650] sm:$0xf] }
 0xaef   :  { %v4137_v12 = vpop.eup %4136 }
 0xaf0   :  { %v1813_v13 = vmul.f32 67.0, %v4137_v12  ;;  %vm1817_vm6 = vweird.f32 %v4137_v12 }
 0xaf2   :  { %v1814_v14 = vsub.f32 1.0, %v1813_v13 }
 0xaf4   :  { %v1815_v15 = vmul.f32 %v4137_v12, %v1814_v14  ;;  %v3546_v14 = vld [vmem:[#allocation5 + $0x630] sm:$0xf] }
 0xaf6   :  { %v1816_v16 = vadd.f32 %v4137_v12, %v1815_v15  ;;  %v3965_v15 = vld [vmem:[#allocation5 + $0x634] sm:$0xf0] }
 0xaf8   :  { %v4424_v17 = vsel %vm1817_vm6, %v4137_v12, %v1816_v16  ;;  %v3957_v12 = vld [vmem:[#allocation5 + $0x5b4] sm:$0xf0] }
 0xaf9   :  { %v3515_v16 = vor.u32 %v3957_v12, %v3514_v11 }
 0xb63   :  { %v1543_v18 = vpop.f32.mrf.mxu3 }
 0xb65   :  { %v1509_v20 = vpop.f32.mrf.mxu0 }
 0xb66   :  { %v1544_v21 = vadd.f32 %v1543_v18, %v1509_v20 }
 0xb68   :  { %v4403_v22 = vadd.f32 %v1544_v21, %v1453_v19 }
 0xb6a   :  { %v1557_v23 = vpack.c.bf16 %v4403_v22, %v4403_v22 }
 0xb6b   :  { %v1545_v24 = vpop.f32.mrf.mxu3 }
 0xb6c   :  { %3448 = vmatmul.msk.bf16.vlgmr.msrb.gmra.mxu0 %vm1586_vm14, %v1557_v23  ;;  %v1848_v23 = vld [vmem:[#allocation5 + $0x560] sm:$0x33] }
 0xb6d   :  { %v1511_v25 = vpop.f32.mrf.mxu0  ;;  %v1882_v24 = vunpack.c.l.b16 %v1848_v23 }
 0xb6e   :  { %v1883_v25 = vunpack.c.h.b16 %v1848_v23 }
 0xbe9   :  { %v1605_v26 = vpop.f32.mrf.mxu0 }
 0xbea   :  { %v1606_v27 = vadd.f32 %v1605_v26, %v1558_v49  ;;  %v1892_v49 = vpack.c.b16 %v1882_v24, %v1882_v24  ;;  %v1893_v26 = vpack.c.b16 %v1883_v25, %v1883_v25  ;;  %v3542_v24 = vld [vmem:[#allocation5 + $0x620] sm:$0xf]  ;;  %v3964_v25 = vld [vmem:[#allocation5 + $0x624] sm:$0xf0] }
 0xbec   :  { %v1646_v28 = vpack.c.bf16 %v1606_v27, %v1606_v27  ;;  %1611 = vrot.lane.b32.xlu0 %v1606_v27, %s4263_s6  ;;  %1689 = vrot.lane.b32.xlu1 %v1606_v27, %s4262_s5  ;;  %v1906_v27 = vand.u32 %v1892_v49, %v4398_v51 }
 0xbee   :  { %1725 = vrot.lane.b32.xlu2 %v1646_v28, %s4260_s30 }
 0xbf1   :  { %v1607_v29 = vpop.f32.mrf.mxu0 }
 0xbf2   :  { %v3488_v29 = vld [vmem:[#allocation5 + $0x550] sm:$0xf] }
 0xbf4   :  { %1746 = vrot.lane.b32.xlu0 %v1646_v28, %s4261_s4 }
 0xc48   :  { %v1726_v34 = vpop.permute.xlu2 %1725 }
 0xc5e   :  { %v1612_v30 = vpop.permute.xlu0 %1611  ;;  %v1690_v31 = vpop.permute.xlu1 %1689 }
 0xc5f   :  { %1614 = vxpose.xlu1.b32.start.end [1/1] (short) (narrow) %v1612_v30, 16  ;;  %1692 = vxpose.xlu2.b32.start.end [1/1] (short) (narrow) %v1690_v31, 16  ;;  %v3952_v30 = vld [vmem:[#allocation5 + $0x554] sm:$0xf0]  ;;  %v3951_v31 = vld [vmem:[#allocation5 + $0x554] sm:$0xf] }
 0xc66   :  { %v1747_v39 = vpop.permute.xlu0 %1746 }
 0xc67   :  { %v1752_v42 = vsel %vm182_vm0, %v1747_v39, 0  ;;  %v3949_v39 = vld [vmem:[#allocation5 + $0x544] sm:$0xf] }
 0xcd0   :  { %1668 = vrot.lane.b32.xlu2 %v1646_v28, %s4259_s2 }
 0xcf8   :  { %v1708_v35 = vpop.trf.xlu2 }
 0xd00   :  { %v1709_v36 = vpop.trf.xlu2 }
 0xd01   :  { %v1724_v37 = vpack.c.bf16 %v1709_v36, %v1708_v35  ;;  %v3490_v35 = vld [vmem:[#allocation5 + $0x558] sm:$0xf0] }
 0xd02   :  { %v3493_v36 = vor.u32 %v3951_v31, %v3490_v35 }
 0xd03   :  { %v1630_v38 = vpop.trf.xlu1  ;;  %1737 = vmatpush.bf16.msra.mxu3 %v1724_v37  ;;  %v3480_v37 = vld [vmem:[#allocation5 + $0x540] sm:$0xf] }
 0xd06   :  { %3451 = vmatmul.msk.bf16.vlgmr.msra.gmra.mxu3 %vm553_vm5, %v1726_v34  ;;  %v3489_v34 = vor.u32 %v3952_v30, %v3488_v29  ;;  %v3543_v29 = vor.u32 %v3964_v25, %v3542_v24  ;;  %v4442_v25 = vld [vmem:[#allocation5 + $0x2b0] sm:$0x33] }
 0xd0b   :  { %v1631_v40 = vpop.trf.xlu1 }
 0xd0c   :  { %v1647_v41 = vpack.c.bf16 %v1631_v40, %v1630_v38  ;;  %v3950_v38 = vld [vmem:[#allocation5 + $0x544] sm:$0xf0] }
 0xd0d   :  { %v3481_v40 = vor.u32 %v3950_v38, %v3480_v37 }
 0xd0e   :  { %1658 = vmatpush.bf16.msra.mxu2 %v1647_v41  ;;  %v3482_v41 = vld [vmem:[#allocation5 + $0x548] sm:$0xf0] }
 0xd11   :  { %3449 = vmatmul.msk.bf16.vlgmr.msra.gmra.mxu2 %vm553_vm5, %v1646_v28  ;;  %v1909_v28 = vand.u32 %v1893_v26, %v4398_v51 }
 0xd12   :  { %1761 = vmatpush.bf16.msrb.mxu2 %v1752_v42  ;;  %v3485_v42 = vor.u32 %v3949_v39, %v3482_v41  ;;  %v1808_v39 = vld [vmem:[#allocation7 + $0x180] ss:$0 sm:$0xff] }
 0xd13   :  { %1927 = vmatpush.bf16.msrb.mxu3 %v1909_v28  ;;  %v3955_v28 = vld [vmem:[#allocation5 + $0x594] sm:$0xf0] }
 0xd17   :  { %1928 = vmatpush.bf16.msrb.mxu3 %v3493_v36  ;;  %v1807_v36 = vld [vmem:[#allocation7 + $0x170] ss:$0 sm:$0xff] }
 0xd1b   :  { %1929 = vmatpush.bf16.msrb.mxu3 %v3485_v42 }
 0xd2a   :  { %v1669_v43 = vpop.permute.xlu2 %1668 }
 0xd2b   :  { %v1674_v44 = vsel %vm182_vm0, %v1669_v43, 0  ;;  %v3472_v43 = vld [vmem:[#allocation5 + $0x530] sm:$0xf] }
 0xd2c   :  { %1683 = vmatpush.bf16.msra.mxu1 %v1674_v44  ;;  %v3948_v44 = vld [vmem:[#allocation5 + $0x534] sm:$0xf0] }
 0xd30   :  { %1914 = vmatpush.bf16.msrb.mxu1 %v1906_v27  ;;  %v3506_v27 = vld [vmem:[#allocation5 + $0x590] sm:$0xf] }
 0xd34   :  { %1915 = vmatpush.bf16.msrb.mxu1 %v3489_v34  ;;  %v3507_v34 = vor.u32 %v3955_v28, %v3506_v27 }
 0xd38   :  { %1916 = vmatpush.bf16.msrb.mxu1 %v3481_v40 }
 0xd89   :  { %v1739_v46 = vpop.f32.mrf.mxu3 }
 0xd8a   :  { %v1743_v47 = vmul.f32 0.25, %v1739_v46  ;;  %v3473_v46 = vor.u32 %v3948_v44, %v3472_v43  ;;  %v3502_v43 = vld [vmem:[#allocation5 + $0x580] sm:$0xf]  ;;  %v3954_v44 = vld [vmem:[#allocation5 + $0x584] sm:$0xf0] }
 0xd8c   :  { %v1744_v48 = vmul.f32 %v1743_v47, %v1609_v45  ;;  %v3474_v47 = vld [vmem:[#allocation5 + $0x538] sm:$0xf0]  ;;  %1917 = vmatpush.bf16.msrb.mxu1 %v3473_v46  ;;  %v3538_v46 = vld [vmem:[#allocation5 + $0x610] sm:$0xf] }
 0xd8e   :  { %v1745_v32 = vpack.c.bf16 %v1744_v48, %v1744_v48 }
 0xd90   :  { %3452 = vmatmul.msk.bf16.vlgmr.msrb.gmra.mxu2 %vm178_vm1, %v1745_v32  ;;  %v3464_v32 = vld [vmem:[#allocation5 + $0x520] sm:$0xf] }
 0xd91   :  { %v1741_v50 = vpop.f32.mrf.mxu3 }
 0xd92   :  { %v3946_v50 = vld [vmem:[#allocation5 + $0x524] sm:$0xf0] }
 0xd94   :  { %v1660_v33 = vpop.f32.mrf.mxu2 }
 0xd95   :  { %v1664_v52 = vmul.f32 0.25, %v1660_v33  ;;  %v3945_v33 = vld [vmem:[#allocation5 + $0x524] sm:$0xf] }
 0xd97   :  { %v1665_v53 = vmul.f32 %v1664_v52, %v1609_v45  ;;  %v3947_v45 = vld [vmem:[#allocation5 + $0x534] sm:$0xf]  ;;  %v3465_v52 = vor.u32 %v3946_v50, %v3464_v32  ;;  %v3498_v32 = vld [vmem:[#allocation5 + $0x570] sm:$0xf]  ;;  %v3953_v50 = vld [vmem:[#allocation5 + $0x574] sm:$0xf0] }
 0xd98   :  { %v3477_v48 = vor.u32 %v3947_v45, %v3474_v47  ;;  %v3503_v45 = vor.u32 %v3954_v44, %v3502_v43  ;;  %v3963_v47 = vld [vmem:[#allocation5 + $0x614] sm:$0xf0]  ;;  %v3982_v43 = vld [vmem:[#allocation5 + $0x2e4] sm:$0xf0] }
 0xd99   :  { %v1666_v54 = vpack.c.bf16 %v1665_v53, %v1665_v53  ;;  %v3466_v53 = vld [vmem:[#allocation5 + $0x528] sm:$0xf0]  ;;  %1918 = vmatpush.bf16.msrb.mxu1 %v3465_v52  ;;  %v3962_v52 = vld [vmem:[#allocation5 + $0x604] sm:$0xf0] }
 0xd9a   :  { %1930 = vmatpush.bf16.msrb.mxu3 %v3477_v48  ;;  %v3539_v48 = vor.u32 %v3963_v47, %v3538_v46 }
 0xd9b   :  { %3450 = vmatmul.msk.bf16.vlgmr.msra.gmra.mxu1 %vm178_vm1, %v1666_v54  ;;  %v3469_v54 = vor.u32 %v3945_v33, %v3466_v53  ;;  %v3499_v33 = vor.u32 %v3953_v50, %v3498_v32  ;;  %v3607_v32 = vld [vmem:[#allocation5 + $0x288] sm:$0xf0]  ;;  %v3571_v50 = vld [vmem:[#allocation5 + $0x2d0] sm:$0xf] }
 0xd9c   :  { %v1662_v56 = vpop.f32.mrf.mxu2 }
 0xd9d   :  { %v3526_v56 = vld [vmem:[#allocation5 + $0x5e0] sm:$0xf] }
 0xd9e   :  { %1931 = vmatpush.bf16.msrb.mxu3 %v3469_v54  ;;  %v3530_v54 = vld [vmem:[#allocation5 + $0x5f0] sm:$0xf] }
 0xe13   :  { %v1763_v60 = vpop.f32.mrf.mxu2 }
 0xe14   :  { %1768 = vrot.lane.b32.xlu0 %v1763_v60, %s4256_s29  ;;  %v3527_v60 = vor.u32 %v3960_v57, %v3526_v56  ;;  %v3961_v56 = vld [vmem:[#allocation5 + $0x5f4] sm:$0xf0] }
 0xe15   :  { %v3531_v57 = vor.u32 %v3961_v56, %v3530_v54 }
 0xe16   :  { %2070 = vmatpush.bf16.msra.mxu2 %v3527_v60 }
 0xe18   :  { %v1685_v61 = vpop.f32.mrf.mxu1 }
 0xe1b   :  { %v1765_v62 = vpop.f32.mrf.mxu2 }
 0xe1c   :  { %v3558_v62 = vld [vmem:[#allocation5 + $0x660] sm:$0xf] }
 0xe20   :  { %v1687_v63 = vpop.f32.mrf.mxu1 }
 0xe21   :  { %v3968_v63 = vld [vmem:[#allocation5 + $0x664] sm:$0xf0] }
 0xe22   :  { %v3559_v6 = vor.u32 %v3968_v63, %v3558_v62 }
 0xe24   :  { %2083 = vmatpush.bf16.msrb.mxu0 %v3559_v6 }
 0xe86   :  { %v1769_v0 = vpop.permute.xlu0 %1768 }
 0xe87   :  { %v1771_v4 = vsel %vm553_vm5, %v1685_v61, %v1769_v0  ;;  %v3959_v61 = vld [vmem:[#allocation5 + $0x5d4] sm:$0xf0] }
 0xe88   :  { %v1776_v5 = vpack.c.bf16 %v1771_v4, %v1771_v4  ;;  %v3523_v0 = vor.u32 %v3959_v61, %v3522_v58  ;;  %v3967_v4 = vld [vmem:[#allocation5 + $0x654] sm:$0xf0] }
 0xe89   :  { %v1851_v58 = vld [vmem:[#allocation7 + $0x150] ss:$8 sm:$0x3] }
 0xe8a   :  { %3461 = vmatmul.msk.bf16.vlgmr.msra.gmra.mxu0 %vm519_vm4, %v1776_v5  ;;  %2071 = vmatpush.bf16.msra.mxu2 %v3523_v0  ;;  %v1854_v63 = vperm.slane %v1851_v58, 1 }
 0xf07   :  { %v1802_v55 = vpop.f32.mrf.mxu0 }
 0xf08   :  { %v1803_v1 = vadd.f32 %v1802_v55, %v1777_v7  ;;  %v3518_v7 = vld [vmem:[#allocation5 + $0x5c0] sm:$0xf]  ;;  %v3958_v55 = vld [vmem:[#allocation5 + $0x5c4] sm:$0xf0] }
 0xf0a   :  { %v1806_v8 = vadd.f32 %v1803_v1, %v4403_v22  ;;  %v3555_v1 = vor.u32 %v3967_v4, %v3554_v3 }
 0xf0c   :  { %v1809_v9 = vsel %vm1586_vm14, %v1806_v8, 0.0  ;;  %2084 = vmatpush.bf16.msrb.mxu0 %v3555_v1 }
 0xf0d   :  { %1810 = vadd.xlane.f32.xlu0 %v1809_v9  ;;  %v3966_v9 = vld [vmem:[#allocation5 + $0x644] sm:$0xf0] }
 0xf0f   :  { %v1804_v10 = vpop.f32.mrf.mxu0 }
 0xf10   :  { %v3519_v10 = vor.u32 %v3958_v55, %v3518_v7  ;;  %v1973_v55 = vld [vmem:[#allocation7 + $0x160] ss:$0 sm:$0xff] }
 0xf12   :  { %2072 = vmatpush.bf16.msra.mxu2 %v3519_v10 }
 0xf16   :  { %2073 = vmatpush.bf16.msra.mxu2 %v3515_v16 }
 0xf80   :  { %v1811_v18 = vpop.xlane.xlu0 %1810 }
 0xf81   :  { %v1819_v19 = vmul.f32 %v4424_v17, %v1811_v18 }
 0xf83   :  { %v4427_v20 = vsub.f32 %v1806_v8, %v1819_v19  ;;  %v3550_v8 = vld [vmem:[#allocation5 + $0x640] sm:$0xf] }
 0xf84   :  { %v3551_v13 = vor.u32 %v3966_v9, %v3550_v8  ;;  %v3510_v19 = vld [vmem:[#allocation5 + $0x5a0] sm:$0xf] }
 0xf85   :  { %v1821_v21 = vmul.f32 %v4427_v20, %v4427_v20 }
 0xf86   :  { %2085 = vmatpush.bf16.msrb.mxu0 %v3551_v13 }
 0xf87   :  { %v1822_v22 = vsel %vm1586_vm14, %v1821_v21, 0.0  ;;  %v3956_v21 = vld [vmem:[#allocation5 + $0x5a4] sm:$0xf0] }
 0xf88   :  { %1823 = vadd.xlane.f32.xlu1 %v1822_v22  ;;  %v3547_v22 = vor.u32 %v3965_v15, %v3546_v14  ;;  %v3511_v26 = vor.u32 %v3956_v21, %v3510_v19 }
 0xf8a   :  { %2086 = vmatpush.bf16.msrb.mxu0 %v3547_v22  ;;  %2074 = vmatpush.bf16.msra.mxu2 %v3511_v26  ;;  %v2273_v26 = vunpack.c.h.b16 %v4442_v25 }
 0xf8c   :  { %v2283_v28 = vpack.c.b16 %v2273_v26, %v2273_v26 }
 0xf8e   :  { %2087 = vmatpush.bf16.msrb.mxu0 %v3543_v29  ;;  %2075 = vmatpush.bf16.msra.mxu2 %v3507_v34  ;;  %v3587_v34 = vld [vmem:[#allocation5 + $0x2f0] sm:$0xf] }
 0xf92   :  { %2076 = vmatpush.bf16.msra.mxu2 %v3503_v45  ;;  %2088 = vmatpush.bf16.msrb.mxu0 %v3539_v48  ;;  %v3971_v48 = vld [vmem:[#allocation5 + $0x284] sm:$0xf] }
 0xf96   :  { %2077 = vmatpush.bf16.msra.mxu2 %v3499_v33  ;;  %v3980_v33 = vld [vmem:[#allocation5 + $0x2d4] sm:$0xf0] }
 0xf97   :  { %v3572_v54 = vor.u32 %v3980_v33, %v3571_v50  ;;  %v3990_v50 = vld [vmem:[#allocation5 + $0x6c4] sm:$0xf0] }
 0xffb   :  { %v1824_v59 = vpop.xlane.xlu1 %1823 }
 0xffc   :  { %v1825_v2 = vmul.f32 %v1824_v59, %v4424_v17  ;;  %v1853_v59 = vperm.slane %v1851_v58, 0 }
 0xffe   :  { %v1826_v5 = vadd.f32 1e-05, %v1825_v2 }
0x1000   :  { %4138 = vrsqrt.f32 %v1826_v5  ;;  %vm1833_vm15 = vweird.f32 %v1826_v5 }
0x1006   :  { %v4139_v18 = vpop.eup %4138 }
0x1007   :  { %v1828_v23 = vmul.f32 %v4139_v18, %v1826_v5  ;;  %vm1834_vm4 = vweird.f32 %v4139_v18 }
0x1008   :  { %vm1835_vm7 = vmor %vm1833_vm15, %vm1834_vm4  ;;  %vm3101_vm15 = vcmask 44034  }
0x1009   :  { %v1829_v49 = vmul.f32 %v4139_v18, %v1828_v23 }
0x100b   :  { %v1830_v30 = vmul.f32 0.5, %v1829_v49  ;;  %v2141_v49 = vld [vmem:[#allocation5 + $0x300] sm:$0x33] }
0x100c   :  { %v2192_v27 = vunpack.c.l.b16 %v2141_v49 }
0x100d   :  { %v1831_v31 = vsub.f32 1.5, %v1830_v30  ;;  %v3975_v30 = vld [vmem:[#allocation5 + $0x2a4] sm:$0xf] }
0x100e   :  { %v2202_v29 = vpack.c.b16 %v2192_v27, %v2192_v27  ;;  %v3621_v27 = vld [vmem:[#allocation5 + $0x2a0] sm:$0xf] }
0x100f   :  { %v1832_v35 = vmul.f32 %v4139_v18, %v1831_v31  ;;  %v3623_v31 = vld [vmem:[#allocation5 + $0x2a8] sm:$0xf0] }
0x1011   :  { %v1836_v37 = vsel %vm1835_vm7, %v4139_v18, %v1832_v35  ;;  %v3984_v35 = vld [vmem:[#allocation5 + $0x2f4] sm:$0xf0]  ;;  %vm3102_vm7 = vmor %vm3101_vm15, %vm1590_vm13 }
0x1012   :  { %v1837_v38 = vmul.f32 %v1836_v37, %v4427_v20  ;;  %v3534_v20 = vld [vmem:[#allocation5 + $0x600] sm:$0xf]  ;;  %v2216_v37 = vand.u32 %v2202_v29, %v4398_v51 }
0x1013   :  { %v3535_v53 = vor.u32 %v3962_v52, %v3534_v20 }
0x1014   :  { %v1838_v40 = vmul.f32 %v1837_v38, %v1807_v36  ;;  %v2299_v36 = vand.u32 %v2283_v28, %v4398_v51  ;;  %2224 = vmatpush.bf16.msra.mxu3 %v2216_v37  ;;  %v3588_v38 = vor.u32 %v3984_v35, %v3587_v34  ;;  %v3976_v28 = vld [vmem:[#allocation5 + $0x2a4] sm:$0xf0]  ;;  %v3597_v37 = vld [vmem:[#allocation5 + $0x270] sm:$0xf] }
0x1015   :  { %2089 = vmatpush.bf16.msrb.mxu0 %v3535_v53  ;;  %v3610_v53 = vor.u32 %v3971_v48, %v3607_v32  ;;  %v3622_v29 = vor.u32 %v3976_v28, %v3621_v27  ;;  %v3972_v35 = vld [vmem:[#allocation5 + $0x284] sm:$0xf0]  ;;  %v2345_v48 = vld [vmem:[#allocation5 + $0x6f0] sm:$0x7]  ;;  %v3651_v32 = vld [vmem:[#allocation5 + $0x6c0] sm:$0xf] }
0x1016   :  { %v1839_v41 = vadd.f32 %v1838_v40, %v1808_v39  ;;  %2317 = vmatpush.bf16.msrb.mxu2 %v2299_v36  ;;  %v3973_v39 = vld [vmem:[#allocation5 + $0x294] sm:$0xf]  ;;  %v2382_v33 = vunpack.c.l.b16 %v2345_v48 }
0x1018   :  { %v1849_v42 = vpack.c.bf16 %v1839_v41, %v1839_v41  ;;  %2225 = vmatpush.bf16.msra.mxu3 %v3588_v38 }
0x1019   :  { %2090 = vmatpush.bf16.msrb.mxu0 %v3531_v57  ;;  %v2193_v57 = vunpack.c.h.b16 %v2141_v49 }
0x101a   :  { %3494 = vmatmul.msk.bf16.vlgmr.msrb.gmra.mxu1 %vm1586_vm14, %v1849_v42  ;;  %3495 = vmatmul.msk.bf16.vlgmr.msrb.gmra.mxu3 %vm1586_vm14, %v1849_v42  ;;  %v3579_v42 = vld [vmem:[#allocation5 + $0x2e0] sm:$0xf] }
0x101b   :  { %v3580_v47 = vor.u32 %v3982_v43, %v3579_v42 }
0x101d   :  { %2226 = vmatpush.bf16.msra.mxu3 %v3580_v47 }
0x1021   :  { %2227 = vmatpush.bf16.msra.mxu3 %v3572_v54  ;;  %v3647_v54 = vld [vmem:[#allocation5 + $0x6b0] sm:$0xf] }
0x1097   :  { %v1920_v60 = vpop.f32.mrf.mxu1 }
0x1098   :  { %v1921_v61 = vadd.f32 %v1920_v60, %v1853_v59  ;;  %v2097_v59 = vld [vmem:[#allocation7 + $0x190] ss:$0 sm:$0xff] }
0x109a   :  { %v1937_v62 = vmax.f32 %v1921_v61, 0.0  ;;  %v2098_v61 = vld [vmem:[#allocation7 + $0x1a0] ss:$0 sm:$0xff] }
0x109c   :  { %v1971_v2 = vpack.c.bf16 %v1937_v62, %v1937_v62 }
0x109d   :  { %v1933_v6 = vpop.f32.mrf.mxu3 }
0x109e   :  { %v1934_v3 = vadd.f32 %v1933_v6, %v1854_v63  ;;  %2078 = vmatmul.bf16.vlgmr.msra.gmra.mxu2 %v1971_v2  ;;  %v2203_v63 = vpack.c.b16 %v2193_v57, %v2193_v57 }
0x109f   :  { %v1922_v0 = vpop.f32.mrf.mxu1 }
0x10a0   :  { %v1938_v4 = vmax.f32 %v1934_v3, 0.0  ;;  %v2219_v3 = vand.u32 %v2203_v63, %v4398_v51  ;;  %v3983_v0 = vld [vmem:[#allocation5 + $0x2f4] sm:$0xf] }
0x10a2   :  { %v1972_v5 = vpack.c.bf16 %v1938_v4, %v1938_v4  ;;  %v3589_v4 = vld [vmem:[#allocation5 + $0x2f8] sm:$0xf0] }
0x10a4   :  { %2091 = vmatmul.bf16.vlgmr.msrb.gmra.mxu0 %v1972_v5 }
0x10a5   :  { %v1935_v7 = vpop.f32.mrf.mxu3 }
0x10a6   :  { %v2123_v7 = vld [vmem:[#allocation5 + $0x260] sm:$0x3] }
0x1121   :  { %v2079_v1 = vpop.f32.mrf.mxu2  ;;  %v2092_v8 = vpop.f32.mrf.mxu0 }
0x1122   :  { %v2080_v9 = vadd.f32 %v2079_v1, %v1973_v55  ;;  %v3592_v55 = vor.u32 %v3983_v0, %v3589_v4  ;;  %v3981_v1 = vld [vmem:[#allocation5 + $0x2e4] sm:$0xf]  ;;  %v3631_v0 = vld [vmem:[#allocation5 + $0x670] sm:$0xf]  ;;  %v3985_v4 = vld [vmem:[#allocation5 + $0x674] sm:$0xf0] }
0x1124   :  { %v2093_v10 = vadd.f32 %v2092_v8, %v2080_v9  ;;  %v3581_v8 = vld [vmem:[#allocation5 + $0x2e8] sm:$0xf0] }
0x1125   :  { %v3584_v9 = vor.u32 %v3981_v1, %v3581_v8 }
0x1126   :  { %v2096_v11 = vadd.f32 %v2093_v10, %v1839_v41  ;;  %v3615_v41 = vld [vmem:[#allocation5 + $0x298] sm:$0xf0]  ;;  %v3979_v10 = vld [vmem:[#allocation5 + $0x2d4] sm:$0xf] }
0x1127   :  { %v3618_v46 = vor.u32 %v3973_v39, %v3615_v41  ;;  %v3992_v39 = vld [vmem:[#allocation5 + $0x6e4] sm:$0xf0] }
0x1128   :  { %v2099_v12 = vsel %vm1586_vm14, %v2096_v11, 0.0 }
0x1129   :  { %v2081_v13 = vpop.f32.mrf.mxu2  ;;  %v2094_v14 = vpop.f32.mrf.mxu0  ;;  %2100 = vadd.xlane.f32.xlu0 %v2099_v12 }
0x112a   :  { %v2272_v13 = vunpack.c.l.b16 %v4442_v25  ;;  %v3969_v14 = vld [vmem:[#allocation5 + $0x274] sm:$0xf]  ;;  %v3613_v25 = vld [vmem:[#allocation5 + $0x290] sm:$0xf] }
0x119c   :  { %v2101_v15 = vpop.xlane.xlu0 %2100 }
0x119d   :  { %v2102_v16 = vmul.f32 %v2101_v15, %v4424_v17  ;;  %v3599_v15 = vld [vmem:[#allocation5 + $0x278] sm:$0xf0] }
0x119f   :  { %v2103_v18 = vsub.f32 %v2096_v11, %v2102_v16  ;;  %v3573_v11 = vld [vmem:[#allocation5 + $0x2d8] sm:$0xf0]  ;;  %v3602_v16 = vor.u32 %v3969_v14, %v3599_v15  ;;  %v2142_v15 = vld [vmem:[#allocation7 + $0x80] sm:$0x3] }
0x11a0   :  { %v3576_v12 = vor.u32 %v3979_v10, %v3573_v11 }
0x11a1   :  { %v2104_v19 = vmul.f32 %v2103_v18, %v2103_v18 }
0x11a3   :  { %v2105_v21 = vsel %vm1586_vm14, %v2104_v19, 0.0  ;;  %v3978_v19 = vld [vmem:[#allocation5 + $0x2c4] sm:$0xf0] }
0x11a4   :  { %2106 = vadd.xlane.f32.xlu0 %v2105_v21  ;;  %v2282_v21 = vpack.c.b16 %v2272_v13, %v2272_v13 }
0x11a6   :  { %v2296_v26 = vand.u32 %v2282_v21, %v4398_v51  ;;  %v3659_v51 = vld [vmem:[#allocation5 + $0x6e0] sm:$0xf] }
0x1217   :  { %v2107_v22 = vpop.xlane.xlu0 %2106 }
0x1218   :  { %v2108_v23 = vmul.f32 %v2107_v22, %v4424_v17  ;;  %v3626_v17 = vor.u32 %v3975_v30, %v3623_v31  ;;  %v3974_v30 = vld [vmem:[#allocation5 + $0x294] sm:$0xf0]  ;;  %v3605_v31 = vld [vmem:[#allocation5 + $0x280] sm:$0xf] }
0x1219   :  { %v3614_v34 = vor.u32 %v3974_v30, %v3613_v25  ;;  %v3606_v36 = vor.u32 %v3972_v35, %v3605_v31 }
0x121a   :  { %v2109_v24 = vadd.f32 1e-05, %v2108_v23  ;;  %2318 = vmatpush.bf16.msrb.mxu2 %v3626_v17  ;;  %v3977_v23 = vld [vmem:[#allocation5 + $0x2c4] sm:$0xf]  ;;  %v3970_v17 = vld [vmem:[#allocation5 + $0x274] sm:$0xf0] }
0x121b   :  { %v3598_v38 = vor.u32 %v3970_v17, %v3597_v37  ;;  %v2434_v17 = vld [vmem:[#allocation7 + $0x240] sm:$0x3] }
0x121c   :  { %4140 = vrsqrt.f32 %v2109_v24  ;;  %vm2116_vm9 = vweird.f32 %v2109_v24 }
0x121e   :  { %2319 = vmatpush.bf16.msrb.mxu2 %v3618_v46  ;;  %v3991_v46 = vld [vmem:[#allocation5 + $0x6d4] sm:$0xf0] }
0x1222   :  { %v4141_v40 = vpop.eup %4140  ;;  %2320 = vmatpush.bf16.msrb.mxu2 %v3610_v53 }
0x1223   :  { %v2111_v44 = vmul.f32 %v4141_v40, %v2109_v24  ;;  %vm2117_vm8 = vweird.f32 %v4141_v40  ;;  %v3565_v24 = vld [vmem:[#allocation5 + $0x2c8] sm:$0xf0] }
0x1224   :  { %vm2118_vm10 = vmor %vm2116_vm9, %vm2117_vm8  ;;  %v3568_v49 = vor.u32 %v3977_v23, %v3565_v24 }
0x1225   :  { %v2112_v45 = vmul.f32 %v4141_v40, %v2111_v44 }
0x1226   :  { %2321 = vmatpush.bf16.msrb.mxu2 %v3602_v16 }
0x1227   :  { %v2113_v20 = vmul.f32 0.5, %v2112_v45  ;;  %v3655_v45 = vld [vmem:[#allocation5 + $0x6d0] sm:$0xf] }
0x1228   :  { %v3656_v47 = vor.u32 %v3991_v46, %v3655_v45  ;;  %v3668_v46 = vld [vmem:[#allocation5 + $0x708] sm:$0xf0] }
0x1229   :  { %v2114_v52 = vsub.f32 1.5, %v2113_v20  ;;  %v3652_v20 = vor.u32 %v3990_v50, %v3651_v32 }
0x122b   :  { %v2115_v56 = vmul.f32 %v4141_v40, %v2114_v52  ;;  %v2391_v52 = vpack.c.b16 %v2382_v33, %v2382_v33  ;;  %v2518_v33 = vld [vmem:[#allocation7 + $0x1d0] ss:$8 sm:$0x3] }
0x122d   :  { %v2119_v58 = vsel %vm2118_vm10, %v4141_v40, %v2115_v56  ;;  %v3660_v40 = vor.u32 %v3992_v39, %v3659_v51  ;;  %v3989_v56 = vld [vmem:[#allocation5 + $0x6b4] sm:$0xf0] }
0x122e   :  { %v2120_v60 = vmul.f32 %v2119_v58, %v2103_v18  ;;  %v3563_v18 = vld [vmem:[#allocation5 + $0x2c0] sm:$0xf]  ;;  %v3648_v57 = vor.u32 %v3989_v56, %v3647_v54  ;;  %v2521_v54 = vperm.slane %v2518_v33, 1 }
0x122f   :  { %v3564_v22 = vor.u32 %v3978_v19, %v3563_v18  ;;  %2408 = vmatpush.bf16.msra.mxu0 %v3660_v40  ;;  %v3643_v58 = vld [vmem:[#allocation5 + $0x6a0] sm:$0xf] }
0x1230   :  { %v2121_v62 = vmul.f32 %v2120_v60, %v2097_v59  ;;  %v3988_v59 = vld [vmem:[#allocation5 + $0x6a4] sm:$0xf0] }
0x1231   :  { %2228 = vmatpush.bf16.msra.mxu3 %v3564_v22  ;;  %v3644_v60 = vor.u32 %v3988_v59, %v3643_v58 }
0x1232   :  { %v2122_v2 = vadd.f32 %v2121_v62, %v2098_v61  ;;  %v3639_v61 = vld [vmem:[#allocation5 + $0x690] sm:$0xf]  ;;  %v3987_v62 = vld [vmem:[#allocation5 + $0x694] sm:$0xf0] }
0x1233   :  { %2409 = vmatpush.bf16.msra.mxu0 %v3656_v47  ;;  %v3640_v63 = vor.u32 %v3987_v62, %v3639_v61 }
0x1234   :  { %v2144_v6 = vpack.c.bf16 %v2122_v2, %v2122_v2  ;;  %v3635_v2 = vld [vmem:[#allocation5 + $0x680] sm:$0xf] }
0x1235   :  { %2304 = vmatpush.bf16.msrb.mxu3 %v2296_v26 }
0x1236   :  { %v2149_v5 = vsel %vm182_vm0, %v2144_v6, 0  ;;  %vm2404_vm0 = vcmask 1042432   ;;  %v3986_v6 = vld [vmem:[#allocation5 + $0x684] sm:$0xf0] }
0x1237   :  { %2158 = vmatpush.bf16.msra.mxu1 %v2149_v5  ;;  %2410 = vmatpush.bf16.msra.mxu0 %v3652_v20  ;;  %v2406_v53 = vsel %vm2404_vm0, %v2391_v52, 0  ;;  %v3632_v5 = vor.u32 %v3985_v4, %v3631_v0  ;;  %v2520_v20 = vperm.slane %v2518_v33, 0  ;;  %v4010_v0 = vld [vmem:[#allocation5 + $0x784] sm:$0xf0]  ;;  %v4009_v4 = vld [vmem:[#allocation5 + $0x784] sm:$0xf] }
0x1238   :  { %v3694_v33 = vld [vmem:[#allocation5 + $0x738] sm:$0xf0] }
0x1239   :  { %2305 = vmatpush.bf16.msrb.mxu3 %v3622_v29 }
0x123a   :  { %3560 = vmatmul.msk.bf16.vlgmr.msra.gmra.mxu1 %vm178_vm1, %v2123_v7  ;;  %vm2400_vm1 = vcmask 48128  }
0x123b   :  { %2237 = vmatpush.bf16.msrb.mxu1 %v2219_v3  ;;  %2411 = vmatpush.bf16.msra.mxu0 %v3648_v57  ;;  %v3636_v3 = vor.u32 %v3986_v6, %v3635_v2  ;;  %v4267_v6 = vmov 134.0  }
0x123c   :  { %4142 = vrcp.f32 %v4267_v6  ;;  %v3995_v6 = vld [vmem:[#allocation5 + $0x714] sm:$0xf] }
0x123d   :  { %2306 = vmatpush.bf16.msrb.mxu3 %v3614_v34 }
0x123f   :  { %2238 = vmatpush.bf16.msrb.mxu1 %v3592_v55  ;;  %2412 = vmatpush.bf16.msra.mxu0 %v3644_v60  ;;  %v2143_v55 = vld [vmem:[#allocation7 + $0x88] sm:$0x3] }
0x1241   :  { %2307 = vmatpush.bf16.msrb.mxu3 %v3606_v36 }
0x1243   :  { %2239 = vmatpush.bf16.msrb.mxu1 %v3584_v9  ;;  %2413 = vmatpush.bf16.msra.mxu0 %v3640_v63 }
0x1245   :  { %2308 = vmatpush.bf16.msrb.mxu3 %v3598_v38 }
0x1247   :  { %2240 = vmatpush.bf16.msrb.mxu1 %v3576_v12  ;;  %2414 = vmatpush.bf16.msra.mxu0 %v3636_v3  ;;  %v3732_v3 = vld [vmem:[#allocation5 + $0x780] sm:$0xf] }
0x124b   :  { %2241 = vmatpush.bf16.msrb.mxu1 %v3568_v49  ;;  %2415 = vmatpush.bf16.msra.mxu0 %v3632_v5  ;;  %v2348_v49 = vld [vmem:[#allocation7 + $0x1c0] ss:$0 sm:$0xff]  ;;  %v4143_v5 = vpop.eup %4142 }
0x124f   :  { %2428 = vmatpush.bf16.msra.mxu1 %v2406_v53 }
0x12b7   :  { %v2160_v41 = vpop.f32.mrf.mxu1 }
0x12b8   :  { %v2164_v42 = vpack.c.bf16 %v2160_v41, %v2160_v41 }
0x12ba   :  { %v2166_v43 = vrot.slane %v2164_v42, 1  ;;  %3628 = vmatmul.msk.bf16.vlgmr.msrb.gmra.mxu2 %vm1586_vm14, %v2164_v42 }
0x12bc   :  { %3593 = vmatmul.msk.bf16.vlgmr.msra.gmra.mxu3 %vm1586_vm14, %v2166_v43  ;;  %3594 = vmatmul.msk.bf16.vlgmr.msrb.gmra.mxu1 %vm1586_vm14, %v2166_v43  ;;  %v3994_v43 = vld [vmem:[#allocation5 + $0x704] sm:$0xf0] }
0x12bf   :  { %v2162_v44 = vpop.f32.mrf.mxu1 }
0x12c0   :  { %v3993_v44 = vld [vmem:[#allocation5 + $0x704] sm:$0xf] }
0x12c1   :  { %v3671_v47 = vor.u32 %v3993_v44, %v3668_v46 }
0x12cc   :  { %3627 = vmatmul.msk.bf16.vlgmr.msrb.gmra.mxu3 %vm1586_vm14, %v2164_v42  ;;  %v3666_v42 = vld [vmem:[#allocation5 + $0x700] sm:$0xf] }
0x12cd   :  { %v3667_v45 = vor.u32 %v3994_v43, %v3666_v42  ;;  %v4002_v42 = vld [vmem:[#allocation5 + $0x744] sm:$0xf0]  ;;  %v4001_v43 = vld [vmem:[#allocation5 + $0x744] sm:$0xf] }
0x12cf   :  { %2544 = vmatpush.bf16.msrb.mxu1 %v3667_v45  ;;  %v3702_v45 = vld [vmem:[#allocation5 + $0x748] sm:$0xf0] }
0x12d0   :  { %v3705_v46 = vor.u32 %v4001_v43, %v3702_v45  ;;  %v4021_v43 = vld [vmem:[#allocation5 + $0x7f4] sm:$0xf] }
0x12d1   :  { %v4037_v45 = vld [vmem:[#allocation5 + $0x874] sm:$0xf] }
0x1339   :  { %v2243_v7 = vpop.f32.mrf.mxu1 }
0x133d   :  { %v2323_v1 = vpop.f32.mrf.mxu2 }
0x133e   :  { %v2324_v8 = vadd.f32 %v2323_v1, %v2243_v7  ;;  %v3733_v7 = vor.u32 %v4010_v0, %v3732_v3 }
0x133f   :  { %v2230_v9 = vpop.f32.mrf.mxu3 }
0x1340   :  { %v4457_v10 = vadd.f32 %v2324_v8, %v2143_v55  ;;  %v3734_v55 = vld [vmem:[#allocation5 + $0x788] sm:$0xf0]  ;;  %2740 = vmatpush.bf16.msrb.mxu0 %v3733_v7  ;;  %v2576_v8 = vmul.f32 134.0, %v4143_v5 }
0x1341   :  { %v2245_v11 = vpop.f32.mrf.mxu1  ;;  %v3737_v1 = vor.u32 %v4009_v4, %v3734_v55  ;;  %v3678_v4 = vld [vmem:[#allocation5 + $0x718] sm:$0xf0] }
0x1342   :  { %v2347_v12 = vpack.c.bf16 %v4457_v10, %v4457_v10  ;;  %v3681_v7 = vor.u32 %v3995_v6, %v3678_v4  ;;  %v3830_v6 = vld [vmem:[#allocation5 + $0x850] sm:$0xf]  ;;  %v4017_v4 = vld [vmem:[#allocation5 + $0x7d4] sm:$0xf] }
0x1344   :  { %3661 = vmatmul.msk.bf16.vlgmr.msra.gmra.mxu1 %vm2400_vm1, %v2347_v12 }
0x1345   :  { %v2325_v13 = vpop.f32.mrf.mxu2  ;;  %2766 = vmatpush.bf16.msra.mxu1 %v3737_v1 }
0x1347   :  { %v2232_v14 = vpop.f32.mrf.mxu3 }
0x134f   :  { %v2310_v16 = vpop.f32.mrf.mxu3 }
0x1350   :  { %v2311_v18 = vadd.f32 %v2310_v16, %v2230_v9  ;;  %v2577_v9 = vsub.f32 1.0, %v2576_v8  ;;  %v3798_v8 = vld [vmem:[#allocation5 + $0x810] sm:$0xf] }
0x1352   :  { %v2327_v19 = vadd.f32 %v2311_v18, %v2142_v15 }
0x1354   :  { %v2346_v21 = vpack.c.bf16 %v2327_v19, %v2327_v19 }
0x1356   :  { %2416 = vmatmul.bf16.vlgmr.msra.gmra.mxu0 %v2346_v21 }
0x1357   :  { %v2312_v22 = vpop.f32.mrf.mxu3 }
0x13c1   :  { %v2430_v23 = vpop.f32.mrf.mxu1 }
0x13c9   :  { %v2432_v24 = vpop.f32.mrf.mxu1 }
0x13ca   :  { %v3724_v24 = vld [vmem:[#allocation5 + $0x770] sm:$0xf] }
0x13d3   :  { %v2417_v26 = vpop.f32.mrf.mxu0 }
0x13d4   :  { %v2418_v27 = vadd.f32 %v2417_v26, %v2348_v49  ;;  %v4008_v49 = vld [vmem:[#allocation5 + $0x774] sm:$0xf0]  ;;  %v4007_v26 = vld [vmem:[#allocation5 + $0x774] sm:$0xf] }
0x13d6   :  { %v2431_v28 = vadd.f32 %v2430_v23, %v2418_v27  ;;  %v3725_v27 = vor.u32 %v4008_v49, %v3724_v24  ;;  %v3864_v24 = vld [vmem:[#allocation5 + $0x898] sm:$0xf0]  ;;  %v3790_v49 = vld [vmem:[#allocation5 + $0x800] sm:$0xf] }
0x13d8   :  { %2436 = vrot.lane.b32.xlu0 %v2431_v28, %s4260_s30  ;;  %v2471_v29 = vpack.c.bf16 %v2431_v28, %v2431_v28  ;;  %v3726_v28 = vld [vmem:[#allocation5 + $0x778] sm:$0xf0]  ;;  %2741 = vmatpush.bf16.msrb.mxu0 %v3725_v27 }
0x13da   :  { %2493 = vrot.lane.b32.xlu2 %v2471_v29, %s4263_s6 }
0x13db   :  { %v2419_v25 = vpop.f32.mrf.mxu0 }
0x13dc   :  { %v3716_v25 = vld [vmem:[#allocation5 + $0x760] sm:$0xf] }
0x1434   :  { %v2494_v30 = vpop.permute.xlu2 %2493 }
0x1435   :  { %v2499_v31 = vsel %vm266_vm2, %v2494_v30, 0  ;;  %vm2570_vm2 = vcmask 41984   ;;  %v4006_v30 = vld [vmem:[#allocation5 + $0x764] sm:$0xf0] }
0x1436   :  { %2508 = vmatpush.bf16.msra.mxu2 %v2499_v31  ;;  %v4005_v31 = vld [vmem:[#allocation5 + $0x764] sm:$0xf] }
0x144a   :  { %v2437_v34 = vpop.permute.xlu0 %2436 }
0x144b   :  { %2439 = vxpose.xlu0.b32.start.end [1/1] (short) (narrow) %v2437_v34, 16  ;;  %v3717_v34 = vor.u32 %v4006_v30, %v3716_v25  ;;  %v4040_v30 = vld [vmem:[#allocation5 + $0x884] sm:$0xf0] }
0x144d   :  { %2742 = vmatpush.bf16.msrb.mxu0 %v3717_v34  ;;  %v3792_v34 = vld [vmem:[#allocation5 + $0x808] sm:$0xf0] }
0x14ef   :  { %v2455_v35 = vpop.trf.xlu0 }
0x14f7   :  { %v2456_v36 = vpop.trf.xlu0 }
0x14f8   :  { %v2472_v37 = vpack.c.bf16 %v2456_v36, %v2455_v35  ;;  %v3718_v35 = vld [vmem:[#allocation5 + $0x768] sm:$0xf0] }
0x14f9   :  { %v3721_v36 = vor.u32 %v4005_v31, %v3718_v35  ;;  %v4023_v31 = vld [vmem:[#allocation5 + $0x804] sm:$0xf] }
0x14fa   :  { %2483 = vmatpush.bf16.msra.mxu3 %v2472_v37  ;;  %v3708_v37 = vld [vmem:[#allocation5 + $0x750] sm:$0xf] }
0x14fd   :  { %3662 = vmatmul.msk.bf16.vlgmr.msra.gmra.mxu3 %vm553_vm5, %v2471_v29  ;;  %v3729_v29 = vor.u32 %v4007_v26, %v3726_v28  ;;  %v4024_v28 = vld [vmem:[#allocation5 + $0x804] sm:$0xf0] }
0x14fe   :  { %2557 = vmatpush.bf16.msrb.mxu3 %v3671_v47  ;;  %v3692_v47 = vld [vmem:[#allocation5 + $0x730] sm:$0xf]  ;;  %v3791_v25 = vor.u32 %v4024_v28, %v3790_v49 }
0x14ff   :  { %2767 = vmatpush.bf16.msra.mxu1 %v3729_v29  ;;  %v3854_v29 = vld [vmem:[#allocation5 + $0x880] sm:$0xf] }
0x1500   :  { %v3855_v35 = vor.u32 %v4040_v30, %v3854_v29 }
0x1503   :  { %2768 = vmatpush.bf16.msra.mxu1 %v3721_v36  ;;  %v3795_v36 = vor.u32 %v4023_v31, %v3792_v34 }
0x1580   :  { %v2485_v38 = vpop.f32.mrf.mxu3 }
0x1581   :  { %v2489_v51 = vmul.f32 0.25, %v2485_v38  ;;  %v4003_v38 = vld [vmem:[#allocation5 + $0x754] sm:$0xf] }
0x1583   :  { %v2490_v39 = vmul.f32 %v2489_v51, %v2434_v17  ;;  %v4004_v17 = vld [vmem:[#allocation5 + $0x754] sm:$0xf0] }
0x1584   :  { %v3709_v51 = vor.u32 %v4004_v17, %v3708_v37  ;;  %v4039_v37 = vld [vmem:[#allocation5 + $0x884] sm:$0xf]  ;;  %v3856_v17 = vld [vmem:[#allocation5 + $0x888] sm:$0xf0] }
0x1585   :  { %v2491_v40 = vpack.c.bf16 %v2490_v39, %v2490_v39  ;;  %v3710_v39 = vld [vmem:[#allocation5 + $0x758] sm:$0xf0] }
0x1586   :  { %2743 = vmatpush.bf16.msrb.mxu0 %v3709_v51  ;;  %v3859_v51 = vor.u32 %v4039_v37, %v3856_v17  ;;  %v3822_v37 = vld [vmem:[#allocation5 + $0x840] sm:$0xf]  ;;  %v4032_v17 = vld [vmem:[#allocation5 + $0x844] sm:$0xf0] }
0x1587   :  { %3663 = vmatmul.msk.bf16.vlgmr.msra.gmra.mxu2 %vm259_vm3, %v2491_v40  ;;  %vm2580_vm3 = vweird.f32 %v4143_v5  ;;  %v3713_v40 = vor.u32 %v4003_v38, %v3710_v39  ;;  %v3782_v38 = vld [vmem:[#allocation5 + $0x7f0] sm:$0xf]  ;;  %v4022_v39 = vld [vmem:[#allocation5 + $0x7f4] sm:$0xf0] }
0x1588   :  { %v2487_v41 = vpop.f32.mrf.mxu3 }
0x1589   :  { %2769 = vmatpush.bf16.msra.mxu1 %v3713_v40  ;;  %v3700_v41 = vld [vmem:[#allocation5 + $0x740] sm:$0xf]  ;;  %v3846_v40 = vld [vmem:[#allocation5 + $0x870] sm:$0xf] }
0x158a   :  { %v3701_v44 = vor.u32 %v4002_v42, %v3700_v41  ;;  %v4038_v41 = vld [vmem:[#allocation5 + $0x874] sm:$0xf0]  ;;  %v3783_v42 = vor.u32 %v4022_v39, %v3782_v38  ;;  %v4015_v38 = vld [vmem:[#allocation5 + $0x7c4] sm:$0xf]  ;;  %v3760_v39 = vld [vmem:[#allocation5 + $0x7c8] sm:$0xf0] }
0x158c   :  { %2744 = vmatpush.bf16.msrb.mxu0 %v3701_v44  ;;  %v3784_v44 = vld [vmem:[#allocation5 + $0x7f8] sm:$0xf0] }
0x158d   :  { %2770 = vmatpush.bf16.msra.mxu1 %v3705_v46  ;;  %v3847_v46 = vor.u32 %v4038_v41, %v3846_v40  ;;  %v4031_v40 = vld [vmem:[#allocation5 + $0x844] sm:$0xf]  ;;  %v3824_v41 = vld [vmem:[#allocation5 + $0x848] sm:$0xf0] }
0x160a   :  { %v2510_v48 = vpop.f32.mrf.mxu2 }
0x160b   :  { %v2516_v32 = vpack.c.bf16 %v2510_v48, %v2510_v48  ;;  %v4000_v48 = vld [vmem:[#allocation5 + $0x734] sm:$0xf0] }
0x160d   :  { %3672 = vmatmul.msk.bf16.vlgmr.msrb.gmra.mxu1 %vm553_vm5, %v2516_v32  ;;  %3673 = vmatmul.msk.bf16.vlgmr.msrb.gmra.mxu3 %vm553_vm5, %v2516_v32  ;;  %v3999_v32 = vld [vmem:[#allocation5 + $0x734] sm:$0xf] }
0x1612   :  { %v2512_v50 = vpop.f32.mrf.mxu2 }
0x1613   :  { %v3693_v50 = vor.u32 %v4000_v48, %v3692_v47  ;;  %v3787_v47 = vor.u32 %v4021_v43, %v3784_v44  ;;  %v3848_v48 = vld [vmem:[#allocation5 + $0x878] sm:$0xf0]  ;;  %v3827_v43 = vor.u32 %v4031_v40, %v3824_v41  ;;  %v3750_v44 = vld [vmem:[#allocation5 + $0x7b0] sm:$0xf] }
0x1615   :  { %2745 = vmatpush.bf16.msrb.mxu0 %v3693_v50  ;;  %v4020_v50 = vld [vmem:[#allocation5 + $0x7e4] sm:$0xf0] }
0x168a   :  { %v2546_v52 = vpop.f32.mrf.mxu1 }
0x168b   :  { %v2547_v53 = vadd.f32 %v2546_v52, %v2520_v20  ;;  %v3697_v20 = vor.u32 %v3999_v32, %v3694_v33  ;;  %v3684_v52 = vld [vmem:[#allocation5 + $0x720] sm:$0xf]  ;;  %v3851_v33 = vor.u32 %v4037_v45, %v3848_v48  ;;  %v4014_v45 = vld [vmem:[#allocation5 + $0x7b4] sm:$0xf0] }
0x168c   :  { %v3774_v32 = vld [vmem:[#allocation5 + $0x7e0] sm:$0xf]  ;;  %v4030_v48 = vld [vmem:[#allocation5 + $0x834] sm:$0xf0] }
0x168d   :  { %v2563_v57 = vadd.f32 %v2547_v53, %v2327_v19  ;;  %2771 = vmatpush.bf16.msra.mxu1 %v3697_v20  ;;  %v3998_v53 = vld [vmem:[#allocation5 + $0x724] sm:$0xf0]  ;;  %v3838_v20 = vld [vmem:[#allocation5 + $0x860] sm:$0xf] }
0x168f   :  { %v2569_v61 = vsel %vm1590_vm13, %v2563_v57, 0.0 }
0x1690   :  { %v2559_v56 = vpop.f32.mrf.mxu3 }
0x1691   :  { %v2560_v58 = vadd.f32 %v2559_v56, %v2521_v54  ;;  %v3997_v54 = vld [vmem:[#allocation5 + $0x724] sm:$0xf]  ;;  %v3685_v56 = vor.u32 %v3998_v53, %v3684_v52  ;;  %v4036_v52 = vld [vmem:[#allocation5 + $0x864] sm:$0xf0] }
0x1692   :  { %v2548_v59 = vpop.f32.mrf.mxu1  ;;  %v4019_v53 = vld [vmem:[#allocation5 + $0x7e4] sm:$0xf] }
0x1693   :  { %v2564_v60 = vadd.f32 %v2560_v58, %v4457_v10  ;;  %v2578_v10 = vmul.f32 %v4143_v5, %v2577_v9  ;;  %v2636_v58 = vld [vmem:[#allocation5 + $0x790] sm:$0x77]  ;;  %2746 = vmatpush.bf16.msrb.mxu0 %v3685_v56  ;;  %v4026_v9 = vld [vmem:[#allocation5 + $0x814] sm:$0xf0]  ;;  %v4035_v56 = vld [vmem:[#allocation5 + $0x864] sm:$0xf] }
0x1695   :  { %v2571_v62 = vsel %vm2570_vm2, %v2564_v60, 0.0  ;;  %v2579_v11 = vadd.f32 %v4143_v5, %v2578_v10  ;;  %v3862_v10 = vld [vmem:[#allocation5 + $0x890] sm:$0xf] }
0x1696   :  { %v2572_v63 = vadd.f32 %v2571_v62, %v2569_v61  ;;  %v2696_v61 = vunpack.c.h.b16 %v2636_v58  ;;  %v3676_v62 = vld [vmem:[#allocation5 + $0x710] sm:$0xf] }
0x1697   :  { %v4472_v12 = vsel %vm2580_vm3, %v4143_v5, %v2579_v11 }
0x1698   :  { %v2561_v2 = vpop.f32.mrf.mxu3  ;;  %2573 = vadd.xlane.f32.xlu2 %v2572_v63  ;;  %v3996_v63 = vld [vmem:[#allocation5 + $0x714] sm:$0xf0]  ;;  %v2714_v3 = vpack.c.b16 %v2696_v61, %v2696_v61  ;;  %v3839_v61 = vor.u32 %v4036_v52, %v3838_v20  ;;  %v4029_v52 = vld [vmem:[#allocation5 + $0x834] sm:$0xf] }
0x1699   :  { %v3677_v0 = vor.u32 %v3996_v63, %v3676_v62  ;;  %v3766_v63 = vld [vmem:[#allocation5 + $0x7d0] sm:$0xf] }
0x169a   :  { %v2738_v55 = vsel %vm2404_vm0, %v2714_v3, 0 }
0x169b   :  { %2747 = vmatpush.bf16.msrb.mxu0 %v3677_v0  ;;  %2786 = vmatpush.bf16.msra.mxu3 %v2738_v55  ;;  %v4034_v0 = vld [vmem:[#allocation5 + $0x854] sm:$0xf0]  ;;  %v4033_v55 = vld [vmem:[#allocation5 + $0x854] sm:$0xf] }
0x170b   :  { %v2574_v13 = vpop.xlane.xlu2 %2573 }
0x170c   :  { %v2582_v14 = vmul.f32 %v4472_v12, %v2574_v13  ;;  %v3799_v13 = vor.u32 %v4026_v9, %v3798_v8 }
0x170e   :  { %v4475_v15 = vsub.f32 %v2563_v57, %v2582_v14  ;;  %v4477_v16 = vsub.f32 %v2564_v60, %v2582_v14  ;;  %v3686_v57 = vld [vmem:[#allocation5 + $0x728] sm:$0xf0]  ;;  %v2695_v60 = vunpack.c.l.b16 %v2636_v58  ;;  %v4042_v14 = vld [vmem:[#allocation5 + $0x894] sm:$0xf0] }
0x170f   :  { %v3689_v59 = vor.u32 %v3997_v54, %v3686_v57  ;;  %v3776_v54 = vld [vmem:[#allocation5 + $0x7e8] sm:$0xf0] }
0x1710   :  { %v2585_v18 = vmul.f32 %v4475_v15, %v4475_v15  ;;  %v2586_v19 = vmul.f32 %v4477_v16, %v4477_v16  ;;  %v2713_v2 = vpack.c.b16 %v2695_v60, %v2695_v60  ;;  %v3840_v57 = vld [vmem:[#allocation5 + $0x868] sm:$0xf0]  ;;  %v3779_v62 = vor.u32 %v4019_v53, %v3776_v54  ;;  %v3816_v53 = vld [vmem:[#allocation5 + $0x838] sm:$0xf0] }
0x1711   :  { %2772 = vmatpush.bf16.msra.mxu1 %v3689_v59  ;;  %v3775_v59 = vor.u32 %v4020_v50, %v3774_v32  ;;  %v3843_v3 = vor.u32 %v4035_v56, %v3840_v57  ;;  %v4013_v32 = vld [vmem:[#allocation5 + $0x7b4] sm:$0xf]  ;;  %v3752_v50 = vld [vmem:[#allocation5 + $0x7b8] sm:$0xf0]  ;;  %v3819_v54 = vor.u32 %v4029_v52, %v3816_v53  ;;  %v3742_v56 = vld [vmem:[#allocation5 + $0x7a0] sm:$0xf] }
0x1712   :  { %v2587_v21 = vsel %vm1590_vm13, %v2585_v18, 0.0  ;;  %v2588_v22 = vsel %vm2570_vm2, %v2586_v19, 0.0  ;;  %v2735_v5 = vsel %vm2404_vm0, %v2713_v2, 0  ;;  %v4025_v18 = vld [vmem:[#allocation5 + $0x814] sm:$0xf]  ;;  %v3755_v20 = vor.u32 %v4013_v32, %v3752_v50 }
0x1713   :  { %v2589_v23 = vadd.f32 %v2588_v22, %v2587_v21  ;;  %2760 = vmatpush.bf16.msrb.mxu2 %v2735_v5  ;;  %v3800_v19 = vld [vmem:[#allocation5 + $0x818] sm:$0xf0]  ;;  %v3863_v21 = vor.u32 %v4042_v14, %v3862_v10  ;;  %v4018_v2 = vld [vmem:[#allocation5 + $0x7d4] sm:$0xf0]  ;;  %v3831_v10 = vor.u32 %v4034_v0, %v3830_v6  ;;  %v4012_v57 = vld [vmem:[#allocation5 + $0x7a4] sm:$0xf0] }
0x1714   :  { %v3803_v22 = vor.u32 %v4025_v18, %v3800_v19  ;;  %v3768_v5 = vld [vmem:[#allocation5 + $0x7d8] sm:$0xf0]  ;;  %v3767_v8 = vor.u32 %v4018_v2, %v3766_v63  ;;  %v2566_v14 = vld [vmem:[#allocation7 + $0x200] ss:$8 sm:$0x3] }
0x1715   :  { %2590 = vadd.xlane.f32.xlu0 %v2589_v23  ;;  %2773 = vmatpush.bf16.msra.mxu1 %v3681_v7  ;;  %v4041_v23 = vld [vmem:[#allocation5 + $0x894] sm:$0xf]  ;;  %v2568_v19 = vld [vmem:[#allocation7 + $0x210] ss:$8 sm:$0x3] }
0x1716   :  { %v3867_v27 = vor.u32 %v4041_v23, %v3864_v24  ;;  %3008 = vmatpush.bf16.msrb.mxu3 %v3863_v21  ;;  %3021 = vmatpush.bf16.msra.mxu0 %v3803_v22  ;;  %v2607_v22 = vperm.slane %v2566_v14, 0  ;;  %v2608_v23 = vperm.slane %v2566_v14, 1  ;;  %v2614_v49 = vperm.slane %v2568_v19, 0  ;;  %v4027_v6 = vld [vmem:[#allocation5 + $0x824] sm:$0xf] }
0x1717   :  { %2995 = vmatpush.bf16.msra.mxu2 %v3799_v13 }
0x1719   :  { %3034 = vmatpush.bf16.msrb.mxu1 %v3867_v27  ;;  %v2615_v27 = vperm.slane %v2568_v19, 1 }
0x171a   :  { %3009 = vmatpush.bf16.msrb.mxu3 %v3855_v35  ;;  %3022 = vmatpush.bf16.msra.mxu0 %v3795_v36 }
0x171b   :  { %2996 = vmatpush.bf16.msra.mxu2 %v3791_v25 }
0x171d   :  { %3035 = vmatpush.bf16.msrb.mxu1 %v3859_v51  ;;  %v3823_v51 = vor.u32 %v4032_v17, %v3822_v37 }
0x171e   :  { %3010 = vmatpush.bf16.msrb.mxu3 %v3847_v46  ;;  %3023 = vmatpush.bf16.msra.mxu0 %v3787_v47  ;;  %v3814_v46 = vld [vmem:[#allocation5 + $0x830] sm:$0xf]  ;;  %v3751_v47 = vor.u32 %v4014_v45, %v3750_v44 }
0x171f   :  { %2997 = vmatpush.bf16.msra.mxu2 %v3783_v42  ;;  %v3763_v42 = vor.u32 %v4015_v38, %v3760_v39 }
0x1721   :  { %3036 = vmatpush.bf16.msrb.mxu1 %v3851_v33  ;;  %v3815_v33 = vor.u32 %v4030_v48, %v3814_v46 }
0x1722   :  { %3011 = vmatpush.bf16.msrb.mxu3 %v3839_v61  ;;  %3024 = vmatpush.bf16.msra.mxu0 %v3779_v62  ;;  %v4011_v61 = vld [vmem:[#allocation5 + $0x7a4] sm:$0xf]  ;;  %v3744_v62 = vld [vmem:[#allocation5 + $0x7a8] sm:$0xf0] }
0x1723   :  { %2998 = vmatpush.bf16.msra.mxu2 %v3775_v59  ;;  %v3743_v59 = vor.u32 %v4012_v57, %v3742_v56  ;;  %v3747_v2 = vor.u32 %v4011_v61, %v3744_v62 }
0x1725   :  { %3037 = vmatpush.bf16.msrb.mxu1 %v3843_v3  ;;  %v3808_v3 = vld [vmem:[#allocation5 + $0x828] sm:$0xf0] }
0x1726   :  { %3012 = vmatpush.bf16.msrb.mxu3 %v3831_v10  ;;  %v3811_v0 = vor.u32 %v4027_v6, %v3808_v3 }
0x1727   :  { %2999 = vmatpush.bf16.msra.mxu2 %v3767_v8 }
0x172a   :  { %3013 = vmatpush.bf16.msrb.mxu3 %v3823_v51 }
0x172e   :  { %3014 = vmatpush.bf16.msrb.mxu3 %v3815_v33 }
0x1788   :  { %v2591_v1 = vpop.xlane.xlu0 %2590 }
0x1789   :  { %v2592_v11 = vmul.f32 %v2591_v1, %v4472_v12  ;;  %v3832_v1 = vld [vmem:[#allocation5 + $0x858] sm:$0xf0] }
0x178a   :  { %v3835_v13 = vor.u32 %v4033_v55, %v3832_v1 }
0x178b   :  { %v4488_v26 = vadd.f32 1e-05, %v2592_v11  ;;  %v3771_v11 = vor.u32 %v4017_v4, %v3768_v5  ;;  %v2640_v4 = vld [vmem:[#allocation7 + $0x1e0] ss:$8 sm:$0x3] }
0x178c   :  { %3038 = vmatpush.bf16.msrb.mxu1 %v3835_v13  ;;  %v2643_v1 = vperm.slane %v2640_v4, 1 }
0x178d   :  { %4144 = vrsqrt.f32 %v4488_v26  ;;  %vm2600_vm11 = vweird.f32 %v4488_v26  ;;  %3025 = vmatpush.bf16.msra.mxu0 %v3771_v11 }
0x1790   :  { %3039 = vmatpush.bf16.msrb.mxu1 %v3827_v43 }
0x1791   :  { %3026 = vmatpush.bf16.msra.mxu0 %v3763_v42 }
0x1793   :  { %v4145_v58 = vpop.eup %4144 }
0x1794   :  { %v2595_v60 = vmul.f32 %v4145_v58, %v4488_v26  ;;  %vm2601_vm5 = vweird.f32 %v4145_v58  ;;  %3040 = vmatpush.bf16.msrb.mxu1 %v3819_v54 }
0x1795   :  { %vm2602_vm12 = vmor %vm2600_vm11, %vm2601_vm5  ;;  %3027 = vmatpush.bf16.msra.mxu0 %v3755_v20 }
0x1796   :  { %v2596_v7 = vmul.f32 %v4145_v58, %v2595_v60  ;;  %v4028_v60 = vld [vmem:[#allocation5 + $0x824] sm:$0xf0] }
0x1798   :  { %v2597_v9 = vmul.f32 0.5, %v2596_v7  ;;  %3041 = vmatpush.bf16.msrb.mxu1 %v3811_v0  ;;  %v2642_v7 = vperm.slane %v2640_v4, 0 }
0x1799   :  { %3028 = vmatpush.bf16.msra.mxu0 %v3747_v2 }
0x179a   :  { %v2598_v18 = vsub.f32 1.5, %v2597_v9 }
0x179c   :  { %v2599_v21 = vmul.f32 %v4145_v58, %v2598_v18 }
0x179e   :  { %v2603_v24 = vsel %vm2602_vm12, %v4145_v58, %v2599_v21  ;;  %v3806_v58 = vld [vmem:[#allocation5 + $0x820] sm:$0xf] }
0x179f   :  { %v2604_v28 = vmul.f32 %v2603_v24, %v4475_v15  ;;  %v2605_v29 = vmul.f32 %v2603_v24, %v4477_v16  ;;  %v3758_v15 = vld [vmem:[#allocation5 + $0x7c0] sm:$0xf]  ;;  %v4016_v16 = vld [vmem:[#allocation5 + $0x7c4] sm:$0xf0]  ;;  %v3807_v63 = vor.u32 %v4028_v60, %v3806_v58 }
0x17a0   :  { %v3759_v36 = vor.u32 %v4016_v16, %v3758_v15  ;;  %v3050_v60 = vld [vmem:[#allocation7 + $0x220] ss:$8 sm:$0x3] }
0x17a1   :  { %v2611_v25 = vmul.f32 %v2607_v22, %v2604_v28  ;;  %v2612_v30 = vmul.f32 %v2608_v23, %v2605_v29  ;;  %3015 = vmatpush.bf16.msrb.mxu3 %v3807_v63  ;;  %v2829_v28 = vld [vmem:[#allocation7 + $0x1f0] ss:$8 sm:$0x3]  ;;  %v3083_v2 = vperm.slane %v3050_v60, 0  ;;  %v3084_v6 = vperm.slane %v3050_v60, 1 }
0x17a2   :  { %3000 = vmatpush.bf16.msra.mxu2 %v3759_v36  ;;  %v2832_v29 = vperm.slane %v2829_v28, 1  ;;  %v3052_v63 = vld [vmem:[#allocation7 + $0x230] ss:$8 sm:$0x3] }
0x17a3   :  { %v4495_v31 = vadd.f32 %v2614_v49, %v2611_v25  ;;  %v4497_v34 = vadd.f32 %v2615_v27, %v2612_v30 }
0x17a5   :  { %v2638_v26 = vpack.c.bf16 %v4497_v34, %v4497_v34  ;;  %v2637_v35 = vpack.c.bf16 %v4495_v31, %v4495_v31 }
0x17a6   :  { %3001 = vmatpush.bf16.msra.mxu2 %v3751_v47 }
0x17a7   :  { %2748 = vmatmul.bf16.vlgmr.msrb.gmra.mxu0 %v2637_v35  ;;  %3738 = vmatmul.msk.bf16.vlgmr.msrb.gmra.mxu2 %vm2400_vm1, %v2638_v26 }
0x17a8   :  { %2774 = vmatmul.bf16.vlgmr.msra.gmra.mxu1 %v2637_v35  ;;  %3739 = vmatmul.msk.bf16.vlgmr.msra.gmra.mxu3 %vm2400_vm1, %v2638_v26  ;;  %v2831_v35 = vperm.slane %v2829_v28, 0 }
0x17aa   :  { %3002 = vmatpush.bf16.msra.mxu2 %v3743_v59 }
0x1824   :  { %v2749_v5 = vpop.f32.mrf.mxu0 }
0x1825   :  { %v2775_v55 = vpop.f32.mrf.mxu1  ;;  %v2750_v8 = vadd.f32 %v2749_v5, %v2642_v7  ;;  %v3091_v5 = vperm.slane %v3052_v63, 1 }
0x1826   :  { %v2776_v9 = vadd.f32 %v2775_v55, %v2643_v1  ;;  %v3090_v55 = vperm.slane %v3052_v63, 0 }
0x182a   :  { %v2762_v10 = vpop.f32.mrf.mxu2 }
0x182b   :  { %v2763_v11 = vadd.f32 %v2762_v10, %v2750_v8  ;;  %v2788_v13 = vpop.f32.mrf.mxu3 }
0x182c   :  { %v2789_v14 = vadd.f32 %v2788_v13, %v2776_v9  ;;  %v2751_v18 = vpop.f32.mrf.mxu0 }
0x182d   :  { %v2792_v19 = vmax.f32 %v2763_v11, 0.0  ;;  %v2777_v21 = vpop.f32.mrf.mxu1 }
0x182e   :  { %v2793_v22 = vmax.f32 %v2789_v14, 0.0 }
0x182f   :  { %v2826_v23 = vpack.c.bf16 %v2792_v19, %v2792_v19 }
0x1830   :  { %v2827_v24 = vpack.c.bf16 %v2793_v22, %v2793_v22 }
0x1831   :  { %3003 = vmatmul.bf16.vlgmr.msra.gmra.mxu2 %v2826_v23  ;;  %3029 = vmatmul.bf16.vlgmr.msra.gmra.mxu0 %v2826_v23 }
0x1832   :  { %3016 = vmatmul.bf16.vlgmr.msrb.gmra.mxu3 %v2827_v24  ;;  %3042 = vmatmul.bf16.vlgmr.msrb.gmra.mxu1 %v2827_v24  ;;  %v2764_v49 = vpop.f32.mrf.mxu2 }
0x1833   :  { %v2790_v27 = vpop.f32.mrf.mxu3 }
0x18ae   :  { %v3030_v25 = vpop.f32.mrf.mxu0 }
0x18af   :  { %v3031_v30 = vadd.f32 %v3030_v25, %v2832_v29  ;;  %v3043_v26 = vpop.f32.mrf.mxu1 }
0x18b1   :  { %v3044_v15 = vadd.f32 %v3043_v26, %v3031_v30 }
0x18b3   :  { %v3048_v38 = vadd.f32 %v3044_v15, %v4497_v34 }
0x18b4   :  { %v3004_v16 = vpop.f32.mrf.mxu2 }
0x18b5   :  { %v3005_v36 = vadd.f32 %v3004_v16, %v2831_v35  ;;  %v3017_v37 = vpop.f32.mrf.mxu3  ;;  %v3054_v42 = vsel %vm2570_vm2, %v3048_v38, 0.0 }
0x18b6   :  { %v3032_v17 = vpop.f32.mrf.mxu0 }
0x18b7   :  { %v3018_v51 = vadd.f32 %v3017_v37, %v3005_v36  ;;  %v3045_v39 = vpop.f32.mrf.mxu1 }
0x18b9   :  { %v3047_v40 = vadd.f32 %v3018_v51, %v4495_v31 }
0x18bb   :  { %v3053_v41 = vsel %vm1590_vm13, %v3047_v40, 0.0 }
0x18bc   :  { %v3006_v43 = vpop.f32.mrf.mxu2  ;;  %v3055_v44 = vadd.f32 %v3054_v42, %v3053_v41 }
0x18bd   :  { %v3019_v45 = vpop.f32.mrf.mxu3 }
0x18be   :  { %3056 = vadd.xlane.f32.xlu1 %v3055_v44 }
0x1931   :  { %v3057_v46 = vpop.xlane.xlu1 %3056 }
0x1932   :  { %v3058_v47 = vmul.f32 %v3057_v46, %v4472_v12 }
0x1934   :  { %v3059_v48 = vsub.f32 %v3047_v40, %v3058_v47  ;;  %v3060_v32 = vsub.f32 %v3048_v38, %v3058_v47 }
0x1936   :  { %v3061_v50 = vmul.f32 %v3059_v48, %v3059_v48  ;;  %v3062_v33 = vmul.f32 %v3060_v32, %v3060_v32 }
0x1938   :  { %v3063_v34 = vsel %vm1590_vm13, %v3061_v50, 0.0  ;;  %v3064_v20 = vsel %vm2570_vm2, %v3062_v33, 0.0 }
0x1939   :  { %v3065_v31 = vadd.f32 %v3064_v20, %v3063_v34 }
0x193b   :  { %3066 = vadd.xlane.f32.xlu1 %v3065_v31 }
0x19ae   :  { %v3067_v52 = vpop.xlane.xlu1 %3066 }
0x19af   :  { %v3068_v53 = vmul.f32 %v3067_v52, %v4472_v12 }
0x19b1   :  { %v3069_v54 = vadd.f32 1e-05, %v3068_v53 }
0x19b3   :  { %4146 = vrsqrt.f32 %v3069_v54  ;;  %vm3076_vm6 = vweird.f32 %v3069_v54 }
0x19b9   :  { %v4147_v56 = vpop.eup %4146 }
0x19ba   :  { %v3071_v57 = vmul.f32 %v4147_v56, %v3069_v54  ;;  %vm3077_vm14 = vweird.f32 %v4147_v56 }
0x19bb   :  { %vm3078_vm4 = vmor %vm3076_vm6, %vm3077_vm14 }
0x19bc   :  { %v3072_v58 = vmul.f32 %v4147_v56, %v3071_v57 }
0x19be   :  { %v3073_v59 = vmul.f32 0.5, %v3072_v58 }
0x19c0   :  { %v3074_v61 = vsub.f32 1.5, %v3073_v59 }
0x19c2   :  { %v3075_v62 = vmul.f32 %v4147_v56, %v3074_v61 }
0x19c4   :  { %v3079_v3 = vsel %vm3078_vm4, %v4147_v56, %v3075_v62 }
0x19c5   :  { %v3080_v0 = vmul.f32 %v3079_v3, %v3059_v48  ;;  %v3081_v4 = vmul.f32 %v3079_v3, %v3060_v32 }
0x19c7   :  { %v3087_v12 = vmul.f32 %v3083_v2, %v3080_v0  ;;  %v3088_v7 = vmul.f32 %v3084_v6, %v3081_v4 }
0x19c9   :  { %v3095_v1 = vadd.f32 %v3091_v5, %v3088_v7  ;;  %v3094_v8 = vadd.f32 %v3090_v55, %v3087_v12 }
0x19cb   :  { %v3098_v9 = vrot.slane %v3095_v1, 6 }
0x19cd   :  { %v3099_v10 = vsel %vm1590_vm13, %v3094_v8, %v3098_v9 }
0x19ce   :  { %3103 = vst.msk [vmem:[#allocation8] sm:$0xf] %vm3102_vm7, %v3099_v10 }
0x19cf   :  { %3114 = dma.vmem_to_hbm [thread:$0]  %s3110_s8, 64, %s3112_s11, [#allocation4]  }
0x19d0   :  { %4248 = dma.done.wait [#allocation4], 64  }
0x19d1   :  { %4249 = vsyncadd [#allocation4], 4294967232 }
0x19d2   :  { %3119 = vsyncpa [#allocation3], 1 }
0x19d3   :  { %3120 = vsyncpa [#allocation6], 1 }
0x19d4   :  { %3121 = vsyncpa [#allocation4], 1 }

</bundles_post_ra>
